<compile_context>
chip_gen: v5e
topology: v5e:2x2
jax: 0.10.0
libtpu: 0.0.40
codegen_flags: <defaults>
</compile_context>

<pallas_src>
import jax
import jax.numpy as jnp
from jax.experimental import pallas as pl
from jax.experimental.pallas import tpu as pltpu

# Static model dimensions (implied by the module).
H, W = 9, 10             # input spatial size
C_IN = 7                 # input channels
C1 = 32                  # conv1 out channels
H1, W1 = H - 2, W - 2    # 7, 8
C2 = 64                  # conv2 out channels
H2, W2 = H1 - 2, W1 - 2  # 5, 6
F1 = 128                 # fc1 out features
F2 = 4                   # fc2 out features

X_ROW = 128              # input row (W*C_IN = 70 scalars) lane-padded to 128
ROW1 = W1 * C1           # 256 scalars per conv1 output row  (lane aligned)
ROW2 = W2 * C2           # 384 scalars per conv2 output row  (lane aligned)
FLAT = H2 * ROW2         # 1920 = fc1 in_features
OUT_PAD = 128            # fc2 output lanes, zero-padded from 4 -> 128

B_ALIGN = 16             # bf16 sublane packing: tile rows in multiples of 16


def qnet_kernel(x_ref, w1_ref, b1_ref, w2_ref, b2_ref,
                wf1_ref, bf1_ref, wf2_ref, bf2_ref,
                out_ref, h1_ref, acc_ref):
    f32 = jnp.float32
    bf16 = jnp.bfloat16
    bt = out_ref.shape[0]

    # ---- conv1 + ReLU: one (BT,384) @ (384,256) bf16 matmul per output row --
    w1 = w1_ref[...]                                    # (3*X_ROW, ROW1) bf16
    b1b = jnp.broadcast_to(b1_ref[...], (bt, ROW1))     # f32 bias, hoisted
    for oy in range(H1):
        win = x_ref[:, oy * X_ROW:(oy + 3) * X_ROW]     # (BT, 384) bf16
        row = jnp.dot(win, w1, preferred_element_type=f32)     # (BT, 256) f32
        h1_ref[:, oy * ROW1:(oy + 1) * ROW1] = (
            jnp.maximum(row + b1b, 0.0).astype(bf16))

    # ---- conv2 + ReLU fused with fc1 (K-blocked accumulation) ---------------
    w2 = w2_ref[...]                                    # (3*ROW1, ROW2) bf16
    b2b = jnp.broadcast_to(b2_ref[...], (bt, ROW2))     # f32 bias, hoisted
    for oy in range(H2):
        win = h1_ref[:, oy * ROW1:(oy + 3) * ROW1]      # (BT, 768) bf16
        row = jnp.dot(win, w2, preferred_element_type=f32)     # (BT, 384) f32
        row = jnp.maximum(row + b2b, 0.0).astype(bf16)         # conv2 out row
        # fc1 partial product for this conv2 row (torch flatten order is
        # handled by the wf1 row reordering in the wrapper).
        part = jnp.dot(row, wf1_ref[oy * ROW2:(oy + 1) * ROW2, :],
                       preferred_element_type=f32)             # (BT, 128) f32
        if oy == 0:
            acc_ref[...] = part
        else:
            acc_ref[...] += part

    # ---- fc1 bias + ReLU, then fc2 (lane-dense 128-wide output) -------------
    y1 = jnp.maximum(acc_ref[...] + bf1_ref[...], 0.0).astype(bf16)  # (BT,128)
    out_ref[...] = (jnp.dot(y1, wf2_ref[...], preferred_element_type=f32)
                    + bf2_ref[...])                     # (BT, OUT_PAD) f32


def _round_up(n, m):
    return ((n + m - 1) // m) * m


def _conv_row_weight(w_oihw, in_w, out_w, row_pad):
    """Banded matrix turning a 3-input-row window into one conv output row.

    Input window is flattened as (ky, wx, ci), each ky-row padded to `row_pad`
    scalars; output row is flattened as (ox, co).  window @ result == valid
    3x3 stride-1 conv output row (before bias).
    """
    co, ci, kh, kw = w_oihw.shape
    w_hwio = jnp.transpose(w_oihw, (2, 3, 1, 0)).astype(jnp.float32)  # (kh,kw,ci,co)
    band = jnp.zeros((kh, in_w, ci, out_w, co), jnp.float32)
    for dx in range(kw):
        for ox in range(out_w):
            band = band.at[:, ox + dx, :, ox, :].set(w_hwio[:, dx, :, :])
    band = band.reshape(kh, in_w * ci, out_w * co)
    band = jnp.pad(band, ((0, 0), (0, row_pad - in_w * ci), (0, 0)))
    return band.reshape(kh * row_pad, out_w * co)


def qnet_forward(x_nchw, p, b_tile=512):
    """x_nchw: (B, 7, 9, 10) float32, PyTorch-convention input. Returns (B, 4)."""
    B = x_nchw.shape[0]
    b_full = _round_up(B, B_ALIGN)
    bt = _round_up(min(b_tile, b_full), B_ALIGN)
    # Keep >= 2 grid steps when the batch is big enough to split, so both
    # v7x TensorCores get work on the "parallel" batch axis.
    if bt >= b_full and b_full >= 2 * B_ALIGN:
        bt = _round_up(b_full // 2, B_ALIGN)
    b_pad = _round_up(B, bt)

    # Input: NCHW -> NHWC -> per-row (w, c) flatten, lane-pad each row to 128.
    x_rows = jnp.transpose(x_nchw, (0, 2, 3, 1)).astype(jnp.float32)   # (B,9,10,7)
    x_rows = x_rows.reshape(B, H, W * C_IN)                            # (B,9,70)
    x_rows = jnp.pad(x_rows, ((0, b_pad - B), (0, 0), (0, X_ROW - W * C_IN)))
    x_flat = x_rows.reshape(b_pad, H * X_ROW).astype(jnp.bfloat16)     # (b_pad,1152)

    # Conv weights folded into banded row matrices ("im2col in the weight").
    w1_k = _conv_row_weight(p["w1"], W, W1, X_ROW).astype(jnp.bfloat16)   # (384,256)
    w2_k = _conv_row_weight(p["w2"], W1, W2, ROW1).astype(jnp.bfloat16)   # (768,384)
    b1_k = jnp.tile(p["b1"], W1)[None, :].astype(jnp.float32)             # (1,256)
    b2_k = jnp.tile(p["b2"], W2)[None, :].astype(jnp.float32)             # (1,384)

    # fc1 weight: torch columns are (c, h, w)-ordered; reorder rows to the
    # kernel's (h, w, c) flatten order.
    wf1_k = (p["wf1"].T.reshape(C2, H2, W2, F1)
             .transpose(1, 2, 0, 3).reshape(FLAT, F1).astype(jnp.bfloat16))  # (1920,128)
    bf1_k = p["bf1"][None, :].astype(jnp.float32)                            # (1,128)
    # fc2 weight/bias zero-padded to 128 output lanes (lane-dense stores).
    wf2_k = jnp.zeros((F1, OUT_PAD), jnp.float32).at[:, :F2].set(p["wf2"].T)
    wf2_k = wf2_k.astype(jnp.bfloat16)                                       # (128,128)
    bf2_k = jnp.zeros((1, OUT_PAD), jnp.float32).at[0, :F2].set(p["bf2"])    # (1,128)

    grid_spec = pltpu.PrefetchScalarGridSpec(
        num_scalar_prefetch=0,
        grid=(b_pad // bt,),
        in_specs=[
            pl.BlockSpec((bt, H * X_ROW), lambda i: (i, 0)),
            # Grid-invariant weights/biases (constant index_map -> DMA'd once).
            pl.BlockSpec((3 * X_ROW, ROW1), lambda i: (0, 0)),
            pl.BlockSpec((1, ROW1), lambda i: (0, 0)),
            pl.BlockSpec((3 * ROW1, ROW2), lambda i: (0, 0)),
            pl.BlockSpec((1, ROW2), lambda i: (0, 0)),
            pl.BlockSpec((FLAT, F1), lambda i: (0, 0)),
            pl.BlockSpec((1, F1), lambda i: (0, 0)),
            pl.BlockSpec((F1, OUT_PAD), lambda i: (0, 0)),
            pl.BlockSpec((1, OUT_PAD), lambda i: (0, 0)),
        ],
        out_specs=pl.BlockSpec((bt, OUT_PAD), lambda i: (i, 0)),
        scratch_shapes=[
            pltpu.VMEM((bt, H1 * ROW1), jnp.bfloat16),  # conv1 rows (lane-dense)
            pltpu.VMEM((bt, F1), jnp.float32),          # fused fc1 accumulator
        ],
    )

    out = pl.pallas_call(
        qnet_kernel,
        out_shape=jax.ShapeDtypeStruct((b_pad, OUT_PAD), jnp.float32),
        grid_spec=grid_spec,
        compiler_params=pltpu.CompilerParams(
            dimension_semantics=("parallel",),
            vmem_limit_bytes=32 * 1024 * 1024),
    )(x_flat, w1_k, b1_k, w2_k, b2_k, wf1_k, bf1_k, wf2_k, bf2_k)
    return out[:B, :F2]


def qnet_reference(x_nchw, p):
    """Pure-JAX f32 replica of the PyTorch forward (NCHW), for verification."""
    h = jax.lax.conv_general_dilated(
        x_nchw, p["w1"], (1, 1), "VALID",
        dimension_numbers=("NCHW", "OIHW", "NCHW"))
    h = jax.nn.relu(h + p["b1"][None, :, None, None])
    h = jax.lax.conv_general_dilated(
        h, p["w2"], (1, 1), "VALID",
        dimension_numbers=("NCHW", "OIHW", "NCHW"))
    h = jax.nn.relu(h + p["b2"][None, :, None, None])
    hf = h.reshape(h.shape[0], -1)                      # torch.flatten(x, 1) on NCHW
    y = jax.nn.relu(hf @ p["wf1"].T + p["bf1"])
    return y @ p["wf2"].T + p["bf2"]


if __name__ == "__main__":
    key = jax.random.PRNGKey(0)
    ks = jax.random.split(key, 11)

    # Deterministic synthetic parameters (PyTorch-layout shapes).
    params = {
        "w1": 0.10 * jax.random.normal(ks[1], (C1, C_IN, 3, 3), jnp.float32),
        "b1": 0.10 * jax.random.normal(ks[2], (C1,), jnp.float32),
        "w2": 0.05 * jax.random.normal(ks[3], (C2, C1, 3, 3), jnp.float32),
        "b2": 0.05 * jax.random.normal(ks[4], (C2,), jnp.float32),
        "wf1": 0.02 * jax.random.normal(ks[5], (F1, C2 * H2 * W2), jnp.float32),
        "bf1": 0.02 * jax.random.normal(ks[6], (F1,), jnp.float32),
        "wf2": 0.05 * jax.random.normal(ks[7], (F2, F1), jnp.float32),
        "bf2": 0.05 * jax.random.normal(ks[8], (F2,), jnp.float32),
    }

    def check(x, out, name):
        ref = qnet_reference(x, params)
        err = float(jnp.max(jnp.abs(out - ref)))
        # bf16 MXU path (f32 accumulation): loose tolerance vs f32 reference.
        if not jnp.allclose(out, ref, rtol=5e-2, atol=5e-2):
            raise SystemExit(f"mismatch vs reference ({name}), max abs err = {err:e}")

    # Small batch (single tile).
    x_small = jax.random.normal(ks[0], (2, C_IN, H, W), jnp.float32)   # NCHW input
    out_small = qnet_forward(x_small, params)
    jax.block_until_ready(out_small)
    assert out_small.shape == (2, F2)
    check(x_small, out_small, "B=2")

    # Ragged batch exercising multiple grid steps + batch padding.
    x_big = jax.random.normal(ks[9], (20, C_IN, H, W), jnp.float32)
    out_big = qnet_forward(x_big, params, b_tile=16)
    jax.block_until_ready(out_big)
    check(x_big, out_big, "B=20")

    # Default tile with the >=2-grid-step split (v7x megacore-friendly path).
    x_mid = jax.random.normal(ks[10], (40, C_IN, H, W), jnp.float32)
    out_mid = qnet_forward(x_mid, params)
    jax.block_until_ready(out_mid)
    check(x_mid, out_mid, "B=40")

    print("KERNEL_OK")
</pallas_src>

<mosaic_0001>
module attributes {stable_mosaic.version = 11 : i64} {
  func.func @qnet_kernel(%arg0: i32, %arg1: memref<16x1152xbf16, #tpu.memory_space<vmem>>, %arg2: memref<384x256xbf16, #tpu.memory_space<vmem>>, %arg3: memref<1x256xf32, #tpu.memory_space<vmem>>, %arg4: memref<768x384xbf16, #tpu.memory_space<vmem>>, %arg5: memref<1x384xf32, #tpu.memory_space<vmem>>, %arg6: memref<1920x128xbf16, #tpu.memory_space<vmem>>, %arg7: memref<1x128xf32, #tpu.memory_space<vmem>>, %arg8: memref<128x128xbf16, #tpu.memory_space<vmem>>, %arg9: memref<1x128xf32, #tpu.memory_space<vmem>>, %arg10: memref<16x128xf32, #tpu.memory_space<vmem>>, %arg11: memref<16x1792xbf16, #tpu.memory_space<vmem>>, %arg12: memref<16x128xf32, #tpu.memory_space<vmem>>) attributes {dimension_semantics = [#tpu.dimension_semantics<parallel>], iteration_bounds = array<i64: 1>, scalar_prefetch = 0 : i64, scratch_operands = 2 : i64, tpu.core_type = #tpu.core_type<tc>, window_params = [{transform_indices = @transform_0, window_bounds = array<i64: 16, 1152>}, {pipeline_mode = #tpu.pipeline_mode<synchronous>, transform_indices = @transform_1, window_bounds = array<i64: 384, 256>}, {pipeline_mode = #tpu.pipeline_mode<synchronous>, transform_indices = @transform_2, window_bounds = array<i64: 1, 256>}, {pipeline_mode = #tpu.pipeline_mode<synchronous>, transform_indices = @transform_3, window_bounds = array<i64: 768, 384>}, {pipeline_mode = #tpu.pipeline_mode<synchronous>, transform_indices = @transform_4, window_bounds = array<i64: 1, 384>}, {pipeline_mode = #tpu.pipeline_mode<synchronous>, transform_indices = @transform_5, window_bounds = array<i64: 1920, 128>}, {pipeline_mode = #tpu.pipeline_mode<synchronous>, transform_indices = @transform_6, window_bounds = array<i64: 1, 128>}, {pipeline_mode = #tpu.pipeline_mode<synchronous>, transform_indices = @transform_7, window_bounds = array<i64: 128, 128>}, {pipeline_mode = #tpu.pipeline_mode<synchronous>, transform_indices = @transform_8, window_bounds = array<i64: 1, 128>}, {transform_indices = @transform_9, window_bounds = array<i64: 16, 128>}]} {
    %c0 = arith.constant 0 : index
    %c0_0 = arith.constant 0 : index
    %0 = vector.load %arg2[%c0, %c0_0] : memref<384x256xbf16, #tpu.memory_space<vmem>>, vector<384x256xbf16>
    %c0_1 = arith.constant 0 : index
    %c0_2 = arith.constant 0 : index
    %1 = vector.load %arg3[%c0_1, %c0_2] : memref<1x256xf32, #tpu.memory_space<vmem>>, vector<1x256xf32>
    %2 = vector.shape_cast %1 : vector<1x256xf32> to vector<1x256xf32>
    %3 = vector.broadcast %2 : vector<1x256xf32> to vector<16x256xf32>
    %c0_3 = arith.constant 0 : index
    %c0_4 = arith.constant 0 : index
    %4 = vector.load %arg1[%c0_3, %c0_4] : memref<16x1152xbf16, #tpu.memory_space<vmem>>, vector<16x384xbf16>
    %cst = arith.constant dense<0.000000e+00> : vector<16x256xf32>
    %5 = tpu.matmul %4, %0, %cst {dimension_numbers = #tpu.dot_dimension_numbers<[1], [0], [0], [1], [0, 0, 1, 1], [], []>} : vector<16x384xbf16>, vector<384x256xbf16>, vector<16x256xf32> -> vector<16x256xf32>
    %6 = arith.addf %5, %3 : vector<16x256xf32>
    %cst_5 = arith.constant 0.000000e+00 : f32
    %7 = vector.broadcast %cst_5 : f32 to vector<16x256xf32>
    %8 = arith.maximumf %6, %7 : vector<16x256xf32>
    %9 = arith.truncf %8 : vector<16x256xf32> to vector<16x256xbf16>
    %c0_6 = arith.constant 0 : index
    %c0_7 = arith.constant 0 : index
    %10 = vector.load %arg11[%c0_6, %c0_7] : memref<16x1792xbf16, #tpu.memory_space<vmem>>, vector<16x256xbf16>
    tpu.vector_store %arg11[%c0_6, %c0_7], %9 {strides = array<i32>} : memref<16x1792xbf16, #tpu.memory_space<vmem>>, vector<16x256xbf16>,
    %c0_8 = arith.constant 0 : index
    %c128 = arith.constant 128 : index
    %11 = vector.load %arg1[%c0_8, %c128] : memref<16x1152xbf16, #tpu.memory_space<vmem>>, vector<16x384xbf16>
    %cst_9 = arith.constant dense<0.000000e+00> : vector<16x256xf32>
    %12 = tpu.matmul %11, %0, %cst_9 {dimension_numbers = #tpu.dot_dimension_numbers<[1], [0], [0], [1], [0, 0, 1, 1], [], []>} : vector<16x384xbf16>, vector<384x256xbf16>, vector<16x256xf32> -> vector<16x256xf32>
    %13 = arith.addf %12, %3 : vector<16x256xf32>
    %cst_10 = arith.constant 0.000000e+00 : f32
    %14 = vector.broadcast %cst_10 : f32 to vector<16x256xf32>
    %15 = arith.maximumf %13, %14 : vector<16x256xf32>
    %16 = arith.truncf %15 : vector<16x256xf32> to vector<16x256xbf16>
    %c0_11 = arith.constant 0 : index
    %c256 = arith.constant 256 : index
    %17 = vector.load %arg11[%c0_11, %c256] : memref<16x1792xbf16, #tpu.memory_space<vmem>>, vector<16x256xbf16>
    tpu.vector_store %arg11[%c0_11, %c256], %16 {strides = array<i32>} : memref<16x1792xbf16, #tpu.memory_space<vmem>>, vector<16x256xbf16>,
    %c0_12 = arith.constant 0 : index
    %c256_13 = arith.constant 256 : index
    %18 = vector.load %arg1[%c0_12, %c256_13] : memref<16x1152xbf16, #tpu.memory_space<vmem>>, vector<16x384xbf16>
    %cst_14 = arith.constant dense<0.000000e+00> : vector<16x256xf32>
    %19 = tpu.matmul %18, %0, %cst_14 {dimension_numbers = #tpu.dot_dimension_numbers<[1], [0], [0], [1], [0, 0, 1, 1], [], []>} : vector<16x384xbf16>, vector<384x256xbf16>, vector<16x256xf32> -> vector<16x256xf32>
    %20 = arith.addf %19, %3 : vector<16x256xf32>
    %cst_15 = arith.constant 0.000000e+00 : f32
    %21 = vector.broadcast %cst_15 : f32 to vector<16x256xf32>
    %22 = arith.maximumf %20, %21 : vector<16x256xf32>
    %23 = arith.truncf %22 : vector<16x256xf32> to vector<16x256xbf16>
    %c0_16 = arith.constant 0 : index
    %c512 = arith.constant 512 : index
    %24 = vector.load %arg11[%c0_16, %c512] : memref<16x1792xbf16, #tpu.memory_space<vmem>>, vector<16x256xbf16>
    tpu.vector_store %arg11[%c0_16, %c512], %23 {strides = array<i32>} : memref<16x1792xbf16, #tpu.memory_space<vmem>>, vector<16x256xbf16>,
    %c0_17 = arith.constant 0 : index
    %c384 = arith.constant 384 : index
    %25 = vector.load %arg1[%c0_17, %c384] : memref<16x1152xbf16, #tpu.memory_space<vmem>>, vector<16x384xbf16>
    %cst_18 = arith.constant dense<0.000000e+00> : vector<16x256xf32>
    %26 = tpu.matmul %25, %0, %cst_18 {dimension_numbers = #tpu.dot_dimension_numbers<[1], [0], [0], [1], [0, 0, 1, 1], [], []>} : vector<16x384xbf16>, vector<384x256xbf16>, vector<16x256xf32> -> vector<16x256xf32>
    %27 = arith.addf %26, %3 : vector<16x256xf32>
    %cst_19 = arith.constant 0.000000e+00 : f32
    %28 = vector.broadcast %cst_19 : f32 to vector<16x256xf32>
    %29 = arith.maximumf %27, %28 : vector<16x256xf32>
    %30 = arith.truncf %29 : vector<16x256xf32> to vector<16x256xbf16>
    %c0_20 = arith.constant 0 : index
    %c768 = arith.constant 768 : index
    %31 = vector.load %arg11[%c0_20, %c768] : memref<16x1792xbf16, #tpu.memory_space<vmem>>, vector<16x256xbf16>
    tpu.vector_store %arg11[%c0_20, %c768], %30 {strides = array<i32>} : memref<16x1792xbf16, #tpu.memory_space<vmem>>, vector<16x256xbf16>,
    %c0_21 = arith.constant 0 : index
    %c512_22 = arith.constant 512 : index
    %32 = vector.load %arg1[%c0_21, %c512_22] : memref<16x1152xbf16, #tpu.memory_space<vmem>>, vector<16x384xbf16>
    %cst_23 = arith.constant dense<0.000000e+00> : vector<16x256xf32>
    %33 = tpu.matmul %32, %0, %cst_23 {dimension_numbers = #tpu.dot_dimension_numbers<[1], [0], [0], [1], [0, 0, 1, 1], [], []>} : vector<16x384xbf16>, vector<384x256xbf16>, vector<16x256xf32> -> vector<16x256xf32>
    %34 = arith.addf %33, %3 : vector<16x256xf32>
    %cst_24 = arith.constant 0.000000e+00 : f32
    %35 = vector.broadcast %cst_24 : f32 to vector<16x256xf32>
    %36 = arith.maximumf %34, %35 : vector<16x256xf32>
    %37 = arith.truncf %36 : vector<16x256xf32> to vector<16x256xbf16>
    %c0_25 = arith.constant 0 : index
    %c1024 = arith.constant 1024 : index
    %38 = vector.load %arg11[%c0_25, %c1024] : memref<16x1792xbf16, #tpu.memory_space<vmem>>, vector<16x256xbf16>
    tpu.vector_store %arg11[%c0_25, %c1024], %37 {strides = array<i32>} : memref<16x1792xbf16, #tpu.memory_space<vmem>>, vector<16x256xbf16>,
    %c0_26 = arith.constant 0 : index
    %c640 = arith.constant 640 : index
    %39 = vector.load %arg1[%c0_26, %c640] : memref<16x1152xbf16, #tpu.memory_space<vmem>>, vector<16x384xbf16>
    %cst_27 = arith.constant dense<0.000000e+00> : vector<16x256xf32>
    %40 = tpu.matmul %39, %0, %cst_27 {dimension_numbers = #tpu.dot_dimension_numbers<[1], [0], [0], [1], [0, 0, 1, 1], [], []>} : vector<16x384xbf16>, vector<384x256xbf16>, vector<16x256xf32> -> vector<16x256xf32>
    %41 = arith.addf %40, %3 : vector<16x256xf32>
    %cst_28 = arith.constant 0.000000e+00 : f32
    %42 = vector.broadcast %cst_28 : f32 to vector<16x256xf32>
    %43 = arith.maximumf %41, %42 : vector<16x256xf32>
    %44 = arith.truncf %43 : vector<16x256xf32> to vector<16x256xbf16>
    %c0_29 = arith.constant 0 : index
    %c1280 = arith.constant 1280 : index
    %45 = vector.load %arg11[%c0_29, %c1280] : memref<16x1792xbf16, #tpu.memory_space<vmem>>, vector<16x256xbf16>
    tpu.vector_store %arg11[%c0_29, %c1280], %44 {strides = array<i32>} : memref<16x1792xbf16, #tpu.memory_space<vmem>>, vector<16x256xbf16>,
    %c0_30 = arith.constant 0 : index
    %c768_31 = arith.constant 768 : index
    %46 = vector.load %arg1[%c0_30, %c768_31] : memref<16x1152xbf16, #tpu.memory_space<vmem>>, vector<16x384xbf16>
    %cst_32 = arith.constant dense<0.000000e+00> : vector<16x256xf32>
    %47 = tpu.matmul %46, %0, %cst_32 {dimension_numbers = #tpu.dot_dimension_numbers<[1], [0], [0], [1], [0, 0, 1, 1], [], []>} : vector<16x384xbf16>, vector<384x256xbf16>, vector<16x256xf32> -> vector<16x256xf32>
    %48 = arith.addf %47, %3 : vector<16x256xf32>
    %cst_33 = arith.constant 0.000000e+00 : f32
    %49 = vector.broadcast %cst_33 : f32 to vector<16x256xf32>
    %50 = arith.maximumf %48, %49 : vector<16x256xf32>
    %51 = arith.truncf %50 : vector<16x256xf32> to vector<16x256xbf16>
    %c0_34 = arith.constant 0 : index
    %c1536 = arith.constant 1536 : index
    %52 = vector.load %arg11[%c0_34, %c1536] : memref<16x1792xbf16, #tpu.memory_space<vmem>>, vector<16x256xbf16>
    tpu.vector_store %arg11[%c0_34, %c1536], %51 {strides = array<i32>} : memref<16x1792xbf16, #tpu.memory_space<vmem>>, vector<16x256xbf16>,
    %c0_35 = arith.constant 0 : index
    %c0_36 = arith.constant 0 : index
    %53 = vector.load %arg4[%c0_35, %c0_36] : memref<768x384xbf16, #tpu.memory_space<vmem>>, vector<768x384xbf16>
    %c0_37 = arith.constant 0 : index
    %c0_38 = arith.constant 0 : index
    %54 = vector.load %arg5[%c0_37, %c0_38] : memref<1x384xf32, #tpu.memory_space<vmem>>, vector<1x384xf32>
    %55 = vector.shape_cast %54 : vector<1x384xf32> to vector<1x384xf32>
    %56 = vector.broadcast %55 : vector<1x384xf32> to vector<16x384xf32>
    %c0_39 = arith.constant 0 : index
    %c0_40 = arith.constant 0 : index
    %57 = vector.load %arg11[%c0_39, %c0_40] : memref<16x1792xbf16, #tpu.memory_space<vmem>>, vector<16x768xbf16>
    %cst_41 = arith.constant dense<0.000000e+00> : vector<16x384xf32>
    %58 = tpu.matmul %57, %53, %cst_41 {dimension_numbers = #tpu.dot_dimension_numbers<[1], [0], [0], [1], [0, 0, 1, 1], [], []>} : vector<16x768xbf16>, vector<768x384xbf16>, vector<16x384xf32> -> vector<16x384xf32>
    %59 = arith.addf %58, %56 : vector<16x384xf32>
    %cst_42 = arith.constant 0.000000e+00 : f32
    %60 = vector.broadcast %cst_42 : f32 to vector<16x384xf32>
    %61 = arith.maximumf %59, %60 : vector<16x384xf32>
    %62 = arith.truncf %61 : vector<16x384xf32> to vector<16x384xbf16>
    %c0_43 = arith.constant 0 : index
    %c0_44 = arith.constant 0 : index
    %63 = vector.load %arg6[%c0_43, %c0_44] : memref<1920x128xbf16, #tpu.memory_space<vmem>>, vector<384x128xbf16>
    %cst_45 = arith.constant dense<0.000000e+00> : vector<16x128xf32>
    %64 = tpu.matmul %62, %63, %cst_45 {dimension_numbers = #tpu.dot_dimension_numbers<[1], [0], [0], [1], [0, 0, 1, 1], [], []>} : vector<16x384xbf16>, vector<384x128xbf16>, vector<16x128xf32> -> vector<16x128xf32>
    %c0_46 = arith.constant 0 : index
    %c0_47 = arith.constant 0 : index
    %65 = vector.load %arg12[%c0_46, %c0_47] : memref<16x128xf32, #tpu.memory_space<vmem>>, vector<16x128xf32>
    tpu.vector_store %arg12[%c0_46, %c0_47], %64 {strides = array<i32>} : memref<16x128xf32, #tpu.memory_space<vmem>>, vector<16x128xf32>,
    %c0_48 = arith.constant 0 : index
    %c256_49 = arith.constant 256 : index
    %66 = vector.load %arg11[%c0_48, %c256_49] : memref<16x1792xbf16, #tpu.memory_space<vmem>>, vector<16x768xbf16>
    %cst_50 = arith.constant dense<0.000000e+00> : vector<16x384xf32>
    %67 = tpu.matmul %66, %53, %cst_50 {dimension_numbers = #tpu.dot_dimension_numbers<[1], [0], [0], [1], [0, 0, 1, 1], [], []>} : vector<16x768xbf16>, vector<768x384xbf16>, vector<16x384xf32> -> vector<16x384xf32>
    %68 = arith.addf %67, %56 : vector<16x384xf32>
    %cst_51 = arith.constant 0.000000e+00 : f32
    %69 = vector.broadcast %cst_51 : f32 to vector<16x384xf32>
    %70 = arith.maximumf %68, %69 : vector<16x384xf32>
    %71 = arith.truncf %70 : vector<16x384xf32> to vector<16x384xbf16>
    %c384_52 = arith.constant 384 : index
    %c0_53 = arith.constant 0 : index
    %72 = vector.load %arg6[%c384_52, %c0_53] : memref<1920x128xbf16, #tpu.memory_space<vmem>>, vector<384x128xbf16>
    %cst_54 = arith.constant dense<0.000000e+00> : vector<16x128xf32>
    %73 = tpu.matmul %71, %72, %cst_54 {dimension_numbers = #tpu.dot_dimension_numbers<[1], [0], [0], [1], [0, 0, 1, 1], [], []>} : vector<16x384xbf16>, vector<384x128xbf16>, vector<16x128xf32> -> vector<16x128xf32>
    %c0_55 = arith.constant 0 : index
    %c0_56 = arith.constant 0 : index
    %74 = vector.load %arg12[%c0_55, %c0_56] : memref<16x128xf32, #tpu.memory_space<vmem>>, vector<16x128xf32>
    %75 = arith.addf %74, %73 : vector<16x128xf32>
    %c0_57 = arith.constant 0 : index
    %c0_58 = arith.constant 0 : index
    %76 = vector.load %arg12[%c0_57, %c0_58] : memref<16x128xf32, #tpu.memory_space<vmem>>, vector<16x128xf32>
    tpu.vector_store %arg12[%c0_57, %c0_58], %75 {strides = array<i32>} : memref<16x128xf32, #tpu.memory_space<vmem>>, vector<16x128xf32>,
    %c0_59 = arith.constant 0 : index
    %c512_60 = arith.constant 512 : index
    %77 = vector.load %arg11[%c0_59, %c512_60] : memref<16x1792xbf16, #tpu.memory_space<vmem>>, vector<16x768xbf16>
    %cst_61 = arith.constant dense<0.000000e+00> : vector<16x384xf32>
    %78 = tpu.matmul %77, %53, %cst_61 {dimension_numbers = #tpu.dot_dimension_numbers<[1], [0], [0], [1], [0, 0, 1, 1], [], []>} : vector<16x768xbf16>, vector<768x384xbf16>, vector<16x384xf32> -> vector<16x384xf32>
    %79 = arith.addf %78, %56 : vector<16x384xf32>
    %cst_62 = arith.constant 0.000000e+00 : f32
    %80 = vector.broadcast %cst_62 : f32 to vector<16x384xf32>
    %81 = arith.maximumf %79, %80 : vector<16x384xf32>
    %82 = arith.truncf %81 : vector<16x384xf32> to vector<16x384xbf16>
    %c768_63 = arith.constant 768 : index
    %c0_64 = arith.constant 0 : index
    %83 = vector.load %arg6[%c768_63, %c0_64] : memref<1920x128xbf16, #tpu.memory_space<vmem>>, vector<384x128xbf16>
    %cst_65 = arith.constant dense<0.000000e+00> : vector<16x128xf32>
    %84 = tpu.matmul %82, %83, %cst_65 {dimension_numbers = #tpu.dot_dimension_numbers<[1], [0], [0], [1], [0, 0, 1, 1], [], []>} : vector<16x384xbf16>, vector<384x128xbf16>, vector<16x128xf32> -> vector<16x128xf32>
    %c0_66 = arith.constant 0 : index
    %c0_67 = arith.constant 0 : index
    %85 = vector.load %arg12[%c0_66, %c0_67] : memref<16x128xf32, #tpu.memory_space<vmem>>, vector<16x128xf32>
    %86 = arith.addf %85, %84 : vector<16x128xf32>
    %c0_68 = arith.constant 0 : index
    %c0_69 = arith.constant 0 : index
    %87 = vector.load %arg12[%c0_68, %c0_69] : memref<16x128xf32, #tpu.memory_space<vmem>>, vector<16x128xf32>
    tpu.vector_store %arg12[%c0_68, %c0_69], %86 {strides = array<i32>} : memref<16x128xf32, #tpu.memory_space<vmem>>, vector<16x128xf32>,
    %c0_70 = arith.constant 0 : index
    %c768_71 = arith.constant 768 : index
    %88 = vector.load %arg11[%c0_70, %c768_71] : memref<16x1792xbf16, #tpu.memory_space<vmem>>, vector<16x768xbf16>
    %cst_72 = arith.constant dense<0.000000e+00> : vector<16x384xf32>
    %89 = tpu.matmul %88, %53, %cst_72 {dimension_numbers = #tpu.dot_dimension_numbers<[1], [0], [0], [1], [0, 0, 1, 1], [], []>} : vector<16x768xbf16>, vector<768x384xbf16>, vector<16x384xf32> -> vector<16x384xf32>
    %90 = arith.addf %89, %56 : vector<16x384xf32>
    %cst_73 = arith.constant 0.000000e+00 : f32
    %91 = vector.broadcast %cst_73 : f32 to vector<16x384xf32>
    %92 = arith.maximumf %90, %91 : vector<16x384xf32>
    %93 = arith.truncf %92 : vector<16x384xf32> to vector<16x384xbf16>
    %c1152 = arith.constant 1152 : index
    %c0_74 = arith.constant 0 : index
    %94 = vector.load %arg6[%c1152, %c0_74] : memref<1920x128xbf16, #tpu.memory_space<vmem>>, vector<384x128xbf16>
    %cst_75 = arith.constant dense<0.000000e+00> : vector<16x128xf32>
    %95 = tpu.matmul %93, %94, %cst_75 {dimension_numbers = #tpu.dot_dimension_numbers<[1], [0], [0], [1], [0, 0, 1, 1], [], []>} : vector<16x384xbf16>, vector<384x128xbf16>, vector<16x128xf32> -> vector<16x128xf32>
    %c0_76 = arith.constant 0 : index
    %c0_77 = arith.constant 0 : index
    %96 = vector.load %arg12[%c0_76, %c0_77] : memref<16x128xf32, #tpu.memory_space<vmem>>, vector<16x128xf32>
    %97 = arith.addf %96, %95 : vector<16x128xf32>
    %c0_78 = arith.constant 0 : index
    %c0_79 = arith.constant 0 : index
    %98 = vector.load %arg12[%c0_78, %c0_79] : memref<16x128xf32, #tpu.memory_space<vmem>>, vector<16x128xf32>
    tpu.vector_store %arg12[%c0_78, %c0_79], %97 {strides = array<i32>} : memref<16x128xf32, #tpu.memory_space<vmem>>, vector<16x128xf32>,
    %c0_80 = arith.constant 0 : index
    %c1024_81 = arith.constant 1024 : index
    %99 = vector.load %arg11[%c0_80, %c1024_81] : memref<16x1792xbf16, #tpu.memory_space<vmem>>, vector<16x768xbf16>
    %cst_82 = arith.constant dense<0.000000e+00> : vector<16x384xf32>
    %100 = tpu.matmul %99, %53, %cst_82 {dimension_numbers = #tpu.dot_dimension_numbers<[1], [0], [0], [1], [0, 0, 1, 1], [], []>} : vector<16x768xbf16>, vector<768x384xbf16>, vector<16x384xf32> -> vector<16x384xf32>
    %101 = arith.addf %100, %56 : vector<16x384xf32>
    %cst_83 = arith.constant 0.000000e+00 : f32
    %102 = vector.broadcast %cst_83 : f32 to vector<16x384xf32>
    %103 = arith.maximumf %101, %102 : vector<16x384xf32>
    %104 = arith.truncf %103 : vector<16x384xf32> to vector<16x384xbf16>
    %c1536_84 = arith.constant 1536 : index
    %c0_85 = arith.constant 0 : index
    %105 = vector.load %arg6[%c1536_84, %c0_85] : memref<1920x128xbf16, #tpu.memory_space<vmem>>, vector<384x128xbf16>
    %cst_86 = arith.constant dense<0.000000e+00> : vector<16x128xf32>
    %106 = tpu.matmul %104, %105, %cst_86 {dimension_numbers = #tpu.dot_dimension_numbers<[1], [0], [0], [1], [0, 0, 1, 1], [], []>} : vector<16x384xbf16>, vector<384x128xbf16>, vector<16x128xf32> -> vector<16x128xf32>
    %c0_87 = arith.constant 0 : index
    %c0_88 = arith.constant 0 : index
    %107 = vector.load %arg12[%c0_87, %c0_88] : memref<16x128xf32, #tpu.memory_space<vmem>>, vector<16x128xf32>
    %108 = arith.addf %107, %106 : vector<16x128xf32>
    %c0_89 = arith.constant 0 : index
    %c0_90 = arith.constant 0 : index
    %109 = vector.load %arg12[%c0_89, %c0_90] : memref<16x128xf32, #tpu.memory_space<vmem>>, vector<16x128xf32>
    tpu.vector_store %arg12[%c0_89, %c0_90], %108 {strides = array<i32>} : memref<16x128xf32, #tpu.memory_space<vmem>>, vector<16x128xf32>,
    %c0_91 = arith.constant 0 : index
    %c0_92 = arith.constant 0 : index
    %110 = vector.load %arg12[%c0_91, %c0_92] : memref<16x128xf32, #tpu.memory_space<vmem>>, vector<16x128xf32>
    %c0_93 = arith.constant 0 : index
    %c0_94 = arith.constant 0 : index
    %111 = vector.load %arg7[%c0_93, %c0_94] : memref<1x128xf32, #tpu.memory_space<vmem>>, vector<1x128xf32>
    %112 = vector.broadcast %111 : vector<1x128xf32> to vector<16x128xf32>
    %113 = arith.addf %110, %112 : vector<16x128xf32>
    %cst_95 = arith.constant 0.000000e+00 : f32
    %114 = vector.broadcast %cst_95 : f32 to vector<16x128xf32>
    %115 = arith.maximumf %113, %114 : vector<16x128xf32>
    %116 = arith.truncf %115 : vector<16x128xf32> to vector<16x128xbf16>
    %c0_96 = arith.constant 0 : index
    %c0_97 = arith.constant 0 : index
    %117 = vector.load %arg8[%c0_96, %c0_97] : memref<128x128xbf16, #tpu.memory_space<vmem>>, vector<128x128xbf16>
    %cst_98 = arith.constant dense<0.000000e+00> : vector<16x128xf32>
    %118 = tpu.matmul %116, %117, %cst_98 {dimension_numbers = #tpu.dot_dimension_numbers<[1], [0], [0], [1], [0, 0, 1, 1], [], []>} : vector<16x128xbf16>, vector<128x128xbf16>, vector<16x128xf32> -> vector<16x128xf32>
    %c0_99 = arith.constant 0 : index
    %c0_100 = arith.constant 0 : index
    %119 = vector.load %arg9[%c0_99, %c0_100] : memref<1x128xf32, #tpu.memory_space<vmem>>, vector<1x128xf32>
    %120 = vector.broadcast %119 : vector<1x128xf32> to vector<16x128xf32>
    %121 = arith.addf %118, %120 : vector<16x128xf32>
    %c0_101 = arith.constant 0 : index
    %c0_102 = arith.constant 0 : index
    %122 = vector.load %arg10[%c0_101, %c0_102] : memref<16x128xf32, #tpu.memory_space<vmem>>, vector<16x128xf32>
    tpu.vector_store %arg10[%c0_101, %c0_102], %121 {strides = array<i32>} : memref<16x128xf32, #tpu.memory_space<vmem>>, vector<16x128xf32>,
    return
  }
  func.func @transform_0(%arg0: i32) -> (i32, i32) {
    %c0_i32 = arith.constant 0 : i32
    %c0_i32_0 = arith.constant 0 : i32
    return %arg0, %c0_i32 : i32, i32
  }
  func.func @transform_1(%arg0: i32) -> (i32, i32) {
    %c0_i32 = arith.constant 0 : i32
    %c0_i32_0 = arith.constant 0 : i32
    %c0_i32_1 = arith.constant 0 : i32
    return %c0_i32, %c0_i32_0 : i32, i32
  }
  func.func @transform_2(%arg0: i32) -> (i32, i32) {
    %c0_i32 = arith.constant 0 : i32
    %c0_i32_0 = arith.constant 0 : i32
    %c0_i32_1 = arith.constant 0 : i32
    return %c0_i32, %c0_i32_0 : i32, i32
  }
  func.func @transform_3(%arg0: i32) -> (i32, i32) {
    %c0_i32 = arith.constant 0 : i32
    %c0_i32_0 = arith.constant 0 : i32
    %c0_i32_1 = arith.constant 0 : i32
    return %c0_i32, %c0_i32_0 : i32, i32
  }
  func.func @transform_4(%arg0: i32) -> (i32, i32) {
    %c0_i32 = arith.constant 0 : i32
    %c0_i32_0 = arith.constant 0 : i32
    %c0_i32_1 = arith.constant 0 : i32
    return %c0_i32, %c0_i32_0 : i32, i32
  }
  func.func @transform_5(%arg0: i32) -> (i32, i32) {
    %c0_i32 = arith.constant 0 : i32
    %c0_i32_0 = arith.constant 0 : i32
    %c0_i32_1 = arith.constant 0 : i32
    return %c0_i32, %c0_i32_0 : i32, i32
  }
  func.func @transform_6(%arg0: i32) -> (i32, i32) {
    %c0_i32 = arith.constant 0 : i32
    %c0_i32_0 = arith.constant 0 : i32
    %c0_i32_1 = arith.constant 0 : i32
    return %c0_i32, %c0_i32_0 : i32, i32
  }
  func.func @transform_7(%arg0: i32) -> (i32, i32) {
    %c0_i32 = arith.constant 0 : i32
    %c0_i32_0 = arith.constant 0 : i32
    %c0_i32_1 = arith.constant 0 : i32
    return %c0_i32, %c0_i32_0 : i32, i32
  }
  func.func @transform_8(%arg0: i32) -> (i32, i32) {
    %c0_i32 = arith.constant 0 : i32
    %c0_i32_0 = arith.constant 0 : i32
    %c0_i32_1 = arith.constant 0 : i32
    return %c0_i32, %c0_i32_0 : i32, i32
  }
  func.func @transform_9(%arg0: i32) -> (i32, i32) {
    %c0_i32 = arith.constant 0 : i32
    %c0_i32_0 = arith.constant 0 : i32
    return %arg0, %c0_i32 : i32, i32
  }
}

</mosaic_0001>

<bundles_post_ra>
// kernel: tpu_custom_call.1
= control target key start
LH: loop header
LB: loop body
LE: loop exit
PB: predicated region body
PF: predicated region fallthrough
CT: control target
= control target key end

     0   :  { %14 = vsyncpa [#allocation5], 0  ;;  %s8858_s0 = inlined_call_operand.hbm [shape: bf16[16,1152], index: 0, kind: input, shape index: {}]   ;;  %s8859_s1 = inlined_call_operand.hbm [shape: bf16[384,256], index: 1, kind: input, shape index: {}]   ;;  %s8860_s2 = inlined_call_operand.hbm [shape: f32[1,256], index: 2, kind: input, shape index: {}]   ;;  %s8861_s3 = inlined_call_operand.hbm [shape: bf16[768,384], index: 3, kind: input, shape index: {}]   ;;  %s8862_s4 = inlined_call_operand.vmem [shape: f32[1,384], index: 4, kind: input, shape index: {}]   ;;  %s8863_s5 = inlined_call_operand.hbm [shape: bf16[1920,128], index: 5, kind: input, shape index: {}]   ;;  %s8864_s6 = inlined_call_operand.vmem [shape: f32[1,128], index: 6, kind: input, shape index: {}]   ;;  %s8865_s7 = inlined_call_operand.hbm [shape: bf16[128,128], index: 7, kind: input, shape index: {}]   ;;  %s8866_s8 = inlined_call_operand.vmem [shape: f32[1,128], index: 8, kind: input, shape index: {}]   ;;  %s8867_s9 = inlined_call_operand.hbm [shape: f32[16,128], index: 9, kind: output, shape index: {}]  }
   0x1   :  { %15 = vsyncpa [#allocation8], 0 }
   0x2   :  { %16 = vsyncpa [#allocation11], 0 }
   0x3   :  { %17 = vsyncpa [#allocation14], 0  ;;  %s36_s11 = sshll.u32 %s8859_s1, 4  ;;  %s37_s11 = int_to_ptr.hbm [resolvable:$true] %s36_s11 }
   0x4   :  { %18 = vsyncpa [#allocation6], 0  ;;  %s7019_s12 = smov [#allocation7]   ;;  %s60_s16 = sshll.u32 %s8861_s3, 4  ;;  %s61_s16 = int_to_ptr.hbm [resolvable:$true] %s60_s16 }
   0x5   :  { %s38_s13 = sshll.u32 %s7019_s12, 4  ;;  %s7020_s17 = smov 128   ;;  %s39_s13 = int_to_ptr.vmem [resolvable:$true] %s38_s13 }
   0x6   :  { %s7021_s18 = smov 8   ;;  %s7022_s19 = smov [#allocation10]  }
   0x7   :  { %44 = dma.hbm_to_vmem [thread:$0]  %s37_s11, 6144, %s39_s13, [#allocation8], %s7020_s17, %s7020_s17, %s7021_s18  }
   0x8   :  { %s62_s20 = sshll.u32 %s7022_s19, 4  ;;  %s7023_s1 = smov 192   ;;  %s63_s20 = int_to_ptr.vmem [resolvable:$true] %s62_s20 }
   0x9   :  { %s7024_s21 = smov 12   ;;  %s23_s24 = sshll.u32 %s8858_s0, 4  ;;  %s24_s24 = int_to_ptr.hbm [resolvable:$true] %s23_s24 }
   0xa   :  { %68 = dma.hbm_to_vmem [thread:$0]  %s61_s16, 18432, %s63_s20, [#allocation11], %s7023_s1, %s7023_s1, %s7024_s21  }
   0xb   :  { %s7025_s25 = smov [#allocation4]   ;;  %s50_s28 = sshll.u32 %s8860_s2, 4  ;;  %s51_s28 = int_to_ptr.hbm [resolvable:$true] %s50_s28 }
   0xc   :  { %s25_s3 = sshll.u32 %s7025_s25, 4  ;;  %s7026_s29 = smov 576   ;;  %s26_s3 = int_to_ptr.vmem [resolvable:$true] %s25_s3 }
   0xd   :  { %s7027_s30 = smov 36   ;;  %s7028_s10 = smov [#allocation9]  }
   0xe   :  { %31 = dma.hbm_to_vmem [thread:$0]  %s24_s24, 1152, %s26_s3, [#allocation5], %s7026_s29, %s7026_s29, %s7027_s30  }
   0xf   :  { %s52_s11 = sshll.u32 %s7028_s10, 4  ;;  %s75_s14 = sshll.u32 %s8863_s5, 4  ;;  %s53_s11 = int_to_ptr.vmem [resolvable:$true] %s52_s11  ;;  %s76_s14 = int_to_ptr.hbm [resolvable:$true] %s75_s14 }
  0x10   :  { %55 = dma.hbm_to_vmem [thread:$0]  %s51_s28, 32, %s53_s11, [#allocation8]  }
  0x11   :  { %s7029_s0 = smov [#allocation12]   ;;  %s90_s2 = sshll.u32 %s8865_s7, 4  ;;  %s91_s2 = int_to_ptr.hbm [resolvable:$true] %s90_s2 }
  0x12   :  { %s77_s15 = sshll.u32 %s7029_s0, 4  ;;  %s7030_s20 = smov 64   ;;  %s78_s15 = int_to_ptr.vmem [resolvable:$true] %s77_s15 }
  0x13   :  { %s7031_s1 = smov 4   ;;  %s7032_s21 = smov [#allocation13]  }
  0x14   :  { %83 = dma.hbm_to_vmem [thread:$0]  %s76_s14, 15360, %s78_s15, [#allocation11], %s7030_s20, %s7030_s20, %s7031_s1  }
  0x15   :  { %s92_s22 = sshll.u32 %s7032_s21, 4  ;;  %s93_s22 = int_to_ptr.vmem [resolvable:$true] %s92_s22 }
  0x16   :  { %98 = dma.hbm_to_vmem [thread:$0]  %s91_s2, 1024, %s93_s22, [#allocation14], %s7030_s20, %s7030_s20, %s7031_s1  }
  0x17   :  { %7009 = dma.done.wait [#allocation5], 1152  }
  0x18   :  { %7010 = vsyncadd [#allocation5], 4294966144 }
  0x19   :  { %7011 = dma.done.wait [#allocation8], 6176  }
  0x1a   :  { %7012 = vsyncadd [#allocation8], 4294961120 }
  0x1b   :  { %7013 = dma.done.wait [#allocation11], 33792  }
  0x1c   :  { %7014 = vsyncadd [#allocation11], 4294933504 }
  0x1d   :  { %7015 = dma.done.wait [#allocation14], 1024  }
  0x1e   :  { %7016 = vsyncadd [#allocation14], 4294966272  ;;  %v5039_v0 = vld [vmem:[#allocation7 + $0x70] sm:$0xf]  ;;  %v6468_v1 = vld [vmem:[#allocation7 + $0x74] sm:$0xf0] }
  0x1f   :  { %v5103_v2 = vld [vmem:[#allocation7 + $0xf0] sm:$0xf]  ;;  %v7105_v3 = vor.u32 %v6468_v1, %v5039_v0  ;;  %v6484_v4 = vld [vmem:[#allocation7 + $0xf4] sm:$0xf0]  ;;  %v6467_v9 = vld [vmem:[#allocation7 + $0x74] sm:$0xf] }
  0x20   :  { %v5167_v5 = vld [vmem:[#allocation7 + $0x170] sm:$0xf]  ;;  %v6500_v6 = vld [vmem:[#allocation7 + $0x174] sm:$0xf0]  ;;  %v7107_v7 = vor.u32 %v6484_v4, %v5103_v2  ;;  %v5041_v10 = vld [vmem:[#allocation7 + $0x78] sm:$0xf0] }
  0x21   :  { %v7109_v8 = vor.u32 %v6500_v6, %v5167_v5  ;;  %v5031_v11 = vld [vmem:[#allocation7 + $0x60] sm:$0xf]  ;;  %439 = vmatpush.bf16.msra.mxu0 %v7105_v3  ;;  %v7112_v12 = vor.u32 %v6467_v9, %v5041_v10  ;;  %v6466_v13 = vld [vmem:[#allocation7 + $0x64] sm:$0xf0]  ;;  %v6465_v20 = vld [vmem:[#allocation7 + $0x64] sm:$0xf] }
  0x22   :  { %v5095_v14 = vld [vmem:[#allocation7 + $0xe0] sm:$0xf]  ;;  %v6482_v15 = vld [vmem:[#allocation7 + $0xe4] sm:$0xf0]  ;;  %453 = vmatpush.bf16.msra.mxu1 %v7107_v7  ;;  %v7116_v16 = vor.u32 %v6466_v13, %v5031_v11  ;;  %v5033_v22 = vld [vmem:[#allocation7 + $0x68] sm:$0xf0] }
  0x23   :  { %467 = vmatpush.bf16.msra.mxu2 %v7109_v8  ;;  %v7118_v17 = vor.u32 %v6482_v15, %v5095_v14  ;;  %v5159_v18 = vld [vmem:[#allocation7 + $0x160] sm:$0xf]  ;;  %v6498_v19 = vld [vmem:[#allocation7 + $0x164] sm:$0xf0]  ;;  %481 = vmatpush.bf16.msra.mxu3 %v7112_v12  ;;  %v5023_v23 = vld [vmem:[#allocation7 + $0x50] sm:$0xf]  ;;  %v7123_v25 = vor.u32 %v6465_v20, %v5033_v22 }
  0x24   :  { %v7121_v21 = vor.u32 %v6498_v19, %v5159_v18  ;;  %v6464_v24 = vld [vmem:[#allocation7 + $0x54] sm:$0xf0]  ;;  %v5087_v26 = vld [vmem:[#allocation7 + $0xd0] sm:$0xf]  ;;  %v6463_v31 = vld [vmem:[#allocation7 + $0x54] sm:$0xf] }
  0x25   :  { %v6480_v27 = vld [vmem:[#allocation7 + $0xd4] sm:$0xf0]  ;;  %v5151_v28 = vld [vmem:[#allocation7 + $0x150] sm:$0xf]  ;;  %440 = vmatpush.bf16.msra.mxu0 %v7116_v16  ;;  %v7126_v29 = vor.u32 %v6464_v24, %v5023_v23  ;;  %v5025_v32 = vld [vmem:[#allocation7 + $0x58] sm:$0xf0] }
  0x26   :  { %v6496_v30 = vld [vmem:[#allocation7 + $0x154] sm:$0xf0]  ;;  %454 = vmatpush.bf16.msra.mxu1 %v7118_v17  ;;  %v7130_v33 = vor.u32 %v6480_v27, %v5087_v26  ;;  %v5015_v35 = vld [vmem:[#allocation7 + $0x40] sm:$0xf]  ;;  %v6462_v36 = vld [vmem:[#allocation7 + $0x44] sm:$0xf0]  ;;  %v7135_v38 = vor.u32 %v6463_v31, %v5025_v32 }
  0x27   :  { %468 = vmatpush.bf16.msra.mxu2 %v7121_v21  ;;  %v7132_v34 = vor.u32 %v6496_v30, %v5151_v28  ;;  %v5079_v37 = vld [vmem:[#allocation7 + $0xc0] sm:$0xf]  ;;  %482 = vmatpush.bf16.msra.mxu3 %v7123_v25  ;;  %v6478_v39 = vld [vmem:[#allocation7 + $0xc4] sm:$0xf0]  ;;  %v6461_v42 = vld [vmem:[#allocation7 + $0x44] sm:$0xf]  ;;  %v7138_v44 = vor.u32 %v6462_v36, %v5015_v35 }
  0x28   :  { %9185 = vst [vmem:[#allocation21_spill] sm:$0xff] %v7130_v33  ;;  %v5143_v40 = vld [vmem:[#allocation7 + $0x140] sm:$0xf]  ;;  %v6494_v41 = vld [vmem:[#allocation7 + $0x144] sm:$0xf0]  ;;  %v7142_v45 = vor.u32 %v6478_v39, %v5079_v37  ;;  %s7033_s3 = smov [#allocation15]  }
  0x29   :  { %v5017_v43 = vld [vmem:[#allocation7 + $0x48] sm:$0xf0]  ;;  %441 = vmatpush.bf16.msra.mxu0 %v7126_v29  ;;  %9186 = vst [vmem:[#allocation22_spill] sm:$0xff] %v7138_v44  ;;  %v7144_v46 = vor.u32 %v6494_v41, %v5143_v40  ;;  %v5007_v47 = vld [vmem:[#allocation7 + $0x30] sm:$0xf]  ;;  %s4951_s26 = sshll.u32 %s7033_s3, 4  ;;  %s4952_s26 = int_to_ptr.vmem [resolvable:$true] %s4951_s26 }
  0x2a   :  { %455 = vmatpush.bf16.msra.mxu1 %v7130_v33  ;;  %9187 = vst [vmem:[#allocation23_spill] sm:$0xff] %v7142_v45  ;;  %v6460_v48 = vld [vmem:[#allocation7 + $0x34] sm:$0xf0]  ;;  %v5071_v49 = vld [vmem:[#allocation7 + $0xb0] sm:$0xf]  ;;  %v7147_v50 = vor.u32 %v6461_v42, %v5017_v43  ;;  %s4953_s28 = sshll.u32 %s8867_s9, 4  ;;  %s4954_s28 = int_to_ptr.hbm [resolvable:$true] %s4953_s28 }
  0x2b   :  { %469 = vmatpush.bf16.msra.mxu2 %v7132_v34  ;;  %483 = vmatpush.bf16.msra.mxu3 %v7135_v38  ;;  %v6476_v51 = vld [vmem:[#allocation7 + $0xb4] sm:$0xf0]  ;;  %v5135_v52 = vld [vmem:[#allocation7 + $0x130] sm:$0xf]  ;;  %v6459_v54 = vld [vmem:[#allocation7 + $0x34] sm:$0xf]  ;;  %v7150_v56 = vor.u32 %v6460_v48, %v5007_v47 }
  0x2c   :  { %v6492_v53 = vld [vmem:[#allocation7 + $0x134] sm:$0xf0]  ;;  %v5009_v55 = vld [vmem:[#allocation7 + $0x38] sm:$0xf0]  ;;  %v7154_v57 = vor.u32 %v6476_v51, %v5071_v49  ;;  %v4999_v59 = vld [vmem:[#allocation7 + $0x20] sm:$0xf] }
  0x2d   :  { %442 = vmatpush.bf16.msra.mxu0 %v7138_v44  ;;  %v7156_v58 = vor.u32 %v6492_v53, %v5135_v52  ;;  %v6458_v60 = vld [vmem:[#allocation7 + $0x24] sm:$0xf0]  ;;  %v5063_v61 = vld [vmem:[#allocation7 + $0xa0] sm:$0xf]  ;;  %v7159_v62 = vor.u32 %v6459_v54, %v5009_v55  ;;  %v6457_v2 = vld [vmem:[#allocation7 + $0x24] sm:$0xf] }
  0x2e   :  { %456 = vmatpush.bf16.msra.mxu1 %v7142_v45  ;;  %v6474_v63 = vld [vmem:[#allocation7 + $0xa4] sm:$0xf0]  ;;  %v5127_v0 = vld [vmem:[#allocation7 + $0x120] sm:$0xf]  ;;  %v5001_v4 = vld [vmem:[#allocation7 + $0x28] sm:$0xf0]  ;;  %v7162_v5 = vor.u32 %v6458_v60, %v4999_v59 }
  0x2f   :  { %470 = vmatpush.bf16.msra.mxu2 %v7144_v46  ;;  %484 = vmatpush.bf16.msra.mxu3 %v7147_v50  ;;  %v6490_v1 = vld [vmem:[#allocation7 + $0x124] sm:$0xf0]  ;;  %v7166_v6 = vor.u32 %v6474_v63, %v5063_v61  ;;  %v4991_v10 = vld [vmem:[#allocation7 + $0x10] sm:$0xf]  ;;  %v6456_v11 = vld [vmem:[#allocation7 + $0x14] sm:$0xf0]  ;;  %v7171_v14 = vor.u32 %v6457_v2, %v5001_v4 }
  0x30   :  { %v7168_v9 = vor.u32 %v6490_v1, %v5127_v0  ;;  %v5055_v13 = vld [vmem:[#allocation7 + $0x90] sm:$0xf]  ;;  %v6472_v15 = vld [vmem:[#allocation7 + $0x94] sm:$0xf0]  ;;  %v6455_v20 = vld [vmem:[#allocation7 + $0x14] sm:$0xf]  ;;  %v7174_v23 = vor.u32 %v6456_v11, %v4991_v10 }
  0x31   :  { %443 = vmatpush.bf16.msra.mxu0 %v7150_v56  ;;  %v5119_v18 = vld [vmem:[#allocation7 + $0x110] sm:$0xf]  ;;  %v6488_v19 = vld [vmem:[#allocation7 + $0x114] sm:$0xf0]  ;;  %v4993_v22 = vld [vmem:[#allocation7 + $0x18] sm:$0xf0]  ;;  %v7178_v26 = vor.u32 %v6472_v15, %v5055_v13 }
  0x32   :  { %457 = vmatpush.bf16.msra.mxu1 %v7154_v57  ;;  %v4983_v24 = vld [vmem:[#allocation7] sm:$0xf]  ;;  %v7180_v27 = vor.u32 %v6488_v19, %v5119_v18  ;;  %v6454_v28 = vld [vmem:[#allocation7 + $0x4] sm:$0xf0]  ;;  %v7183_v32 = vor.u32 %v6455_v20, %v4993_v22  ;;  %v6453_v37 = vld [vmem:[#allocation7 + $0x4] sm:$0xf] }
  0x33   :  { %471 = vmatpush.bf16.msra.mxu2 %v7156_v58  ;;  %485 = vmatpush.bf16.msra.mxu3 %v7159_v62  ;;  %v5047_v30 = vld [vmem:[#allocation7 + $0x80] sm:$0xf]  ;;  %v6470_v31 = vld [vmem:[#allocation7 + $0x84] sm:$0xf0]  ;;  %v4985_v39 = vld [vmem:[#allocation7 + $0x8] sm:$0xf0]  ;;  %v7186_v42 = vor.u32 %v6454_v28, %v4983_v24 }
  0x34   :  { %v5111_v35 = vld [vmem:[#allocation7 + $0x100] sm:$0xf]  ;;  %v6486_v36 = vld [vmem:[#allocation7 + $0x104] sm:$0xf0]  ;;  %v6483_v40 = vld [vmem:[#allocation7 + $0xf4] sm:$0xf]  ;;  %v7190_v48 = vor.u32 %v6470_v31, %v5047_v30  ;;  %v7195_v53 = vor.u32 %v6453_v37, %v4985_v39 }
  0x35   :  { %444 = vmatpush.bf16.msra.mxu0 %v7162_v5  ;;  %v5105_v41 = vld [vmem:[#allocation7 + $0xf8] sm:$0xf0]  ;;  %v6499_v43 = vld [vmem:[#allocation7 + $0x174] sm:$0xf]  ;;  %v7192_v49 = vor.u32 %v6486_v36, %v5111_v35  ;;  %v4971_v51 = vld [vmem:[#allocation4] sm:$0xf] }
  0x36   :  { %458 = vmatpush.bf16.msra.mxu1 %v7166_v6  ;;  %v5169_v47 = vld [vmem:[#allocation7 + $0x178] sm:$0xf0]  ;;  %v7197_v54 = vor.u32 %v6483_v40, %v5105_v41  ;;  %v4973_v59 = vld [vmem:[#allocation4 + $0x24] sm:$0xf0]  ;;  %v6481_v61 = vld [vmem:[#allocation7 + $0xe4] sm:$0xf] }
  0x37   :  { %472 = vmatpush.bf16.msra.mxu2 %v7168_v9  ;;  %486 = vmatpush.bf16.msra.mxu3 %v7171_v14  ;;  %v6502_v52 = vld [vmem:[#allocation4 + $0x20] sm:$0xf0]  ;;  %v7199_v60 = vor.u32 %v6499_v43, %v5169_v47  ;;  %v5097_v63 = vld [vmem:[#allocation7 + $0xe8] sm:$0xf0]  ;;  %v4979_v0 = vld [vmem:[#allocation4 + $0x8] sm:$0xf] }
  0x38   :  { %v6501_v55 = vld [vmem:[#allocation4 + $0x4] sm:$0xf]  ;;  %v6497_v1 = vld [vmem:[#allocation7 + $0x164] sm:$0xf]  ;;  %v5161_v2 = vld [vmem:[#allocation7 + $0x168] sm:$0xf0]  ;;  %v4972_v4 = vor.u32 %v6502_v52, %v4971_v51  ;;  %v7210_v15 = vor.u32 %v6481_v61, %v5097_v63 }
  0x39   :  { %445 = vmatpush.bf16.msra.mxu0 %v7174_v23  ;;  %v6503_v10 = vld [vmem:[#allocation4 + $0x28] sm:$0xf0]  ;;  %v7204_v11 = vor.u32 %v6501_v55, %v4973_v59  ;;  %v6479_v18 = vld [vmem:[#allocation7 + $0xd4] sm:$0xf]  ;;  %v7214_v19 = vor.u32 %v6497_v1, %v5161_v2  ;;  %v5089_v20 = vld [vmem:[#allocation7 + $0xd8] sm:$0xf0] }
  0x3a   :  { %459 = vmatpush.bf16.msra.mxu1 %v7178_v26  ;;  %v7206_v13 = vor.u32 %v6503_v10, %v4979_v0  ;;  %v6495_v22 = vld [vmem:[#allocation7 + $0x154] sm:$0xf]  ;;  %v5153_v24 = vld [vmem:[#allocation7 + $0x158] sm:$0xf0]  ;;  %v7220_v28 = vor.u32 %v6479_v18, %v5089_v20  ;;  %v6477_v31 = vld [vmem:[#allocation7 + $0xc4] sm:$0xf] }
  0x3b   :  { %473 = vmatpush.bf16.msra.mxu2 %v7180_v27  ;;  %487 = vmatpush.bf16.msra.mxu3 %v7183_v32  ;;  %v7224_v30 = vor.u32 %v6495_v22, %v5153_v24  ;;  %v5081_v35 = vld [vmem:[#allocation7 + $0xc8] sm:$0xf0]  ;;  %v6493_v36 = vld [vmem:[#allocation7 + $0x144] sm:$0xf]  ;;  %v6475_v41 = vld [vmem:[#allocation7 + $0xb4] sm:$0xf] }
  0x3c   :  { %v5145_v37 = vld [vmem:[#allocation7 + $0x148] sm:$0xf0]  ;;  %v7228_v39 = vor.u32 %v6477_v31, %v5081_v35  ;;  %v5073_v43 = vld [vmem:[#allocation7 + $0xb8] sm:$0xf0]  ;;  %v6491_v47 = vld [vmem:[#allocation7 + $0x134] sm:$0xf] }
  0x3d   :  { %446 = vmatpush.bf16.msra.mxu0 %v7186_v42  ;;  %v7232_v40 = vor.u32 %v6493_v36, %v5145_v37  ;;  %v5137_v51 = vld [vmem:[#allocation7 + $0x138] sm:$0xf0]  ;;  %v7236_v52 = vor.u32 %v6475_v41, %v5073_v43  ;;  %v6473_v59 = vld [vmem:[#allocation7 + $0xa4] sm:$0xf]  ;;  %v5065_v61 = vld [vmem:[#allocation7 + $0xa8] sm:$0xf0] }
  0x3e   :  { %460 = vmatpush.bf16.msra.mxu1 %v7190_v48  ;;  %v7240_v55 = vor.u32 %v6491_v47, %v5137_v51  ;;  %v6489_v63 = vld [vmem:[#allocation7 + $0x124] sm:$0xf]  ;;  %v5129_v0 = vld [vmem:[#allocation7 + $0x128] sm:$0xf0]  ;;  %v7244_v1 = vor.u32 %v6473_v59, %v5065_v61  ;;  %v5057_v10 = vld [vmem:[#allocation7 + $0x98] sm:$0xf0] }
  0x3f   :  { %474 = vmatpush.bf16.msra.mxu2 %v7192_v49  ;;  %488 = vmatpush.bf16.msra.mxu3 %v7195_v53  ;;  %v7248_v2 = vor.u32 %v6489_v63, %v5129_v0  ;;  %v6487_v18 = vld [vmem:[#allocation7 + $0x114] sm:$0xf]  ;;  %v5121_v20 = vld [vmem:[#allocation7 + $0x118] sm:$0xf0]  ;;  %v6469_v31 = vld [vmem:[#allocation7 + $0x84] sm:$0xf] }
  0x40   :  { %447 = vmatmul.bf16.vlgmr.msra.gmra.mxu0 %v4972_v4  ;;  %v7256_v24 = vor.u32 %v6487_v18, %v5121_v20  ;;  %v5049_v35 = vld [vmem:[#allocation7 + $0x88] sm:$0xf0]  ;;  %v6485_v36 = vld [vmem:[#allocation7 + $0x104] sm:$0xf]  ;;  %v5175_v47 = vld [vmem:[#allocation4 + $0x4] sm:$0xf] }
  0x41   :  { %495 = vmatpush.bf16.msrb.mxu0 %v7197_v54  ;;  %461 = vmatmul.bf16.vlgmr.msra.gmra.mxu1 %v7204_v11  ;;  %v5113_v37 = vld [vmem:[#allocation7 + $0x108] sm:$0xf0]  ;;  %v7260_v41 = vor.u32 %v6469_v31, %v5049_v35  ;;  %v6505_v51 = vld [vmem:[#allocation4 + $0x24] sm:$0xf0]  ;;  %v5177_v61 = vld [vmem:[#allocation4 + $0x28] sm:$0xf0] }
  0x42   :  { %509 = vmatpush.bf16.msrb.mxu1 %v7199_v60  ;;  %475 = vmatmul.bf16.vlgmr.msra.gmra.mxu2 %v7206_v13  ;;  %v7264_v43 = vor.u32 %v6485_v36, %v5113_v37  ;;  %v6504_v59 = vld [vmem:[#allocation4 + $0x8] sm:$0xf]  ;;  %v5176_v63 = vor.u32 %v6505_v51, %v5175_v47  ;;  %v6508_v18 = vld [vmem:[#allocation4 + $0x28] sm:$0xf0]  ;;  %v5189_v31 = vld [vmem:[#allocation4 + $0x2c] sm:$0xf0] }
  0x43   :  { %551 = vmatpush.bf16.msrb.mxu2 %v7105_v3  ;;  %565 = vmatpush.bf16.msrb.mxu3 %v7107_v7  ;;  %v5180_v0 = vor.u32 %v6504_v59, %v5177_v61  ;;  %v6507_v20 = vld [vmem:[#allocation4 + $0xc] sm:$0xf]  ;;  %v5195_v35 = vld [vmem:[#allocation4 + $0x10] sm:$0xf]  ;;  %v6509_v36 = vld [vmem:[#allocation4 + $0x30] sm:$0xf0] }
  0x44   :  { %489 = vmatmul.bf16.vlgmr.msra.gmra.mxu3 %v4972_v4  ;;  %v6471_v4 = vld [vmem:[#allocation7 + $0x94] sm:$0xf]  ;;  %v5192_v47 = vor.u32 %v6507_v20, %v5189_v31  ;;  %v5196_v51 = vor.u32 %v6509_v36, %v5195_v35  ;;  %v5199_v59 = vld [vmem:[#allocation4 + $0xc] sm:$0xf]  ;;  %v6511_v61 = vld [vmem:[#allocation4 + $0x2c] sm:$0xf0] }
  0x45   :  { %496 = vmatpush.bf16.msrb.mxu0 %v7210_v15  ;;  %v7252_v22 = vor.u32 %v6471_v4, %v5057_v10  ;;  %v5187_v10 = vld [vmem:[#allocation4 + $0x8] sm:$0xf]  ;;  %v5207_v31 = vld [vmem:[#allocation4 + $0x14] sm:$0xf]  ;;  %v6512_v35 = vld [vmem:[#allocation4 + $0x34] sm:$0xf0] }
  0x46   :  { %510 = vmatpush.bf16.msrb.mxu1 %v7214_v19  ;;  %v5188_v37 = vor.u32 %v6508_v18, %v5187_v10  ;;  %v173_v18 = vld [vmem:[#allocation9] sm:$0x3] }
  0x47   :  { %552 = vmatpush.bf16.msrb.mxu2 %v7116_v16  ;;  %566 = vmatpush.bf16.msrb.mxu3 %v7118_v17  ;;  %v7393_v20 = vperm.slane %v173_v18, 0 }
  0x49   :  { %497 = vmatpush.bf16.msrb.mxu0 %v7220_v28 }
  0x4a   :  { %511 = vmatpush.bf16.msrb.mxu1 %v7224_v30 }
  0x4b   :  { %553 = vmatpush.bf16.msrb.mxu2 %v7126_v29  ;;  %567 = vmatpush.bf16.msrb.mxu3 %v7130_v33 }
  0x4d   :  { %498 = vmatpush.bf16.msrb.mxu0 %v7228_v39 }
  0x4e   :  { %512 = vmatpush.bf16.msrb.mxu1 %v7232_v40 }
  0x4f   :  { %554 = vmatpush.bf16.msrb.mxu2 %v7138_v44  ;;  %568 = vmatpush.bf16.msrb.mxu3 %v7142_v45 }
  0x51   :  { %499 = vmatpush.bf16.msrb.mxu0 %v7236_v52 }
  0x52   :  { %513 = vmatpush.bf16.msrb.mxu1 %v7240_v55 }
  0x53   :  { %555 = vmatpush.bf16.msrb.mxu2 %v7150_v56  ;;  %569 = vmatpush.bf16.msrb.mxu3 %v7154_v57 }
  0x55   :  { %500 = vmatpush.bf16.msrb.mxu0 %v7244_v1 }
  0x56   :  { %514 = vmatpush.bf16.msrb.mxu1 %v7248_v2 }
  0x57   :  { %556 = vmatpush.bf16.msrb.mxu2 %v7162_v5  ;;  %570 = vmatpush.bf16.msrb.mxu3 %v7166_v6 }
  0x59   :  { %501 = vmatpush.bf16.msrb.mxu0 %v7252_v22 }
  0x5a   :  { %515 = vmatpush.bf16.msrb.mxu1 %v7256_v24 }
  0x5b   :  { %557 = vmatpush.bf16.msrb.mxu2 %v7174_v23  ;;  %571 = vmatpush.bf16.msrb.mxu3 %v7178_v26 }
  0x5d   :  { %502 = vmatpush.bf16.msrb.mxu0 %v7260_v41 }
  0x5e   :  { %516 = vmatpush.bf16.msrb.mxu1 %v7264_v43 }
  0x5f   :  { %558 = vmatpush.bf16.msrb.mxu2 %v7186_v42  ;;  %572 = vmatpush.bf16.msrb.mxu3 %v7190_v48 }
  0x60   :  { %503 = vmatmul.bf16.vlgmr.msrb.gmra.mxu0 %v7204_v11  ;;  %v5183_v11 = vld [vmem:[#allocation4 + $0xc] sm:$0xf] }
  0x61   :  { %579 = vmatpush.bf16.msra.mxu0 %v7109_v8  ;;  %517 = vmatmul.bf16.vlgmr.msrb.gmra.mxu1 %v7206_v13  ;;  %v6506_v13 = vld [vmem:[#allocation4 + $0x2c] sm:$0xf0] }
  0x62   :  { %593 = vmatpush.bf16.msra.mxu1 %v7112_v12  ;;  %559 = vmatmul.bf16.vlgmr.msrb.gmra.mxu2 %v5176_v63  ;;  %v5184_v4 = vor.u32 %v6506_v13, %v5183_v11  ;;  %v5200_v11 = vor.u32 %v6511_v61, %v5199_v59  ;;  %v7405_v61 = vperm.slane %v173_v18, 1 }
  0x63   :  { %607 = vmatpush.bf16.msra.mxu2 %v7197_v54  ;;  %621 = vmatpush.bf16.msra.mxu3 %v7199_v60 }
  0x64   :  { %573 = vmatmul.bf16.vlgmr.msrb.gmra.mxu3 %v5180_v0 }
  0x65   :  { %580 = vmatpush.bf16.msra.mxu0 %v7121_v21 }
  0x66   :  { %594 = vmatpush.bf16.msra.mxu1 %v7123_v25 }
  0x67   :  { %608 = vmatpush.bf16.msra.mxu2 %v7210_v15  ;;  %622 = vmatpush.bf16.msra.mxu3 %v7214_v19 }
  0x69   :  { %581 = vmatpush.bf16.msra.mxu0 %v7132_v34 }
  0x6a   :  { %595 = vmatpush.bf16.msra.mxu1 %v7135_v38 }
  0x6b   :  { %609 = vmatpush.bf16.msra.mxu2 %v7220_v28  ;;  %623 = vmatpush.bf16.msra.mxu3 %v7224_v30 }
  0x6d   :  { %582 = vmatpush.bf16.msra.mxu0 %v7144_v46 }
  0x6e   :  { %596 = vmatpush.bf16.msra.mxu1 %v7147_v50 }
  0x6f   :  { %610 = vmatpush.bf16.msra.mxu2 %v7228_v39  ;;  %624 = vmatpush.bf16.msra.mxu3 %v7232_v40 }
  0x71   :  { %583 = vmatpush.bf16.msra.mxu0 %v7156_v58 }
  0x72   :  { %597 = vmatpush.bf16.msra.mxu1 %v7159_v62 }
  0x73   :  { %611 = vmatpush.bf16.msra.mxu2 %v7236_v52  ;;  %625 = vmatpush.bf16.msra.mxu3 %v7240_v55 }
  0x75   :  { %584 = vmatpush.bf16.msra.mxu0 %v7168_v9 }
  0x76   :  { %598 = vmatpush.bf16.msra.mxu1 %v7171_v14 }
  0x77   :  { %612 = vmatpush.bf16.msra.mxu2 %v7244_v1  ;;  %626 = vmatpush.bf16.msra.mxu3 %v7248_v2 }
  0x79   :  { %585 = vmatpush.bf16.msra.mxu0 %v7180_v27 }
  0x7a   :  { %599 = vmatpush.bf16.msra.mxu1 %v7183_v32 }
  0x7b   :  { %613 = vmatpush.bf16.msra.mxu2 %v7252_v22  ;;  %627 = vmatpush.bf16.msra.mxu3 %v7256_v24 }
  0x7d   :  { %586 = vmatpush.bf16.msra.mxu0 %v7192_v49 }
  0x7e   :  { %600 = vmatpush.bf16.msra.mxu1 %v7195_v53 }
  0x7f   :  { %614 = vmatpush.bf16.msra.mxu2 %v7260_v41  ;;  %628 = vmatpush.bf16.msra.mxu3 %v7264_v43 }
  0x80   :  { %587 = vmatmul.bf16.vlgmr.msra.gmra.mxu0 %v5184_v4 }
  0x81   :  { %663 = vmatpush.bf16.msrb.mxu0 %v7105_v3  ;;  %601 = vmatmul.bf16.vlgmr.msra.gmra.mxu1 %v5176_v63  ;;  %v6510_v63 = vld [vmem:[#allocation4 + $0x10] sm:$0xf] }
  0x82   :  { %677 = vmatpush.bf16.msrb.mxu1 %v7107_v7  ;;  %615 = vmatmul.bf16.vlgmr.msra.gmra.mxu2 %v5180_v0  ;;  %v5201_v0 = vld [vmem:[#allocation4 + $0x30] sm:$0xf0] }
  0x83   :  { %691 = vmatpush.bf16.msrb.mxu2 %v7109_v8  ;;  %705 = vmatpush.bf16.msrb.mxu3 %v7112_v12  ;;  %v5204_v13 = vor.u32 %v6510_v63, %v5201_v0 }
  0x84   :  { %629 = vmatmul.bf16.vlgmr.msra.gmra.mxu3 %v5184_v4 }
  0x85   :  { %664 = vmatpush.bf16.msrb.mxu0 %v7116_v16 }
  0x86   :  { %678 = vmatpush.bf16.msrb.mxu1 %v7118_v17 }
  0x87   :  { %692 = vmatpush.bf16.msrb.mxu2 %v7121_v21  ;;  %706 = vmatpush.bf16.msrb.mxu3 %v7123_v25 }
  0x89   :  { %665 = vmatpush.bf16.msrb.mxu0 %v7126_v29 }
  0x8a   :  { %679 = vmatpush.bf16.msrb.mxu1 %v7130_v33 }
  0x8b   :  { %693 = vmatpush.bf16.msrb.mxu2 %v7132_v34  ;;  %707 = vmatpush.bf16.msrb.mxu3 %v7135_v38 }
  0x8d   :  { %666 = vmatpush.bf16.msrb.mxu0 %v7138_v44 }
  0x8e   :  { %680 = vmatpush.bf16.msrb.mxu1 %v7142_v45 }
  0x8f   :  { %694 = vmatpush.bf16.msrb.mxu2 %v7144_v46  ;;  %708 = vmatpush.bf16.msrb.mxu3 %v7147_v50 }
  0x91   :  { %667 = vmatpush.bf16.msrb.mxu0 %v7150_v56 }
  0x92   :  { %681 = vmatpush.bf16.msrb.mxu1 %v7154_v57 }
  0x93   :  { %695 = vmatpush.bf16.msrb.mxu2 %v7156_v58  ;;  %709 = vmatpush.bf16.msrb.mxu3 %v7159_v62 }
  0x95   :  { %668 = vmatpush.bf16.msrb.mxu0 %v7162_v5 }
  0x96   :  { %682 = vmatpush.bf16.msrb.mxu1 %v7166_v6 }
  0x97   :  { %696 = vmatpush.bf16.msrb.mxu2 %v7168_v9  ;;  %710 = vmatpush.bf16.msrb.mxu3 %v7171_v14 }
  0x99   :  { %669 = vmatpush.bf16.msrb.mxu0 %v7174_v23 }
  0x9a   :  { %683 = vmatpush.bf16.msrb.mxu1 %v7178_v26 }
  0x9b   :  { %697 = vmatpush.bf16.msrb.mxu2 %v7180_v27  ;;  %711 = vmatpush.bf16.msrb.mxu3 %v7183_v32 }
  0x9d   :  { %670 = vmatpush.bf16.msrb.mxu0 %v7186_v42 }
  0x9e   :  { %684 = vmatpush.bf16.msrb.mxu1 %v7190_v48 }
  0x9f   :  { %698 = vmatpush.bf16.msrb.mxu2 %v7192_v49  ;;  %712 = vmatpush.bf16.msrb.mxu3 %v7195_v53 }
  0xa0   :  { %671 = vmatmul.bf16.vlgmr.msrb.gmra.mxu0 %v5188_v37 }
  0xa1   :  { %719 = vmatpush.bf16.msra.mxu0 %v7197_v54  ;;  %685 = vmatmul.bf16.vlgmr.msrb.gmra.mxu1 %v5192_v47 }
  0xa2   :  { %733 = vmatpush.bf16.msra.mxu1 %v7199_v60  ;;  %699 = vmatmul.bf16.vlgmr.msrb.gmra.mxu2 %v5196_v51 }
  0xa3   :  { %775 = vmatpush.bf16.msra.mxu2 %v7105_v3  ;;  %789 = vmatpush.bf16.msra.mxu3 %v7107_v7 }
  0xa4   :  { %713 = vmatmul.bf16.vlgmr.msrb.gmra.mxu3 %v5188_v37 }
  0xa5   :  { %720 = vmatpush.bf16.msra.mxu0 %v7210_v15 }
  0xa6   :  { %734 = vmatpush.bf16.msra.mxu1 %v7214_v19 }
  0xa7   :  { %776 = vmatpush.bf16.msra.mxu2 %v7116_v16  ;;  %790 = vmatpush.bf16.msra.mxu3 %v7118_v17 }
  0xa9   :  { %721 = vmatpush.bf16.msra.mxu0 %v7220_v28 }
  0xaa   :  { %735 = vmatpush.bf16.msra.mxu1 %v7224_v30 }
  0xab   :  { %777 = vmatpush.bf16.msra.mxu2 %v7126_v29  ;;  %791 = vmatpush.bf16.msra.mxu3 %v7130_v33 }
  0xad   :  { %722 = vmatpush.bf16.msra.mxu0 %v7228_v39 }
  0xae   :  { %736 = vmatpush.bf16.msra.mxu1 %v7232_v40 }
  0xaf   :  { %778 = vmatpush.bf16.msra.mxu2 %v7138_v44  ;;  %792 = vmatpush.bf16.msra.mxu3 %v7142_v45 }
  0xb1   :  { %723 = vmatpush.bf16.msra.mxu0 %v7236_v52 }
  0xb2   :  { %737 = vmatpush.bf16.msra.mxu1 %v7240_v55 }
  0xb3   :  { %779 = vmatpush.bf16.msra.mxu2 %v7150_v56  ;;  %793 = vmatpush.bf16.msra.mxu3 %v7154_v57 }
  0xb5   :  { %724 = vmatpush.bf16.msra.mxu0 %v7244_v1 }
  0xb6   :  { %738 = vmatpush.bf16.msra.mxu1 %v7248_v2 }
  0xb7   :  { %780 = vmatpush.bf16.msra.mxu2 %v7162_v5  ;;  %794 = vmatpush.bf16.msra.mxu3 %v7166_v6 }
  0xb9   :  { %725 = vmatpush.bf16.msra.mxu0 %v7252_v22 }
  0xba   :  { %739 = vmatpush.bf16.msra.mxu1 %v7256_v24 }
  0xbb   :  { %781 = vmatpush.bf16.msra.mxu2 %v7174_v23  ;;  %795 = vmatpush.bf16.msra.mxu3 %v7178_v26 }
  0xbd   :  { %726 = vmatpush.bf16.msra.mxu0 %v7260_v41  ;;  %v448_v4 = vpop.f32.mrf.mxu0 }
  0xbe   :  { %740 = vmatpush.bf16.msra.mxu1 %v7264_v43  ;;  %v462_v10 = vpop.f32.mrf.mxu1  ;;  %v449_v37 = vadd.f32 %v448_v4, %v7393_v20 }
  0xbf   :  { %782 = vmatpush.bf16.msra.mxu2 %v7186_v42  ;;  %796 = vmatpush.bf16.msra.mxu3 %v7190_v48 }
  0xc0   :  { %727 = vmatmul.bf16.vlgmr.msra.gmra.mxu0 %v5192_v47  ;;  %v5208_v47 = vor.u32 %v6512_v35, %v5207_v31  ;;  %v463_v63 = vadd.f32 %v462_v10, %v449_v37 }
  0xc1   :  { %803 = vmatpush.bf16.msrb.mxu0 %v7109_v8  ;;  %741 = vmatmul.bf16.vlgmr.msra.gmra.mxu1 %v5196_v51 }
  0xc2   :  { %817 = vmatpush.bf16.msrb.mxu1 %v7112_v12  ;;  %783 = vmatmul.bf16.vlgmr.msra.gmra.mxu2 %v5200_v11 }
  0xc3   :  { %831 = vmatpush.bf16.msrb.mxu2 %v7197_v54  ;;  %845 = vmatpush.bf16.msrb.mxu3 %v7199_v60 }
  0xc4   :  { %797 = vmatmul.bf16.vlgmr.msra.gmra.mxu3 %v5204_v13 }
  0xc5   :  { %804 = vmatpush.bf16.msrb.mxu0 %v7121_v21  ;;  %v450_v36 = vpop.f32.mrf.mxu0  ;;  %v476_v0 = vpop.f32.mrf.mxu2 }
  0xc6   :  { %818 = vmatpush.bf16.msrb.mxu1 %v7123_v25  ;;  %v464_v51 = vpop.f32.mrf.mxu1  ;;  %v477_v18 = vadd.f32 %v476_v0, %v463_v63  ;;  %v451_v10 = vadd.f32 %v450_v36, %v7393_v20 }
  0xc7   :  { %832 = vmatpush.bf16.msrb.mxu2 %v7210_v15  ;;  %846 = vmatpush.bf16.msrb.mxu3 %v7214_v19  ;;  %v490_v59 = vpop.f32.mrf.mxu3 }
  0xc8   :  { %v491_v4 = vadd.f32 %v490_v59, %v7405_v61  ;;  %v523_v37 = vmax.f32 %v477_v18, 0.0  ;;  %v465_v59 = vadd.f32 %v464_v51, %v451_v10 }
  0xc9   :  { %805 = vmatpush.bf16.msrb.mxu0 %v7132_v34 }
  0xca   :  { %819 = vmatpush.bf16.msrb.mxu1 %v7135_v38 }
  0xcb   :  { %833 = vmatpush.bf16.msrb.mxu2 %v7220_v28  ;;  %847 = vmatpush.bf16.msrb.mxu3 %v7224_v30 }
  0xcd   :  { %806 = vmatpush.bf16.msrb.mxu0 %v7144_v46  ;;  %v478_v36 = vpop.f32.mrf.mxu2 }
  0xce   :  { %820 = vmatpush.bf16.msrb.mxu1 %v7147_v50  ;;  %v479_v18 = vadd.f32 %v478_v36, %v465_v59  ;;  %v6513_v36 = vld [vmem:[#allocation4 + $0x14] sm:$0xf] }
  0xcf   :  { %834 = vmatpush.bf16.msrb.mxu2 %v7228_v39  ;;  %848 = vmatpush.bf16.msrb.mxu3 %v7232_v40 }
  0xd1   :  { %807 = vmatpush.bf16.msrb.mxu0 %v7156_v58 }
  0xd2   :  { %821 = vmatpush.bf16.msrb.mxu1 %v7159_v62 }
  0xd3   :  { %835 = vmatpush.bf16.msrb.mxu2 %v7236_v52  ;;  %849 = vmatpush.bf16.msrb.mxu3 %v7240_v55 }
  0xd5   :  { %808 = vmatpush.bf16.msrb.mxu0 %v7168_v9 }
  0xd6   :  { %822 = vmatpush.bf16.msrb.mxu1 %v7171_v14 }
  0xd7   :  { %836 = vmatpush.bf16.msrb.mxu2 %v7244_v1  ;;  %850 = vmatpush.bf16.msrb.mxu3 %v7248_v2 }
  0xd9   :  { %809 = vmatpush.bf16.msrb.mxu0 %v7180_v27 }
  0xda   :  { %823 = vmatpush.bf16.msrb.mxu1 %v7183_v32 }
  0xdb   :  { %837 = vmatpush.bf16.msrb.mxu2 %v7252_v22  ;;  %851 = vmatpush.bf16.msrb.mxu3 %v7256_v24 }
  0xdd   :  { %810 = vmatpush.bf16.msrb.mxu0 %v7192_v49  ;;  %v504_v31 = vpop.f32.mrf.mxu0 }
  0xde   :  { %824 = vmatpush.bf16.msrb.mxu1 %v7195_v53  ;;  %v518_v35 = vpop.f32.mrf.mxu1 }
  0xdf   :  { %838 = vmatpush.bf16.msrb.mxu2 %v7260_v41  ;;  %852 = vmatpush.bf16.msrb.mxu3 %v7264_v43 }
  0xe0   :  { %811 = vmatmul.bf16.vlgmr.msrb.gmra.mxu0 %v5208_v47 }
  0xe1   :  { %887 = vmatpush.bf16.msra.mxu0 %v7105_v3  ;;  %825 = vmatmul.bf16.vlgmr.msrb.gmra.mxu1 %v5200_v11  ;;  %v492_v11 = vpop.f32.mrf.mxu3 }
  0xe2   :  { %901 = vmatpush.bf16.msra.mxu1 %v7107_v7  ;;  %839 = vmatmul.bf16.vlgmr.msrb.gmra.mxu2 %v5204_v13  ;;  %v505_v13 = vadd.f32 %v504_v31, %v491_v4  ;;  %v493_v0 = vadd.f32 %v492_v11, %v7405_v61 }
  0xe3   :  { %915 = vmatpush.bf16.msra.mxu2 %v7109_v8  ;;  %929 = vmatpush.bf16.msra.mxu3 %v7112_v12 }
  0xe4   :  { %853 = vmatmul.bf16.vlgmr.msrb.gmra.mxu3 %v5208_v47  ;;  %v519_v47 = vadd.f32 %v518_v35, %v505_v13  ;;  %v525_v35 = vmax.f32 %v479_v18, 0.0  ;;  %v6515_v18 = vld [vmem:[#allocation4 + $0x38] sm:$0xf0] }
  0xe5   :  { %888 = vmatpush.bf16.msra.mxu0 %v7116_v16  ;;  %v506_v31 = vpop.f32.mrf.mxu0 }
  0xe6   :  { %902 = vmatpush.bf16.msra.mxu1 %v7118_v17  ;;  %v524_v63 = vmax.f32 %v519_v47, 0.0  ;;  %v507_v13 = vadd.f32 %v506_v31, %v493_v0  ;;  %v520_v51 = vpop.f32.mrf.mxu1  ;;  %v560_v47 = vpop.f32.mrf.mxu2  ;;  %v6514_v0 = vld [vmem:[#allocation4 + $0x30] sm:$0xf0]  ;;  %v5219_v31 = vld [vmem:[#allocation4 + $0x18] sm:$0xf] }
  0xe7   :  { %916 = vmatpush.bf16.msra.mxu2 %v7121_v21  ;;  %930 = vmatpush.bf16.msra.mxu3 %v7123_v25 }
  0xe8   :  { %v527_v4 = vpack.c.bf16 %v524_v63, %v523_v37  ;;  %v521_v10 = vadd.f32 %v520_v51, %v507_v13  ;;  %v5211_v63 = vld [vmem:[#allocation4 + $0x10] sm:$0xf] }
  0xe9   :  { %889 = vmatpush.bf16.msra.mxu0 %v7126_v29  ;;  %v574_v59 = vpop.f32.mrf.mxu3  ;;  %v5212_v13 = vor.u32 %v6514_v0, %v5211_v63 }
  0xea   :  { %903 = vmatpush.bf16.msra.mxu1 %v7130_v33  ;;  %529 = vst [vmem:[#allocation2] sm:$0xff] %v527_v4  ;;  %v526_v11 = vmax.f32 %v521_v10, 0.0  ;;  %v5213_v4 = vld [vmem:[#allocation4 + $0x34] sm:$0xf0]  ;;  %v7442_v10 = vor.u32 %v6515_v18, %v5219_v31 }
  0xeb   :  { %917 = vmatpush.bf16.msra.mxu2 %v7132_v34  ;;  %931 = vmatpush.bf16.msra.mxu3 %v7135_v38  ;;  %v7440_v51 = vor.u32 %v6513_v36, %v5213_v4 }
  0xec   :  { %v528_v37 = vpack.c.bf16 %v526_v11, %v525_v35 }
  0xed   :  { %890 = vmatpush.bf16.msra.mxu0 %v7138_v44 }
  0xee   :  { %904 = vmatpush.bf16.msra.mxu1 %v7142_v45  ;;  %530 = vst [vmem:[#allocation2 + $0x38] sm:$0xff] %v528_v37  ;;  %v562_v35 = vpop.f32.mrf.mxu2  ;;  %v561_v37 = vadd.f32 %v560_v47, %v7393_v20 }
  0xef   :  { %918 = vmatpush.bf16.msra.mxu2 %v7144_v46  ;;  %932 = vmatpush.bf16.msra.mxu3 %v7147_v50  ;;  %v563_v18 = vadd.f32 %v562_v35, %v7393_v20 }
  0xf0   :  { %v575_v63 = vadd.f32 %v574_v59, %v561_v37 }
  0xf1   :  { %891 = vmatpush.bf16.msra.mxu0 %v7150_v56  ;;  %v576_v11 = vpop.f32.mrf.mxu3 }
  0xf2   :  { %905 = vmatpush.bf16.msra.mxu1 %v7154_v57 }
  0xf3   :  { %919 = vmatpush.bf16.msra.mxu2 %v7156_v58  ;;  %933 = vmatpush.bf16.msra.mxu3 %v7159_v62 }
  0xf5   :  { %892 = vmatpush.bf16.msra.mxu0 %v7162_v5 }
  0xf6   :  { %906 = vmatpush.bf16.msra.mxu1 %v7166_v6 }
  0xf7   :  { %920 = vmatpush.bf16.msra.mxu2 %v7168_v9  ;;  %934 = vmatpush.bf16.msra.mxu3 %v7171_v14 }
  0xf9   :  { %893 = vmatpush.bf16.msra.mxu0 %v7174_v23 }
  0xfa   :  { %907 = vmatpush.bf16.msra.mxu1 %v7178_v26 }
  0xfb   :  { %921 = vmatpush.bf16.msra.mxu2 %v7180_v27  ;;  %935 = vmatpush.bf16.msra.mxu3 %v7183_v32 }
  0xfd   :  { %894 = vmatpush.bf16.msra.mxu0 %v7186_v42  ;;  %v588_v36 = vpop.f32.mrf.mxu0 }
  0xfe   :  { %908 = vmatpush.bf16.msra.mxu1 %v7190_v48  ;;  %v602_v0 = vpop.f32.mrf.mxu1  ;;  %v589_v47 = vadd.f32 %v588_v36, %v575_v63  ;;  %v577_v36 = vadd.f32 %v576_v11, %v563_v18  ;;  %v6517_v18 = vld [vmem:[#allocation4 + $0x34] sm:$0xf0] }
  0xff   :  { %922 = vmatpush.bf16.msra.mxu2 %v7192_v49  ;;  %936 = vmatpush.bf16.msra.mxu3 %v7195_v53  ;;  %v603_v4 = vadd.f32 %v602_v0, %v7405_v61 }
 0x100   :  { %895 = vmatmul.bf16.vlgmr.msra.gmra.mxu0 %v5212_v13  ;;  %v635_v37 = vmax.f32 %v589_v47, 0.0 }
 0x101   :  { %943 = vmatpush.bf16.msrb.mxu0 %v7197_v54  ;;  %909 = vmatmul.bf16.vlgmr.msra.gmra.mxu1 %v7440_v51 }
 0x102   :  { %957 = vmatpush.bf16.msrb.mxu1 %v7199_v60  ;;  %923 = vmatmul.bf16.vlgmr.msra.gmra.mxu2 %v7442_v10 }
 0x103   :  { %999 = vmatpush.bf16.msrb.mxu2 %v7105_v3  ;;  %1013 = vmatpush.bf16.msrb.mxu3 %v7107_v7 }
 0x104   :  { %937 = vmatmul.bf16.vlgmr.msra.gmra.mxu3 %v5212_v13 }
 0x105   :  { %944 = vmatpush.bf16.msrb.mxu0 %v7210_v15  ;;  %v616_v59 = vpop.f32.mrf.mxu2 }
 0x106   :  { %958 = vmatpush.bf16.msrb.mxu1 %v7214_v19  ;;  %v617_v13 = vadd.f32 %v616_v59, %v603_v4  ;;  %v604_v63 = vpop.f32.mrf.mxu1 }
 0x107   :  { %1000 = vmatpush.bf16.msrb.mxu2 %v7116_v16  ;;  %1014 = vmatpush.bf16.msrb.mxu3 %v7118_v17  ;;  %v630_v31 = vpop.f32.mrf.mxu3 }
 0x108   :  { %v631_v0 = vadd.f32 %v630_v31, %v617_v13 }
 0x109   :  { %945 = vmatpush.bf16.msrb.mxu0 %v7220_v28 }
 0x10a   :  { %959 = vmatpush.bf16.msrb.mxu1 %v7224_v30 }
 0x10b   :  { %1001 = vmatpush.bf16.msrb.mxu2 %v7126_v29  ;;  %1015 = vmatpush.bf16.msrb.mxu3 %v7130_v33  ;;  %v590_v33 = vpop.f32.mrf.mxu0 }
 0x10c   :  { %v591_v59 = vadd.f32 %v590_v33, %v577_v36 }
 0x10d   :  { %946 = vmatpush.bf16.msrb.mxu0 %v7228_v39  ;;  %v618_v4 = vpop.f32.mrf.mxu2 }
 0x10e   :  { %960 = vmatpush.bf16.msrb.mxu1 %v7232_v40  ;;  %v637_v13 = vmax.f32 %v591_v59, 0.0 }
 0x10f   :  { %1002 = vmatpush.bf16.msrb.mxu2 %v7138_v44  ;;  %1016 = vmatpush.bf16.msrb.mxu3 %v7142_v45  ;;  %v636_v44 = vmax.f32 %v631_v0, 0.0  ;;  %v605_v45 = vadd.f32 %v604_v63, %v7405_v61  ;;  %v632_v47 = vpop.f32.mrf.mxu3  ;;  %v6516_v0 = vld [vmem:[#allocation4 + $0x18] sm:$0xf]  ;;  %v5225_v63 = vld [vmem:[#allocation4 + $0x38] sm:$0xf0] }
 0x110   :  { %v5228_v36 = vor.u32 %v6516_v0, %v5225_v63  ;;  %v9188_v63 = vld [vmem:[#allocation21_spill] sm:$0xff] }
 0x111   :  { %947 = vmatpush.bf16.msrb.mxu0 %v7236_v52  ;;  %v639_v35 = vpack.c.bf16 %v636_v44, %v635_v37  ;;  %v619_v31 = vadd.f32 %v618_v4, %v605_v45  ;;  %v5223_v44 = vld [vmem:[#allocation4 + $0x14] sm:$0xf]  ;;  %v6518_v4 = vld [vmem:[#allocation4 + $0x3c] sm:$0xf0] }
 0x112   :  { %961 = vmatpush.bf16.msrb.mxu1 %v7240_v55  ;;  %v5224_v45 = vor.u32 %v6517_v18, %v5223_v44 }
 0x113   :  { %1003 = vmatpush.bf16.msrb.mxu2 %v7150_v56  ;;  %1017 = vmatpush.bf16.msrb.mxu3 %v7154_v57  ;;  %641 = vst [vmem:[#allocation2 + $0x8] sm:$0xff] %v639_v35  ;;  %v633_v11 = vadd.f32 %v632_v47, %v619_v31  ;;  %v5231_v35 = vld [vmem:[#allocation4 + $0x1c] sm:$0xf] }
 0x114   :  { %v5232_v31 = vor.u32 %v6518_v4, %v5231_v35 }
 0x115   :  { %948 = vmatpush.bf16.msrb.mxu0 %v7244_v1  ;;  %v638_v37 = vmax.f32 %v633_v11, 0.0 }
 0x116   :  { %962 = vmatpush.bf16.msrb.mxu1 %v7248_v2 }
 0x117   :  { %1004 = vmatpush.bf16.msrb.mxu2 %v7162_v5  ;;  %1018 = vmatpush.bf16.msrb.mxu3 %v7166_v6  ;;  %v640_v33 = vpack.c.bf16 %v638_v37, %v637_v13 }
 0x119   :  { %949 = vmatpush.bf16.msrb.mxu0 %v7252_v22  ;;  %642 = vst [vmem:[#allocation2 + $0x40] sm:$0xff] %v640_v33 }
 0x11a   :  { %963 = vmatpush.bf16.msrb.mxu1 %v7256_v24 }
 0x11b   :  { %1005 = vmatpush.bf16.msrb.mxu2 %v7174_v23  ;;  %1019 = vmatpush.bf16.msrb.mxu3 %v7178_v26 }
 0x11d   :  { %950 = vmatpush.bf16.msrb.mxu0 %v7260_v41 }
 0x11e   :  { %964 = vmatpush.bf16.msrb.mxu1 %v7264_v43 }
 0x11f   :  { %1006 = vmatpush.bf16.msrb.mxu2 %v7186_v42  ;;  %1020 = vmatpush.bf16.msrb.mxu3 %v7190_v48 }
 0x120   :  { %951 = vmatmul.bf16.vlgmr.msrb.gmra.mxu0 %v7440_v51  ;;  %v672_v51 = vpop.f32.mrf.mxu0 }
 0x121   :  { %1027 = vmatpush.bf16.msra.mxu0 %v7109_v8  ;;  %965 = vmatmul.bf16.vlgmr.msrb.gmra.mxu1 %v7442_v10  ;;  %v686_v10 = vpop.f32.mrf.mxu1  ;;  %v673_v59 = vadd.f32 %v672_v51, %v7393_v20  ;;  %v9190_v51 = vld [vmem:[#allocation23_spill] sm:$0xff] }
 0x122   :  { %1041 = vmatpush.bf16.msra.mxu1 %v7112_v12  ;;  %1007 = vmatmul.bf16.vlgmr.msrb.gmra.mxu2 %v5224_v45 }
 0x123   :  { %1055 = vmatpush.bf16.msra.mxu2 %v7197_v54  ;;  %1069 = vmatpush.bf16.msra.mxu3 %v7199_v60  ;;  %v687_v18 = vadd.f32 %v686_v10, %v673_v59 }
 0x124   :  { %1021 = vmatmul.bf16.vlgmr.msrb.gmra.mxu3 %v5228_v36 }
 0x125   :  { %1028 = vmatpush.bf16.msra.mxu0 %v7121_v21  ;;  %v700_v13 = vpop.f32.mrf.mxu2 }
 0x126   :  { %1042 = vmatpush.bf16.msra.mxu1 %v7123_v25 }
 0x127   :  { %1056 = vmatpush.bf16.msra.mxu2 %v7210_v15  ;;  %1070 = vmatpush.bf16.msra.mxu3 %v7214_v19  ;;  %v714_v44 = vpop.f32.mrf.mxu3 }
 0x128   :  { %v674_v47 = vpop.f32.mrf.mxu0  ;;  %v715_v37 = vadd.f32 %v714_v44, %v7405_v61 }
 0x129   :  { %1029 = vmatpush.bf16.msra.mxu0 %v7132_v34  ;;  %v688_v11 = vpop.f32.mrf.mxu1 }
 0x12a   :  { %1043 = vmatpush.bf16.msra.mxu1 %v7135_v38 }
 0x12b   :  { %1057 = vmatpush.bf16.msra.mxu2 %v7220_v28  ;;  %1071 = vmatpush.bf16.msra.mxu3 %v7224_v30 }
 0x12d   :  { %1030 = vmatpush.bf16.msra.mxu0 %v7144_v46 }
 0x12e   :  { %1044 = vmatpush.bf16.msra.mxu1 %v7147_v50 }
 0x12f   :  { %1058 = vmatpush.bf16.msra.mxu2 %v7228_v39  ;;  %1072 = vmatpush.bf16.msra.mxu3 %v7232_v40 }
 0x131   :  { %1031 = vmatpush.bf16.msra.mxu0 %v7156_v58 }
 0x132   :  { %1045 = vmatpush.bf16.msra.mxu1 %v7159_v62 }
 0x133   :  { %1059 = vmatpush.bf16.msra.mxu2 %v7236_v52  ;;  %1073 = vmatpush.bf16.msra.mxu3 %v7240_v55 }
 0x135   :  { %1032 = vmatpush.bf16.msra.mxu0 %v7168_v9 }
 0x136   :  { %1046 = vmatpush.bf16.msra.mxu1 %v7171_v14 }
 0x137   :  { %1060 = vmatpush.bf16.msra.mxu2 %v7244_v1  ;;  %1074 = vmatpush.bf16.msra.mxu3 %v7248_v2 }
 0x139   :  { %1033 = vmatpush.bf16.msra.mxu0 %v7180_v27 }
 0x13a   :  { %1047 = vmatpush.bf16.msra.mxu1 %v7183_v32 }
 0x13b   :  { %1061 = vmatpush.bf16.msra.mxu2 %v7252_v22  ;;  %1075 = vmatpush.bf16.msra.mxu3 %v7256_v24 }
 0x13d   :  { %1034 = vmatpush.bf16.msra.mxu0 %v7192_v49 }
 0x13e   :  { %1048 = vmatpush.bf16.msra.mxu1 %v7195_v53  ;;  %v742_v0 = vpop.f32.mrf.mxu1 }
 0x13f   :  { %1062 = vmatpush.bf16.msra.mxu2 %v7260_v41  ;;  %1076 = vmatpush.bf16.msra.mxu3 %v7264_v43 }
 0x140   :  { %1035 = vmatmul.bf16.vlgmr.msra.gmra.mxu0 %v5232_v31 }
 0x141   :  { %1111 = vmatpush.bf16.msrb.mxu0 %v7105_v3  ;;  %1049 = vmatmul.bf16.vlgmr.msra.gmra.mxu1 %v5224_v45  ;;  %v701_v3 = vadd.f32 %v700_v13, %v687_v18  ;;  %v9189_v45 = vld [vmem:[#allocation22_spill] sm:$0xff]  ;;  %v6519_v18 = vld [vmem:[#allocation4 + $0x1c] sm:$0xf] }
 0x142   :  { %1125 = vmatpush.bf16.msrb.mxu1 %v7107_v7  ;;  %1063 = vmatmul.bf16.vlgmr.msra.gmra.mxu2 %v5228_v36  ;;  %v728_v7 = vpop.f32.mrf.mxu0  ;;  %v5237_v13 = vld [vmem:[#allocation4 + $0x3c] sm:$0xf0] }
 0x143   :  { %1139 = vmatpush.bf16.msrb.mxu2 %v7109_v8  ;;  %1153 = vmatpush.bf16.msrb.mxu3 %v7112_v12  ;;  %v675_v8 = vadd.f32 %v674_v47, %v7393_v20  ;;  %v729_v12 = vadd.f32 %v728_v7, %v715_v37  ;;  %v747_v33 = vmax.f32 %v701_v3, 0.0  ;;  %v5343_v37 = vld [vmem:[#allocation10 + $0x90] sm:$0xf]  ;;  %v6541_v3 = vld [vmem:[#allocation10 + $0x98] sm:$0xf0] }
 0x144   :  { %1077 = vmatmul.bf16.vlgmr.msra.gmra.mxu3 %v5232_v31  ;;  %v6565_v7 = vld [vmem:[#allocation10 + $0x158] sm:$0xf0] }
 0x145   :  { %1112 = vmatpush.bf16.msrb.mxu0 %v7116_v16  ;;  %v716_v16 = vpop.f32.mrf.mxu3 }
 0x146   :  { %1126 = vmatpush.bf16.msrb.mxu1 %v7118_v17  ;;  %v743_v17 = vadd.f32 %v742_v0, %v729_v12  ;;  %v717_v36 = vadd.f32 %v716_v16, %v7405_v61  ;;  %v744_v4 = vpop.f32.mrf.mxu1  ;;  %v6538_v12 = vld [vmem:[#allocation10 + $0x80] sm:$0xf0]  ;;  %v5427_v0 = vld [vmem:[#allocation10 + $0x138] sm:$0xf] }
 0x147   :  { %1140 = vmatpush.bf16.msrb.mxu2 %v7121_v21  ;;  %1154 = vmatpush.bf16.msrb.mxu3 %v7123_v25  ;;  %v689_v21 = vadd.f32 %v688_v11, %v675_v8  ;;  %v5235_v11 = vld [vmem:[#allocation4 + $0x18] sm:$0xf]  ;;  %v7560_v8 = vor.u32 %v6519_v18, %v5237_v13 }
 0x148   :  { %v748_v25 = vmax.f32 %v743_v17, 0.0  ;;  %v5319_v17 = vld [vmem:[#allocation10 + $0x60] sm:$0xf] }
 0x149   :  { %1113 = vmatpush.bf16.msrb.mxu0 %v7126_v29  ;;  %v702_v29 = vpop.f32.mrf.mxu2 }
 0x14a   :  { %1127 = vmatpush.bf16.msrb.mxu1 %v9188_v63  ;;  %v751_v10 = vpack.c.bf16 %v748_v25, %v747_v33  ;;  %v703_v35 = vadd.f32 %v702_v29, %v689_v21  ;;  %v6562_v63 = vld [vmem:[#allocation10 + $0x140] sm:$0xf0]  ;;  %v6535_v21 = vld [vmem:[#allocation10 + $0x68] sm:$0xf0] }
 0x14b   :  { %1141 = vmatpush.bf16.msrb.mxu2 %v7132_v34  ;;  %1155 = vmatpush.bf16.msrb.mxu3 %v7135_v38  ;;  %v730_v34 = vpop.f32.mrf.mxu0  ;;  %v7578_v33 = vor.u32 %v6562_v63, %v5427_v0 }
 0x14c   :  { %753 = vst [vmem:[#allocation2 + $0x10] sm:$0xff] %v751_v10  ;;  %v731_v38 = vadd.f32 %v730_v34, %v717_v36  ;;  %v749_v59 = vmax.f32 %v703_v35, 0.0  ;;  %v5307_v10 = vld [vmem:[#allocation10 + $0x48] sm:$0xf]  ;;  %v6532_v34 = vld [vmem:[#allocation10 + $0x50] sm:$0xf0] }
 0x14d   :  { %1114 = vmatpush.bf16.msrb.mxu0 %v9189_v45  ;;  %9196 = vst [vmem:[#allocation26_spill] sm:$0xff] %v7578_v33  ;;  %v5415_v45 = vld [vmem:[#allocation10 + $0x120] sm:$0xf] }
 0x14e   :  { %1128 = vmatpush.bf16.msrb.mxu1 %v9190_v51  ;;  %v745_v47 = vadd.f32 %v744_v4, %v731_v38  ;;  %v5403_v38 = vld [vmem:[#allocation10 + $0x108] sm:$0xf]  ;;  %v6556_v4 = vld [vmem:[#allocation10 + $0x110] sm:$0xf0] }
 0x14f   :  { %1142 = vmatpush.bf16.msrb.mxu2 %v7144_v46  ;;  %1156 = vmatpush.bf16.msrb.mxu3 %v7147_v50 }
 0x150   :  { %v750_v46 = vmax.f32 %v745_v47, 0.0  ;;  %v7595_v47 = vor.u32 %v6556_v4, %v5403_v38  ;;  %v6669_v4 = vld [vmem:[#allocation2 + $0x34] sm:$0xf0] }
 0x151   :  { %1115 = vmatpush.bf16.msrb.mxu0 %v7150_v56  ;;  %v5355_v56 = vld [vmem:[#allocation10 + $0xa8] sm:$0xf]  ;;  %v784_v31 = vpop.f32.mrf.mxu2 }
 0x152   :  { %1129 = vmatpush.bf16.msrb.mxu1 %v7154_v57  ;;  %v752_v50 = vpack.c.bf16 %v750_v46, %v749_v59  ;;  %v6544_v57 = vld [vmem:[#allocation10 + $0xb0] sm:$0xf0]  ;;  %9200 = vst [vmem:[#allocation30_spill] sm:$0xff] %v7595_v47 }
 0x153   :  { %1143 = vmatpush.bf16.msrb.mxu2 %v7156_v58  ;;  %1157 = vmatpush.bf16.msrb.mxu3 %v7159_v62  ;;  %v5451_v58 = vld [vmem:[#allocation10 + $0x168] sm:$0xf]  ;;  %v798_v62 = vpop.f32.mrf.mxu3  ;;  %v7549_v44 = vor.u32 %v6544_v57, %v5355_v56  ;;  %v6529_v56 = vld [vmem:[#allocation10 + $0x38] sm:$0xf0] }
 0x154   :  { %754 = vst [vmem:[#allocation2 + $0x48] sm:$0xff] %v752_v50  ;;  %v5295_v50 = vld [vmem:[#allocation10 + $0x30] sm:$0xf] }
 0x155   :  { %1116 = vmatpush.bf16.msrb.mxu0 %v7162_v5  ;;  %v6568_v5 = vld [vmem:[#allocation10 + $0x170] sm:$0xf0]  ;;  %9191 = vst [vmem:[#allocation21_spill] sm:$0xff] %v7549_v44 }
 0x156   :  { %1130 = vmatpush.bf16.msrb.mxu1 %v7166_v6  ;;  %v6520_v6 = vld [vmem:[#allocation4 + $0x38] sm:$0xf0] }
 0x157   :  { %1144 = vmatpush.bf16.msrb.mxu2 %v7168_v9  ;;  %1158 = vmatpush.bf16.msrb.mxu3 %v7171_v14  ;;  %v5243_v9 = vld [vmem:[#allocation4 + $0x20] sm:$0xf]  ;;  %v6521_v14 = vld [vmem:[#allocation4 + $0x40] sm:$0xf0] }
 0x159   :  { %1117 = vmatpush.bf16.msrb.mxu0 %v7174_v23  ;;  %v7552_v23 = vor.u32 %v6568_v5, %v5451_v58  ;;  %v7601_v5 = vor.u32 %v6529_v56, %v5295_v50  ;;  %v6589_v56 = vld [vmem:[#allocation10 + $0x218] sm:$0xf0] }
 0x15a   :  { %1131 = vmatpush.bf16.msrb.mxu1 %v7178_v26  ;;  %v5236_v26 = vor.u32 %v6520_v6, %v5235_v11 }
 0x15b   :  { %1145 = vmatpush.bf16.msrb.mxu2 %v7180_v27  ;;  %1159 = vmatpush.bf16.msrb.mxu3 %v7183_v32  ;;  %9192 = vst [vmem:[#allocation22_spill] sm:$0xff] %v7552_v23  ;;  %v5439_v27 = vld [vmem:[#allocation10 + $0x150] sm:$0xf]  ;;  %v7556_v32 = vor.u32 %v6521_v14, %v5243_v9  ;;  %v5283_v9 = vld [vmem:[#allocation10 + $0x18] sm:$0xf] }
 0x15c   :  { %9201 = vst [vmem:[#allocation31_spill] sm:$0xff] %v7601_v5  ;;  %v6526_v14 = vld [vmem:[#allocation10 + $0x20] sm:$0xf0] }
 0x15d   :  { %1118 = vmatpush.bf16.msrb.mxu0 %v7186_v42  ;;  %v7564_v42 = vor.u32 %v6541_v3, %v5343_v37  ;;  %v812_v51 = vpop.f32.mrf.mxu0  ;;  %v6550_v3 = vld [vmem:[#allocation10 + $0xe0] sm:$0xf0] }
 0x15e   :  { %1132 = vmatpush.bf16.msrb.mxu1 %v7190_v48  ;;  %v7567_v48 = vor.u32 %v6565_v7, %v5439_v27  ;;  %v826_v36 = vpop.f32.mrf.mxu1  ;;  %v7610_v27 = vor.u32 %v6526_v14, %v5283_v9  ;;  %v5271_v7 = vld [vmem:[#allocation10] sm:$0xf]  ;;  %v5823_v9 = vld [vmem:[#allocation10 + $0x450] sm:$0xf]  ;;  %v6661_v14 = vld [vmem:[#allocation10 + $0x458] sm:$0xf0] }
 0x15f   :  { %1146 = vmatpush.bf16.msrb.mxu2 %v7192_v49  ;;  %1160 = vmatpush.bf16.msrb.mxu3 %v7195_v53  ;;  %9193 = vst [vmem:[#allocation23_spill] sm:$0xff] %v7564_v42  ;;  %v5331_v49 = vld [vmem:[#allocation10 + $0x78] sm:$0xf]  ;;  %v786_v53 = vpop.f32.mrf.mxu2  ;;  %v827_v35 = vadd.f32 %v826_v36, %v7405_v61 }
 0x160   :  { %9194 = vst [vmem:[#allocation24_spill] sm:$0xff] %v7567_v48  ;;  %1119 = vmatmul.bf16.vlgmr.msrb.gmra.mxu0 %v5236_v26  ;;  %v7575_v16 = vor.u32 %v6538_v12, %v5331_v49  ;;  %v787_v57 = vadd.f32 %v786_v53, %v7393_v20  ;;  %v6523_v49 = vld [vmem:[#allocation10 + $0x8] sm:$0xf0]  ;;  %v5367_v53 = vld [vmem:[#allocation10 + $0xc0] sm:$0xf] }
 0x161   :  { %1167 = vmatpush.bf16.msra.mxu0 %v7197_v54  ;;  %v800_v54 = vpop.f32.mrf.mxu3  ;;  %1133 = vmatmul.bf16.vlgmr.msrb.gmra.mxu1 %v7560_v8  ;;  %9203 = vst [vmem:[#allocation33_spill] sm:$0xff] %v7610_v27 }
 0x162   :  { %1181 = vmatpush.bf16.msra.mxu1 %v7199_v60  ;;  %1147 = vmatmul.bf16.vlgmr.msrb.gmra.mxu2 %v7556_v32  ;;  %v785_v60 = vadd.f32 %v784_v31, %v7393_v20  ;;  %9195 = vst [vmem:[#allocation25_spill] sm:$0xff] %v7575_v16  ;;  %v5391_v31 = vld [vmem:[#allocation10 + $0xf0] sm:$0xf]  ;;  %v801_v18 = vadd.f32 %v800_v54, %v787_v57  ;;  %v6547_v54 = vld [vmem:[#allocation10 + $0xc8] sm:$0xf0] }
 0x163   :  { %2207 = vmatpush.bf16.msra.mxu2 %v7549_v44  ;;  %2221 = vmatpush.bf16.msra.mxu3 %v7552_v23  ;;  %v5631_v57 = vld [vmem:[#allocation10 + $0x2d0] sm:$0xf] }
 0x164   :  { %1161 = vmatmul.bf16.vlgmr.msrb.gmra.mxu3 %v5236_v26  ;;  %v799_v25 = vadd.f32 %v798_v62, %v785_v60  ;;  %v5547_v60 = vld [vmem:[#allocation10 + $0x228] sm:$0xf] }
 0x165   :  { %1168 = vmatpush.bf16.msra.mxu0 %v7210_v15  ;;  %v6559_v15 = vld [vmem:[#allocation10 + $0x128] sm:$0xf0]  ;;  %v814_v26 = vpop.f32.mrf.mxu0 }
 0x166   :  { %1182 = vmatpush.bf16.msra.mxu1 %v7214_v19  ;;  %v7583_v19 = vor.u32 %v6535_v21, %v5319_v17  ;;  %v7586_v29 = vor.u32 %v6559_v15, %v5415_v45  ;;  %v828_v11 = vpop.f32.mrf.mxu1  ;;  %v815_v17 = vadd.f32 %v814_v26, %v801_v18  ;;  %v6592_v21 = vld [vmem:[#allocation10 + $0x230] sm:$0xf0]  ;;  %v5739_v15 = vld [vmem:[#allocation10 + $0x3a8] sm:$0xf]  ;;  %v6586_v26 = vld [vmem:[#allocation10 + $0x200] sm:$0xf0] }
 0x167   :  { %2208 = vmatpush.bf16.msra.mxu2 %v7564_v42  ;;  %2222 = vmatpush.bf16.msra.mxu3 %v7567_v48  ;;  %v840_v59 = vpop.f32.mrf.mxu2  ;;  %v829_v37 = vadd.f32 %v828_v11, %v7405_v61  ;;  %v6616_v45 = vld [vmem:[#allocation10 + $0x2f0] sm:$0xf0]  ;;  %v7623_v38 = vor.u32 %v6592_v21, %v5547_v60  ;;  %v5247_v11 = vld [vmem:[#allocation2] sm:$0xf]  ;;  %v6583_v21 = vld [vmem:[#allocation10 + $0x1e8] sm:$0xf0] }
 0x168   :  { %9197 = vst [vmem:[#allocation27_spill] sm:$0xff] %v7583_v19  ;;  %v841_v58 = vadd.f32 %v840_v59, %v827_v35  ;;  %v7621_v35 = vor.u32 %v6547_v54, %v5367_v53  ;;  %v861_v59 = vmax.f32 %v815_v17, 0.0  ;;  %v7636_v18 = vor.u32 %v6669_v4, %v5247_v11  ;;  %v5811_v53 = vld [vmem:[#allocation10 + $0x438] sm:$0xf]  ;;  %v6658_v54 = vld [vmem:[#allocation10 + $0x440] sm:$0xf0] }
 0x169   :  { %1169 = vmatpush.bf16.msra.mxu0 %v7220_v28  ;;  %9198 = vst [vmem:[#allocation28_spill] sm:$0xff] %v7586_v29  ;;  %v813_v28 = vadd.f32 %v812_v51, %v799_v25  ;;  %v854_v46 = vpop.f32.mrf.mxu3  ;;  %v6640_v25 = vld [vmem:[#allocation10 + $0x3b0] sm:$0xf0]  ;;  %v7618_v51 = vor.u32 %v6523_v49, %v5271_v7  ;;  %v7650_v7 = vor.u32 %v6661_v14, %v5823_v9  ;;  %v6610_v49 = vld [vmem:[#allocation10 + $0x2c0] sm:$0xf0] }
 0x16a   :  { %1183 = vmatpush.bf16.msra.mxu1 %v7224_v30  ;;  %v7592_v30 = vor.u32 %v6532_v34, %v5307_v10  ;;  %v855_v62 = vadd.f32 %v854_v46, %v841_v58  ;;  %v5835_v10 = vld [vmem:[#allocation10 + $0x468] sm:$0xf]  ;;  %v6664_v34 = vld [vmem:[#allocation10 + $0x470] sm:$0xf0]  ;;  %9206 = vst [vmem:[#allocation36_spill] sm:$0xff] %v7621_v35 }
 0x16b   :  { %2209 = vmatpush.bf16.msra.mxu2 %v7575_v16  ;;  %2223 = vmatpush.bf16.msra.mxu3 %v7578_v33  ;;  %9205 = vst [vmem:[#allocation35_spill] sm:$0xff] %v7618_v51  ;;  %v7630_v58 = vor.u32 %v6664_v34, %v5835_v10  ;;  %v6655_v10 = vld [vmem:[#allocation10 + $0x428] sm:$0xf0] }
 0x16c   :  { %9199 = vst [vmem:[#allocation29_spill] sm:$0xff] %v7592_v30  ;;  %v860_v13 = vmax.f32 %v855_v62, 0.0 }
 0x16d   :  { %1170 = vmatpush.bf16.msra.mxu0 %v7228_v39  ;;  %v6553_v39 = vld [vmem:[#allocation10 + $0xf8] sm:$0xf0]  ;;  %9207 = vst [vmem:[#allocation37_spill] sm:$0xff] %v7623_v38 }
 0x16e   :  { %1184 = vmatpush.bf16.msra.mxu1 %v7232_v40  ;;  %v859_v40 = vmax.f32 %v813_v28, 0.0  ;;  %v7604_v6 = vor.u32 %v6553_v39, %v5391_v31  ;;  %v5535_v28 = vld [vmem:[#allocation10 + $0x210] sm:$0xf]  ;;  %9210 = vst [vmem:[#allocation40_spill] sm:$0xff] %v7630_v58  ;;  %v6613_v31 = vld [vmem:[#allocation10 + $0x2d8] sm:$0xf0] }
 0x16f   :  { %2210 = vmatpush.bf16.msra.mxu2 %v7583_v19  ;;  %2224 = vmatpush.bf16.msra.mxu3 %v7586_v29  ;;  %v842_v0 = vpop.f32.mrf.mxu2  ;;  %v5727_v39 = vld [vmem:[#allocation10 + $0x390] sm:$0xf]  ;;  %9214 = vst [vmem:[#allocation44_spill] sm:$0xff] %v7650_v7 }
 0x170   :  { %9202 = vst [vmem:[#allocation32_spill] sm:$0xff] %v7604_v6 }
 0x171   :  { %1171 = vmatpush.bf16.msra.mxu0 %v7236_v52  ;;  %v5379_v52 = vld [vmem:[#allocation10 + $0xd8] sm:$0xf]  ;;  %v856_v63 = vpop.f32.mrf.mxu3 }
 0x172   :  { %1185 = vmatpush.bf16.msra.mxu1 %v7240_v55  ;;  %v863_v55 = vpack.c.bf16 %v860_v13, %v859_v40  ;;  %v7613_v12 = vor.u32 %v6550_v3, %v5379_v52  ;;  %v6637_v40 = vld [vmem:[#allocation10 + $0x398] sm:$0xf0]  ;;  %v7638_v13 = vor.u32 %v6589_v56, %v5535_v28  ;;  %v7644_v52 = vor.u32 %v6613_v31, %v5631_v57  ;;  %v5499_v28 = vld [vmem:[#allocation10 + $0x1c8] sm:$0xf]  ;;  %v6604_v57 = vld [vmem:[#allocation10 + $0x290] sm:$0xf0] }
 0x173   :  { %2211 = vmatpush.bf16.msra.mxu2 %v7592_v30  ;;  %2225 = vmatpush.bf16.msra.mxu3 %v7595_v47  ;;  %v7646_v3 = vor.u32 %v6637_v40, %v5727_v39  ;;  %v5691_v31 = vld [vmem:[#allocation10 + $0x348] sm:$0xf]  ;;  %v6628_v39 = vld [vmem:[#allocation10 + $0x350] sm:$0xf0] }
 0x174   :  { %9204 = vst [vmem:[#allocation34_spill] sm:$0xff] %v7613_v12  ;;  %v5787_v40 = vld [vmem:[#allocation10 + $0x408] sm:$0xf]  ;;  %v7686_v14 = vor.u32 %v6628_v39, %v5691_v31  ;;  %v5763_v31 = vld [vmem:[#allocation10 + $0x3d8] sm:$0xf] }
 0x175   :  { %1172 = vmatpush.bf16.msra.mxu0 %v7244_v1  ;;  %865 = vst [vmem:[#allocation2 + $0x18] sm:$0xff] %v863_v55  ;;  %v843_v1 = vadd.f32 %v842_v0, %v829_v37  ;;  %v5523_v37 = vld [vmem:[#allocation10 + $0x1f8] sm:$0xf]  ;;  %v6646_v39 = vld [vmem:[#allocation10 + $0x3e0] sm:$0xf0] }
 0x176   :  { %1186 = vmatpush.bf16.msra.mxu1 %v7248_v2  ;;  %v5643_v2 = vld [vmem:[#allocation10 + $0x2e8] sm:$0xf]  ;;  %9211 = vst [vmem:[#allocation41_spill] sm:$0xff] %v7638_v13  ;;  %v5619_v55 = vld [vmem:[#allocation10 + $0x2b8] sm:$0xf]  ;;  %v7656_v60 = vor.u32 %v6586_v26, %v5523_v37 }
 0x177   :  { %2212 = vmatpush.bf16.msra.mxu2 %v7601_v5  ;;  %2226 = vmatpush.bf16.msra.mxu3 %v7604_v6  ;;  %v857_v36 = vadd.f32 %v856_v63, %v843_v1  ;;  %v7625_v50 = vor.u32 %v6616_v45, %v5643_v2  ;;  %9212 = vst [vmem:[#allocation42_spill] sm:$0xff] %v7644_v52  ;;  %v5715_v0 = vld [vmem:[#allocation10 + $0x378] sm:$0xf]  ;;  %v6634_v63 = vld [vmem:[#allocation10 + $0x380] sm:$0xf0] }
 0x178   :  { %9213 = vst [vmem:[#allocation43_spill] sm:$0xff] %v7646_v3  ;;  %v7662_v17 = vor.u32 %v6634_v63, %v5715_v0  ;;  %v5511_v1 = vld [vmem:[#allocation10 + $0x1e0] sm:$0xf]  ;;  %v7665_v45 = vor.u32 %v6658_v54, %v5811_v53  ;;  %v6577_v37 = vld [vmem:[#allocation10 + $0x1b8] sm:$0xf0] }
 0x179   :  { %1173 = vmatpush.bf16.msra.mxu0 %v7252_v22  ;;  %v5249_v22 = vld [vmem:[#allocation2 + $0x38] sm:$0xf0]  ;;  %v862_v46 = vmax.f32 %v857_v36, 0.0  ;;  %9208 = vst [vmem:[#allocation38_spill] sm:$0xff] %v7625_v50  ;;  %v7668_v34 = vor.u32 %v6583_v21, %v5511_v1  ;;  %v5583_v26 = vld [vmem:[#allocation10 + $0x270] sm:$0xf] }
 0x17a   :  { %1187 = vmatpush.bf16.msra.mxu1 %v7256_v24  ;;  %v7627_v24 = vor.u32 %v6640_v25, %v5739_v15  ;;  %9215 = vst [vmem:[#allocation45_spill] sm:$0xff] %v7656_v60  ;;  %v5607_v2 = vld [vmem:[#allocation10 + $0x2a0] sm:$0xf]  ;;  %v6631_v25 = vld [vmem:[#allocation10 + $0x368] sm:$0xf0] }
 0x17b   :  { %2213 = vmatpush.bf16.msra.mxu2 %v7610_v27  ;;  %2227 = vmatpush.bf16.msra.mxu3 %v7613_v12  ;;  %v864_v62 = vpack.c.bf16 %v862_v46, %v861_v59  ;;  %9217 = vst [vmem:[#allocation47_spill] sm:$0xff] %v7662_v17  ;;  %v5703_v15 = vld [vmem:[#allocation10 + $0x360] sm:$0xf]  ;;  %v6580_v59 = vld [vmem:[#allocation10 + $0x1d0] sm:$0xf0] }
 0x17c   :  { %9209 = vst [vmem:[#allocation39_spill] sm:$0xff] %v7627_v24  ;;  %v5799_v36 = vld [vmem:[#allocation10 + $0x420] sm:$0xf]  ;;  %v5595_v46 = vld [vmem:[#allocation10 + $0x288] sm:$0xf]  ;;  %v7680_v11 = vor.u32 %v6580_v59, %v5499_v28 }
 0x17d   :  { %1174 = vmatpush.bf16.msra.mxu0 %v7260_v41  ;;  %v6666_v41 = vld [vmem:[#allocation2 + $0x4] sm:$0xf]  ;;  %866 = vst [vmem:[#allocation2 + $0x50] sm:$0xff] %v864_v62  ;;  %v7677_v56 = vor.u32 %v6655_v10, %v5799_v36  ;;  %v6652_v62 = vld [vmem:[#allocation10 + $0x410] sm:$0xf0]  ;;  %v7684_v9 = vor.u32 %v6604_v57, %v5595_v46 }
 0x17e   :  { %1188 = vmatpush.bf16.msra.mxu1 %v7264_v43  ;;  %v7642_v43 = vor.u32 %v6666_v41, %v5249_v22  ;;  %9218 = vst [vmem:[#allocation48_spill] sm:$0xff] %v7665_v45  ;;  %v7674_v22 = vor.u32 %v6631_v25, %v5703_v15  ;;  %v5487_v41 = vld [vmem:[#allocation10 + $0x1b0] sm:$0xf]  ;;  %v6625_v63 = vld [vmem:[#allocation10 + $0x338] sm:$0xf0]  ;;  %v7703_v57 = vpop.f32.mrf.mxu1 }
 0x17f   :  { %2214 = vmatpush.bf16.msra.mxu2 %v7618_v51  ;;  %2228 = vmatpush.bf16.msra.mxu3 %v7621_v35  ;;  %9219 = vst [vmem:[#allocation49_spill] sm:$0xff] %v7668_v34  ;;  %v5679_v0 = vld [vmem:[#allocation10 + $0x330] sm:$0xf]  ;;  %v6649_v54 = vld [vmem:[#allocation10 + $0x3f8] sm:$0xf0]  ;;  %v7692_v1 = vor.u32 %v6577_v37, %v5487_v41 }
 0x180   :  { %1175 = vmatmul.bf16.vlgmr.msra.gmra.mxu0 %v7560_v8  ;;  %v7660_v8 = vor.u32 %v6610_v49, %v5619_v55  ;;  %9221 = vst [vmem:[#allocation51_spill] sm:$0xff] %v7674_v22  ;;  %v7689_v55 = vor.u32 %v6652_v62, %v5787_v40  ;;  %v6601_v49 = vld [vmem:[#allocation10 + $0x278] sm:$0xf0]  ;;  %v5775_v53 = vld [vmem:[#allocation10 + $0x3f0] sm:$0xf] }
 0x181   :  { %2235 = vmatpush.bf16.msrb.mxu0 %v7623_v38  ;;  %1189 = vmatmul.bf16.vlgmr.msra.gmra.mxu1 %v7556_v32  ;;  %v6607_v32 = vld [vmem:[#allocation10 + $0x2a8] sm:$0xf0]  ;;  %9222 = vst [vmem:[#allocation52_spill] sm:$0xff] %v7677_v56  ;;  %v7696_v21 = vor.u32 %v6601_v49, %v5583_v26  ;;  %v5475_v15 = vld [vmem:[#allocation10 + $0x198] sm:$0xf]  ;;  %v7701_v10 = vor.u32 %v6649_v54, %v5775_v53 }
 0x182   :  { %2249 = vmatpush.bf16.msrb.mxu1 %v7625_v50  ;;  %2215 = vmatmul.bf16.vlgmr.msra.gmra.mxu2 %v7636_v18  ;;  %9216 = vst [vmem:[#allocation46_spill] sm:$0xff] %v7660_v8  ;;  %v7672_v4 = vor.u32 %v6607_v32, %v5607_v2  ;;  %v7698_v2 = vor.u32 %v6625_v63, %v5679_v0  ;;  %v896_v32 = vpop.f32.mrf.mxu0  ;;  %v6574_v25 = vld [vmem:[#allocation10 + $0x1a0] sm:$0xf0]  ;;  %v5571_v36 = vld [vmem:[#allocation10 + $0x258] sm:$0xf] }
 0x183   :  { %2263 = vmatpush.bf16.msrb.mxu2 %v7627_v24  ;;  %2277 = vmatpush.bf16.msrb.mxu3 %v7630_v58  ;;  %9223 = vst [vmem:[#allocation53_spill] sm:$0xff] %v7680_v11  ;;  %v6598_v28 = vld [vmem:[#allocation10 + $0x260] sm:$0xf0]  ;;  %v5667_v59 = vld [vmem:[#allocation10 + $0x318] sm:$0xf]  ;;  %v7706_v40 = vor.u32 %v6574_v25, %v5475_v15  ;;  %v7715_v53 = vor.u32 %v6646_v39, %v5763_v31 }
 0x184   :  { %2229 = vmatmul.bf16.vlgmr.msra.gmra.mxu3 %v7642_v43  ;;  %9220 = vst [vmem:[#allocation50_spill] sm:$0xff] %v7672_v4  ;;  %v6622_v46 = vld [vmem:[#allocation10 + $0x320] sm:$0xf0]  ;;  %v5463_v62 = vld [vmem:[#allocation10 + $0x180] sm:$0xf]  ;;  %v7710_v37 = vor.u32 %v6598_v28, %v5571_v36 }
 0x185   :  { %2236 = vmatpush.bf16.msrb.mxu0 %v7638_v13  ;;  %9224 = vst [vmem:[#allocation54_spill] sm:$0xff] %v7684_v9  ;;  %v6571_v41 = vld [vmem:[#allocation10 + $0x188] sm:$0xf0]  ;;  %v7712_v26 = vor.u32 %v6622_v46, %v5667_v59  ;;  %v5559_v49 = vld [vmem:[#allocation10 + $0x240] sm:$0xf] }
 0x186   :  { %2250 = vmatpush.bf16.msrb.mxu1 %v7644_v52  ;;  %9225 = vst [vmem:[#allocation55_spill] sm:$0xff] %v7686_v14  ;;  %v6595_v0 = vld [vmem:[#allocation10 + $0x248] sm:$0xf0]  ;;  %v5655_v63 = vld [vmem:[#allocation10 + $0x300] sm:$0xf] }
 0x187   :  { %2264 = vmatpush.bf16.msrb.mxu2 %v7646_v3  ;;  %2278 = vmatpush.bf16.msrb.mxu3 %v7650_v7  ;;  %9226 = vst [vmem:[#allocation56_spill] sm:$0xff] %v7689_v55  ;;  %v6619_v54 = vld [vmem:[#allocation10 + $0x308] sm:$0xf0]  ;;  %v5751_v15 = vld [vmem:[#allocation10 + $0x3c0] sm:$0xf]  ;;  %v7722_v46 = vor.u32 %v6595_v0, %v5559_v49 }
 0x188   :  { %9227 = vst [vmem:[#allocation57_spill] sm:$0xff] %v7692_v1  ;;  %v6643_v25 = vld [vmem:[#allocation10 + $0x3c8] sm:$0xf0]  ;;  %v5453_v36 = vld [vmem:[#allocation10 + $0x174] sm:$0xf0]  ;;  %v7724_v31 = vor.u32 %v6619_v54, %v5655_v63 }
 0x189   :  { %2237 = vmatpush.bf16.msrb.mxu0 %v7656_v60  ;;  %9228 = vst [vmem:[#allocation58_spill] sm:$0xff] %v7696_v21  ;;  %v6591_v28 = vld [vmem:[#allocation10 + $0x22c] sm:$0xf]  ;;  %v5549_v59 = vld [vmem:[#allocation10 + $0x234] sm:$0xf0]  ;;  %v7727_v50 = vor.u32 %v6643_v25, %v5751_v15 }
 0x18a   :  { %2251 = vmatpush.bf16.msrb.mxu1 %v7660_v8  ;;  %9229 = vst [vmem:[#allocation59_spill] sm:$0xff] %v7698_v2  ;;  %v6567_v8 = vld [vmem:[#allocation10 + $0x16c] sm:$0xf]  ;;  %v5645_v52 = vld [vmem:[#allocation10 + $0x2f4] sm:$0xf0]  ;;  %v7735_v0 = vpop.f32.mrf.mxu0 }
 0x18b   :  { %2265 = vmatpush.bf16.msrb.mxu2 %v7662_v17  ;;  %2279 = vmatpush.bf16.msrb.mxu3 %v7665_v45  ;;  %9230 = vst [vmem:[#allocation60_spill] sm:$0xff] %v7701_v10  ;;  %v6615_v39 = vld [vmem:[#allocation10 + $0x2ec] sm:$0xf]  ;;  %v6667_v49 = vld [vmem:[#allocation2 + $0xc] sm:$0xf] }
 0x18c   :  { %9231 = vst [vmem:[#allocation61_spill] sm:$0xff] %v7706_v40  ;;  %v6540_v63 = vld [vmem:[#allocation10 + $0x94] sm:$0xf]  ;;  %v5345_v54 = vld [vmem:[#allocation10 + $0x9c] sm:$0xf0] }
 0x18d   :  { %2238 = vmatpush.bf16.msrb.mxu0 %v7668_v34  ;;  %9232 = vst [vmem:[#allocation62_spill] sm:$0xff] %v7710_v37  ;;  %v6588_v15 = vld [vmem:[#allocation10 + $0x214] sm:$0xf]  ;;  %v5537_v25 = vld [vmem:[#allocation10 + $0x21c] sm:$0xf0]  ;;  %v7751_v45 = vor.u32 %v6540_v63, %v5345_v54 }
 0x18e   :  { %2252 = vmatpush.bf16.msrb.mxu1 %v7672_v4  ;;  %9233 = vst [vmem:[#allocation63_spill] sm:$0xff] %v7712_v26  ;;  %v5357_v4 = vld [vmem:[#allocation10 + $0xb4] sm:$0xf0]  ;;  %v7759_v7 = vor.u32 %v6588_v15, %v5537_v25  ;;  %v5429_v63 = vld [vmem:[#allocation10 + $0x144] sm:$0xf0] }
 0x18f   :  { %2266 = vmatpush.bf16.msrb.mxu2 %v7674_v22  ;;  %2280 = vmatpush.bf16.msrb.mxu3 %v7677_v56  ;;  %9234 = vst [vmem:[#allocation64_spill] sm:$0xff] %v7715_v53  ;;  %v6564_v56 = vld [vmem:[#allocation10 + $0x154] sm:$0xf]  ;;  %v5525_v54 = vld [vmem:[#allocation10 + $0x204] sm:$0xf0] }
 0x190   :  { %9236 = vst [vmem:[#allocation66_spill] sm:$0xff] %v7722_v46  ;;  %v5621_v15 = vld [vmem:[#allocation10 + $0x2c4] sm:$0xf0]  ;;  %v6531_v60 = vld [vmem:[#allocation10 + $0x4c] sm:$0xf] }
 0x191   :  { %2239 = vmatpush.bf16.msrb.mxu0 %v7680_v11  ;;  %9237 = vst [vmem:[#allocation67_spill] sm:$0xff] %v7724_v31  ;;  %v938_v11 = vpop.f32.mrf.mxu3  ;;  %v6548_v58 = vld [vmem:[#allocation10 + $0xd0] sm:$0xf0]  ;;  %v6641_v13 = vld [vmem:[#allocation10 + $0x3b8] sm:$0xf0] }
 0x192   :  { %2253 = vmatpush.bf16.msrb.mxu1 %v7684_v9  ;;  %v6543_v9 = vld [vmem:[#allocation10 + $0xac] sm:$0xf]  ;;  %9238 = vst [vmem:[#allocation68_spill] sm:$0xff] %v7727_v50 }
 0x193   :  { %2267 = vmatpush.bf16.msrb.mxu2 %v7686_v14  ;;  %2281 = vmatpush.bf16.msrb.mxu3 %v7689_v55  ;;  %v7731_v55 = vor.u32 %v6567_v8, %v5453_v36  ;;  %v7741_v8 = vpop.f32.mrf.mxu1  ;;  %v5265_v36 = vld [vmem:[#allocation2 + $0x48] sm:$0xf0]  ;;  %9243 = vst [vmem:[#allocation73_spill] sm:$0xff] %v7751_v45 }
 0x194   :  { %9245 = vst [vmem:[#allocation75_spill] sm:$0xff] %v7759_v7 }
 0x195   :  { %2240 = vmatpush.bf16.msrb.mxu0 %v7692_v1  ;;  %9240 = vst [vmem:[#allocation70_spill] sm:$0xff] %v7731_v55  ;;  %v5255_v1 = vld [vmem:[#allocation2 + $0x8] sm:$0xf] }
 0x196   :  { %2254 = vmatpush.bf16.msrb.mxu1 %v7696_v21  ;;  %v7718_v21 = vor.u32 %v6571_v41, %v5463_v62  ;;  %v6670_v62 = vld [vmem:[#allocation2 + $0x3c] sm:$0xf0]  ;;  %v5257_v41 = vld [vmem:[#allocation2 + $0x40] sm:$0xf0] }
 0x197   :  { %2268 = vmatpush.bf16.msrb.mxu2 %v7698_v2  ;;  %2282 = vmatpush.bf16.msrb.mxu3 %v7701_v10  ;;  %v7729_v10 = vor.u32 %v6543_v9, %v5357_v4  ;;  %v7739_v4 = vor.u32 %v6615_v39, %v5645_v52  ;;  %v5441_v9 = vld [vmem:[#allocation10 + $0x15c] sm:$0xf0]  ;;  %v7749_v52 = vor.u32 %v6667_v49, %v5257_v41  ;;  %v5263_v39 = vld [vmem:[#allocation2 + $0x10] sm:$0xf] }
 0x198   :  { %9235 = vst [vmem:[#allocation65_spill] sm:$0xff] %v7718_v21  ;;  %v7757_v34 = vor.u32 %v6564_v56, %v5441_v9  ;;  %v924_v56 = vpop.f32.mrf.mxu2  ;;  %v6609_v9 = vld [vmem:[#allocation10 + $0x2bc] sm:$0xf] }
 0x199   :  { %2241 = vmatpush.bf16.msrb.mxu0 %v7706_v40  ;;  %9239 = vst [vmem:[#allocation69_spill] sm:$0xff] %v7729_v10  ;;  %v6671_v40 = vld [vmem:[#allocation2 + $0x44] sm:$0xf0] }
 0x19a   :  { %2255 = vmatpush.bf16.msrb.mxu1 %v7710_v37  ;;  %v7733_v37 = vor.u32 %v6591_v28, %v5549_v59  ;;  %9242 = vst [vmem:[#allocation72_spill] sm:$0xff] %v7739_v4  ;;  %v6612_v28 = vld [vmem:[#allocation10 + $0x2d4] sm:$0xf]  ;;  %v5633_v59 = vld [vmem:[#allocation10 + $0x2dc] sm:$0xf0] }
 0x19b   :  { %2269 = vmatpush.bf16.msrb.mxu2 %v7712_v26  ;;  %2283 = vmatpush.bf16.msrb.mxu3 %v7715_v53  ;;  %v897_v53 = vadd.f32 %v896_v32, %v7393_v20  ;;  %v7747_v32 = vor.u32 %v6670_v62, %v5255_v1  ;;  %9244 = vst [vmem:[#allocation74_spill] sm:$0xff] %v7757_v34  ;;  %v6561_v1 = vld [vmem:[#allocation10 + $0x13c] sm:$0xf] }
 0x19c   :  { %9241 = vst [vmem:[#allocation71_spill] sm:$0xff] %v7733_v37  ;;  %v7766_v49 = vor.u32 %v6612_v28, %v5633_v59  ;;  %v5321_v28 = vld [vmem:[#allocation10 + $0x6c] sm:$0xf0]  ;;  %v6558_v59 = vld [vmem:[#allocation10 + $0x124] sm:$0xf] }
 0x19d   :  { %2242 = vmatpush.bf16.msrb.mxu0 %v7718_v21  ;;  %v6668_v21 = vld [vmem:[#allocation2 + $0x14] sm:$0xf]  ;;  %v911_v62 = vadd.f32 %v7703_v57, %v897_v53  ;;  %v7777_v53 = vor.u32 %v6561_v1, %v5429_v63  ;;  %v899_v1 = vadd.f32 %v7735_v0, %v7393_v20 }
 0x19e   :  { %2256 = vmatpush.bf16.msrb.mxu1 %v7722_v46  ;;  %v7755_v46 = vor.u32 %v6671_v40, %v5263_v39  ;;  %v7764_v41 = vor.u32 %v6668_v21, %v5265_v36  ;;  %9246 = vst [vmem:[#allocation76_spill] sm:$0xff] %v7766_v49  ;;  %v6585_v40 = vld [vmem:[#allocation10 + $0x1fc] sm:$0xf]  ;;  %v939_v21 = vadd.f32 %v938_v11, %v7405_v61  ;;  %v6534_v36 = vld [vmem:[#allocation10 + $0x64] sm:$0xf]  ;;  %v952_v11 = vpop.f32.mrf.mxu0 }
 0x19f   :  { %2270 = vmatpush.bf16.msrb.mxu2 %v7724_v31  ;;  %2284 = vmatpush.bf16.msrb.mxu3 %v7727_v50  ;;  %v6537_v50 = vld [vmem:[#allocation10 + $0x7c] sm:$0xf]  ;;  %9248 = vst [vmem:[#allocation78_spill] sm:$0xff] %v7777_v53  ;;  %v7779_v25 = vor.u32 %v6585_v40, %v5525_v54  ;;  %v925_v39 = vadd.f32 %v924_v56, %v911_v62  ;;  %v966_v54 = vpop.f32.mrf.mxu1 }
 0x1a0   :  { %2243 = vmatmul.bf16.vlgmr.msrb.gmra.mxu0 %v7747_v32  ;;  %v953_v63 = vadd.f32 %v952_v11, %v939_v21  ;;  %v7787_v40 = vor.u32 %v6534_v36, %v5321_v28  ;;  %v6579_v28 = vld [vmem:[#allocation10 + $0x1cc] sm:$0xf]  ;;  %v5501_v11 = vld [vmem:[#allocation10 + $0x1d4] sm:$0xf0] }
 0x1a1   :  { %2291 = vmatpush.bf16.msra.mxu0 %v7729_v10  ;;  %v5333_v10 = vld [vmem:[#allocation10 + $0x84] sm:$0xf0]  ;;  %2257 = vmatmul.bf16.vlgmr.msrb.gmra.mxu1 %v7749_v52  ;;  %9249 = vst [vmem:[#allocation79_spill] sm:$0xff] %v7779_v25  ;;  %v971_v0 = vmax.f32 %v925_v39, 0.0  ;;  %v7807_v39 = vor.u32 %v6579_v28, %v5501_v11 }
 0x1a2   :  { %2305 = vmatpush.bf16.msra.mxu1 %v7731_v55  ;;  %2271 = vmatmul.bf16.vlgmr.msrb.gmra.mxu2 %v7755_v46  ;;  %v7772_v57 = vor.u32 %v6537_v50, %v5333_v10  ;;  %v7782_v55 = vor.u32 %v6609_v9, %v5621_v15  ;;  %v5417_v50 = vld [vmem:[#allocation10 + $0x12c] sm:$0xf0]  ;;  %v6582_v10 = vld [vmem:[#allocation10 + $0x1e4] sm:$0xf]  ;;  %9251 = vst [vmem:[#allocation81_spill] sm:$0xff] %v7787_v40 }
 0x1a3   :  { %2319 = vmatpush.bf16.msra.mxu2 %v7733_v37  ;;  %2333 = vmatpush.bf16.msra.mxu3 %v7739_v4  ;;  %v6606_v4 = vld [vmem:[#allocation10 + $0x2a4] sm:$0xf]  ;;  %v7791_v62 = vor.u32 %v6558_v59, %v5417_v50  ;;  %v5309_v9 = vld [vmem:[#allocation10 + $0x54] sm:$0xf0]  ;;  %v6555_v15 = vld [vmem:[#allocation10 + $0x10c] sm:$0xf]  ;;  %v967_v36 = vadd.f32 %v966_v54, %v953_v63 }
 0x1a4   :  { %2285 = vmatmul.bf16.vlgmr.msrb.gmra.mxu3 %v7764_v41  ;;  %9247 = vst [vmem:[#allocation77_spill] sm:$0xff] %v7772_v57  ;;  %v7800_v59 = vor.u32 %v6531_v60, %v5309_v9  ;;  %v5297_v63 = vld [vmem:[#allocation10 + $0x3c] sm:$0xf0]  ;;  %v6552_v54 = vld [vmem:[#allocation10 + $0xf4] sm:$0xf] }
 0x1a5   :  { %2292 = vmatpush.bf16.msra.mxu0 %v7751_v45  ;;  %9250 = vst [vmem:[#allocation80_spill] sm:$0xff] %v7782_v55  ;;  %v5513_v45 = vld [vmem:[#allocation10 + $0x1ec] sm:$0xf0]  ;;  %v5393_v60 = vld [vmem:[#allocation10 + $0xfc] sm:$0xf0] }
 0x1a6   :  { %2306 = vmatpush.bf16.msra.mxu1 %v7757_v34  ;;  %v5609_v34 = vld [vmem:[#allocation10 + $0x2ac] sm:$0xf0]  ;;  %9252 = vst [vmem:[#allocation82_spill] sm:$0xff] %v7791_v62  ;;  %v7793_v56 = vor.u32 %v6582_v10, %v5513_v45  ;;  %v972_v45 = vmax.f32 %v967_v36, 0.0  ;;  %v6528_v10 = vld [vmem:[#allocation10 + $0x34] sm:$0xf]  ;;  %v954_v36 = vpop.f32.mrf.mxu0 }
 0x1a7   :  { %2320 = vmatpush.bf16.msra.mxu2 %v7759_v7  ;;  %2334 = vmatpush.bf16.msra.mxu3 %v7766_v49  ;;  %v5405_v49 = vld [vmem:[#allocation10 + $0x114] sm:$0xf0]  ;;  %v940_v7 = vpop.f32.mrf.mxu3  ;;  %v7796_v21 = vor.u32 %v6606_v4, %v5609_v34  ;;  %9255 = vst [vmem:[#allocation85_spill] sm:$0xff] %v7800_v59  ;;  %v926_v34 = vpop.f32.mrf.mxu2  ;;  %v6576_v9 = vld [vmem:[#allocation10 + $0x1b4] sm:$0xf] }
 0x1a8   :  { %9253 = vst [vmem:[#allocation83_spill] sm:$0xff] %v7793_v56  ;;  %v941_v50 = vadd.f32 %v940_v7, %v7405_v61  ;;  %v7805_v4 = vor.u32 %v6555_v15, %v5405_v49  ;;  %v5489_v7 = vld [vmem:[#allocation10 + $0x1bc] sm:$0xf0]  ;;  %v7813_v15 = vor.u32 %v6528_v10, %v5297_v63  ;;  %v968_v28 = vpop.f32.mrf.mxu1  ;;  %v5285_v11 = vld [vmem:[#allocation10 + $0x24] sm:$0xf0] }
 0x1a9   :  { %2293 = vmatpush.bf16.msra.mxu0 %v7772_v57  ;;  %9254 = vst [vmem:[#allocation84_spill] sm:$0xff] %v7796_v21  ;;  %v6603_v57 = vld [vmem:[#allocation10 + $0x28c] sm:$0xf]  ;;  %v6573_v10 = vld [vmem:[#allocation10 + $0x19c] sm:$0xf] }
 0x1aa   :  { %2307 = vmatpush.bf16.msra.mxu1 %v7777_v53  ;;  %v5597_v53 = vld [vmem:[#allocation10 + $0x294] sm:$0xf0]  ;;  %9256 = vst [vmem:[#allocation86_spill] sm:$0xff] %v7805_v4  ;;  %v955_v49 = vadd.f32 %v954_v36, %v941_v50  ;;  %v5381_v50 = vld [vmem:[#allocation10 + $0xe4] sm:$0xf0] }
 0x1ab   :  { %2321 = vmatpush.bf16.msra.mxu2 %v7779_v25  ;;  %2335 = vmatpush.bf16.msra.mxu3 %v7782_v55  ;;  %v913_v25 = vadd.f32 %v7741_v8, %v899_v1  ;;  %9257 = vst [vmem:[#allocation87_spill] sm:$0xff] %v7807_v39  ;;  %v975_v8 = vpack.c.bf16 %v972_v45, %v971_v0  ;;  %v6525_v0 = vld [vmem:[#allocation10 + $0x1c] sm:$0xf]  ;;  %v5477_v63 = vld [vmem:[#allocation10 + $0x1a4] sm:$0xf0] }
 0x1ac   :  { %v7810_v1 = vor.u32 %v6603_v57, %v5597_v53  ;;  %9259 = vst [vmem:[#allocation89_spill] sm:$0xff] %v7813_v15  ;;  %v7817_v57 = vor.u32 %v6552_v54, %v5393_v60  ;;  %v7819_v53 = vor.u32 %v6576_v9, %v5489_v7  ;;  %v6549_v45 = vld [vmem:[#allocation10 + $0xdc] sm:$0xf]  ;;  %v5573_v36 = vld [vmem:[#allocation10 + $0x264] sm:$0xf0]  ;;  %v7825_v60 = vor.u32 %v6525_v0, %v5285_v11 }
 0x1ad   :  { %2294 = vmatpush.bf16.msra.mxu0 %v7787_v40  ;;  %v5585_v40 = vld [vmem:[#allocation10 + $0x27c] sm:$0xf0]  ;;  %977 = vst [vmem:[#allocation2 + $0x20] sm:$0xff] %v975_v8  ;;  %v927_v55 = vadd.f32 %v926_v34, %v913_v25  ;;  %v969_v34 = vadd.f32 %v968_v28, %v955_v49  ;;  %v6597_v8 = vld [vmem:[#allocation10 + $0x25c] sm:$0xf] }
 0x1ae   :  { %2308 = vmatpush.bf16.msra.mxu1 %v7791_v62  ;;  %9258 = vst [vmem:[#allocation88_spill] sm:$0xff] %v7810_v1  ;;  %v6600_v62 = vld [vmem:[#allocation10 + $0x274] sm:$0xf]  ;;  %v5273_v9 = vld [vmem:[#allocation10 + $0xc] sm:$0xf0] }
 0x1af   :  { %2322 = vmatpush.bf16.msra.mxu2 %v7793_v56  ;;  %2336 = vmatpush.bf16.msra.mxu3 %v7796_v21  ;;  %9260 = vst [vmem:[#allocation90_spill] sm:$0xff] %v7817_v57  ;;  %v7822_v25 = vor.u32 %v6600_v62, %v5585_v40  ;;  %v974_v54 = vmax.f32 %v969_v34, 0.0  ;;  %v6546_v7 = vld [vmem:[#allocation10 + $0xc4] sm:$0xf]  ;;  %v7829_v40 = vor.u32 %v6549_v45, %v5381_v50  ;;  %v5369_v49 = vld [vmem:[#allocation10 + $0xcc] sm:$0xf0] }
 0x1b0   :  { %9261 = vst [vmem:[#allocation91_spill] sm:$0xff] %v7819_v53  ;;  %v7831_v62 = vor.u32 %v6573_v10, %v5477_v63  ;;  %v6570_v28 = vld [vmem:[#allocation10 + $0x184] sm:$0xf]  ;;  %v5561_v11 = vld [vmem:[#allocation10 + $0x24c] sm:$0xf0]  ;;  %v1008_v63 = vpop.f32.mrf.mxu2 }
 0x1b1   :  { %2295 = vmatpush.bf16.msra.mxu0 %v7800_v59  ;;  %9262 = vst [vmem:[#allocation92_spill] sm:$0xff] %v7822_v25  ;;  %v973_v59 = vmax.f32 %v927_v55, 0.0  ;;  %v6594_v0 = vld [vmem:[#allocation10 + $0x244] sm:$0xf]  ;;  %v6639_v34 = vld [vmem:[#allocation10 + $0x3ac] sm:$0xf] }
 0x1b2   :  { %2309 = vmatpush.bf16.msra.mxu1 %v7805_v4  ;;  %v6522_v4 = vld [vmem:[#allocation10 + $0x4] sm:$0xf]  ;;  %9263 = vst [vmem:[#allocation93_spill] sm:$0xff] %v7825_v60  ;;  %v5741_v21 = vld [vmem:[#allocation10 + $0x3b4] sm:$0xf0] }
 0x1b3   :  { %2323 = vmatpush.bf16.msra.mxu2 %v7807_v39  ;;  %2337 = vmatpush.bf16.msra.mxu3 %v7810_v1  ;;  %9264 = vst [vmem:[#allocation94_spill] sm:$0xff] %v7829_v40  ;;  %v5465_v1 = vld [vmem:[#allocation10 + $0x18c] sm:$0xf0]  ;;  %v976_v55 = vpack.c.bf16 %v974_v54, %v973_v59  ;;  %v6663_v39 = vld [vmem:[#allocation10 + $0x46c] sm:$0xf]  ;;  %v7837_v45 = vor.u32 %v6522_v4, %v5273_v9 }
 0x1b4   :  { %9265 = vst [vmem:[#allocation95_spill] sm:$0xff] %v7831_v62  ;;  %v5363_v50 = vld [vmem:[#allocation10 + $0xb0] sm:$0xf]  ;;  %v6545_v10 = vld [vmem:[#allocation10 + $0xb8] sm:$0xf0]  ;;  %v7843_v59 = vor.u32 %v6546_v7, %v5369_v49  ;;  %v7850_v4 = vor.u32 %v6639_v34, %v5741_v21 }
 0x1b5   :  { %2296 = vmatpush.bf16.msra.mxu0 %v7813_v15  ;;  %v7834_v15 = vor.u32 %v6597_v8, %v5573_v36  ;;  %978 = vst [vmem:[#allocation2 + $0x58] sm:$0xff] %v976_v55  ;;  %v7845_v8 = vor.u32 %v6570_v28, %v5465_v1  ;;  %v5459_v36 = vld [vmem:[#allocation10 + $0x170] sm:$0xf]  ;;  %v6569_v54 = vld [vmem:[#allocation10 + $0x178] sm:$0xf0]  ;;  %v7848_v55 = vor.u32 %v6594_v0, %v5561_v11 }
 0x1b6   :  { %2310 = vmatpush.bf16.msra.mxu1 %v7817_v57  ;;  %v5837_v57 = vld [vmem:[#allocation10 + $0x474] sm:$0xf0]  ;;  %9267 = vst [vmem:[#allocation97_spill] sm:$0xff] %v7837_v45  ;;  %v6660_v56 = vld [vmem:[#allocation10 + $0x454] sm:$0xf]  ;;  %v7857_v7 = vor.u32 %v6569_v54, %v5459_v36 }
 0x1b7   :  { %2324 = vmatpush.bf16.msra.mxu2 %v7819_v53  ;;  %2338 = vmatpush.bf16.msra.mxu3 %v7822_v25  ;;  %9266 = vst [vmem:[#allocation96_spill] sm:$0xff] %v7834_v15  ;;  %v7839_v53 = vpop.f32.mrf.mxu3  ;;  %v7852_v9 = vor.u32 %v6663_v39, %v5837_v57  ;;  %v6636_v25 = vld [vmem:[#allocation10 + $0x394] sm:$0xf]  ;;  %v5825_v1 = vld [vmem:[#allocation10 + $0x45c] sm:$0xf0] }
 0x1b8   :  { %9268 = vst [vmem:[#allocation98_spill] sm:$0xff] %v7843_v59  ;;  %v5351_v49 = vld [vmem:[#allocation10 + $0x98] sm:$0xf]  ;;  %v6542_v28 = vld [vmem:[#allocation10 + $0xa0] sm:$0xf0]  ;;  %v7867_v57 = vor.u32 %v6660_v56, %v5825_v1 }
 0x1b9   :  { %2297 = vmatpush.bf16.msra.mxu0 %v7825_v60  ;;  %9269 = vst [vmem:[#allocation99_spill] sm:$0xff] %v7845_v8  ;;  %v7854_v60 = vor.u32 %v6545_v10, %v5363_v50  ;;  %v5447_v21 = vld [vmem:[#allocation10 + $0x158] sm:$0xf]  ;;  %v6566_v0 = vld [vmem:[#allocation10 + $0x160] sm:$0xf0]  ;;  %v7869_v11 = vor.u32 %v6542_v28, %v5351_v49  ;;  %v1010_v28 = vpop.f32.mrf.mxu2 }
 0x1ba   :  { %2311 = vmatpush.bf16.msra.mxu1 %v7829_v40  ;;  %9270 = vst [vmem:[#allocation100_spill] sm:$0xff] %v7848_v55  ;;  %v5729_v40 = vld [vmem:[#allocation10 + $0x39c] sm:$0xf0]  ;;  %v6633_v34 = vld [vmem:[#allocation10 + $0x37c] sm:$0xf]  ;;  %v7873_v36 = vor.u32 %v6566_v0, %v5447_v21  ;;  %v1009_v21 = vadd.f32 %v1008_v63, %v7393_v20 }
 0x1bb   :  { %2325 = vmatpush.bf16.msra.mxu2 %v7831_v62  ;;  %2339 = vmatpush.bf16.msra.mxu3 %v7834_v15  ;;  %9271 = vst [vmem:[#allocation101_spill] sm:$0xff] %v7850_v4  ;;  %v7863_v39 = vor.u32 %v6636_v25, %v5729_v40  ;;  %v5717_v50 = vld [vmem:[#allocation10 + $0x384] sm:$0xf0]  ;;  %v6657_v10 = vld [vmem:[#allocation10 + $0x43c] sm:$0xf] }
 0x1bc   :  { %9272 = vst [vmem:[#allocation102_spill] sm:$0xff] %v7852_v9  ;;  %v5813_v54 = vld [vmem:[#allocation10 + $0x444] sm:$0xf0]  ;;  %v5339_v25 = vld [vmem:[#allocation10 + $0x80] sm:$0xf]  ;;  %v7879_v49 = vor.u32 %v6633_v34, %v5717_v50 }
 0x1bd   :  { %9273 = vst [vmem:[#allocation103_spill] sm:$0xff] %v7854_v60  ;;  %2298 = vmatpush.bf16.msra.mxu0 %v7837_v45  ;;  %v6539_v40 = vld [vmem:[#allocation10 + $0x88] sm:$0xf0]  ;;  %v5435_v56 = vld [vmem:[#allocation10 + $0x140] sm:$0xf]  ;;  %v7886_v0 = vor.u32 %v6657_v10, %v5813_v54  ;;  %v1023_v10 = vadd.f32 %v7839_v53, %v1009_v21 }
 0x1be   :  { %9274 = vst [vmem:[#allocation104_spill] sm:$0xff] %v7857_v7  ;;  %2312 = vmatpush.bf16.msra.mxu1 %v7843_v59  ;;  %v6563_v1 = vld [vmem:[#allocation10 + $0x148] sm:$0xf0]  ;;  %v7888_v59 = vor.u32 %v6539_v40, %v5339_v25  ;;  %v5705_v45 = vld [vmem:[#allocation10 + $0x36c] sm:$0xf0]  ;;  %v1050_v40 = vpop.f32.mrf.mxu1 }
 0x1bf   :  { %2326 = vmatpush.bf16.msra.mxu2 %v7845_v8  ;;  %2340 = vmatpush.bf16.msra.mxu3 %v7848_v55  ;;  %9275 = vst [vmem:[#allocation105_spill] sm:$0xff] %v7863_v39  ;;  %v7891_v34 = vor.u32 %v6563_v1, %v5435_v56  ;;  %v5801_v50 = vld [vmem:[#allocation10 + $0x42c] sm:$0xf0]  ;;  %v6536_v55 = vld [vmem:[#allocation10 + $0x70] sm:$0xf0]  ;;  %v1051_v21 = vadd.f32 %v1050_v40, %v7405_v61 }
 0x1c0   :  { %9276 = vst [vmem:[#allocation106_spill] sm:$0xff] %v7867_v57  ;;  %2299 = vmatmul.bf16.vlgmr.msra.gmra.mxu0 %v7636_v18  ;;  %v5423_v15 = vld [vmem:[#allocation10 + $0x128] sm:$0xf]  ;;  %v6560_v63 = vld [vmem:[#allocation10 + $0x130] sm:$0xf0] }
 0x1c1   :  { %2347 = vmatpush.bf16.msrb.mxu0 %v7850_v4  ;;  %9277 = vst [vmem:[#allocation107_spill] sm:$0xff] %v7869_v11  ;;  %2313 = vmatmul.bf16.vlgmr.msra.gmra.mxu1 %v7642_v43  ;;  %v6630_v4 = vld [vmem:[#allocation10 + $0x364] sm:$0xf]  ;;  %v6627_v56 = vld [vmem:[#allocation10 + $0x34c] sm:$0xf] }
 0x1c2   :  { %2361 = vmatpush.bf16.msrb.mxu1 %v7852_v9  ;;  %9278 = vst [vmem:[#allocation108_spill] sm:$0xff] %v7873_v36  ;;  %2327 = vmatmul.bf16.vlgmr.msra.gmra.mxu2 %v7747_v32  ;;  %v7881_v9 = vpop.f32.mrf.mxu3  ;;  %v5693_v1 = vld [vmem:[#allocation10 + $0x354] sm:$0xf0]  ;;  %v6533_v53 = vld [vmem:[#allocation10 + $0x58] sm:$0xf0] }
 0x1c3   :  { %2375 = vmatpush.bf16.msrb.mxu2 %v7854_v60  ;;  %2389 = vmatpush.bf16.msrb.mxu3 %v7857_v7  ;;  %9279 = vst [vmem:[#allocation109_spill] sm:$0xff] %v7879_v49  ;;  %v6654_v7 = vld [vmem:[#allocation10 + $0x424] sm:$0xf]  ;;  %v5375_v62 = vld [vmem:[#allocation10 + $0xc8] sm:$0xf] }
 0x1c4   :  { %2341 = vmatmul.bf16.vlgmr.msra.gmra.mxu3 %v7749_v52  ;;  %9280 = vst [vmem:[#allocation110_spill] sm:$0xff] %v7886_v0  ;;  %v7899_v54 = vor.u32 %v6654_v7, %v5801_v50  ;;  %v6624_v50 = vld [vmem:[#allocation10 + $0x334] sm:$0xf] }
 0x1c5   :  { %2348 = vmatpush.bf16.msrb.mxu0 %v7863_v39  ;;  %9281 = vst [vmem:[#allocation111_spill] sm:$0xff] %v7888_v59  ;;  %v5327_v39 = vld [vmem:[#allocation10 + $0x68] sm:$0xf]  ;;  %v1064_v60 = vpop.f32.mrf.mxu2 }
 0x1c6   :  { %2362 = vmatpush.bf16.msrb.mxu1 %v7867_v57  ;;  %9282 = vst [vmem:[#allocation112_spill] sm:$0xff] %v7891_v34  ;;  %v7894_v57 = vor.u32 %v6630_v4, %v5705_v45  ;;  %v7901_v25 = vor.u32 %v6536_v55, %v5327_v39  ;;  %v5789_v45 = vld [vmem:[#allocation10 + $0x414] sm:$0xf0]  ;;  %v5315_v4 = vld [vmem:[#allocation10 + $0x50] sm:$0xf]  ;;  %v7908_v55 = vor.u32 %v6627_v56, %v5693_v1  ;;  %v1052_v8 = vpop.f32.mrf.mxu1 }
 0x1c7   :  { %2376 = vmatpush.bf16.msrb.mxu2 %v7869_v11  ;;  %2390 = vmatpush.bf16.msrb.mxu3 %v7873_v36  ;;  %9284 = vst [vmem:[#allocation114_spill] sm:$0xff] %v7899_v54  ;;  %v6651_v36 = vld [vmem:[#allocation10 + $0x40c] sm:$0xf]  ;;  %v1036_v11 = vpop.f32.mrf.mxu0  ;;  %v5777_v56 = vld [vmem:[#allocation10 + $0x3fc] sm:$0xf0] }
 0x1c8   :  { %9283 = vst [vmem:[#allocation113_spill] sm:$0xff] %v7894_v57  ;;  %v1037_v7 = vadd.f32 %v1036_v11, %v1023_v10  ;;  %v7912_v39 = vor.u32 %v6651_v36, %v5789_v45  ;;  %v5303_v1 = vld [vmem:[#allocation10 + $0x38] sm:$0xf]  ;;  %v6530_v11 = vld [vmem:[#allocation10 + $0x40] sm:$0xf0]  ;;  %v1011_v10 = vadd.f32 %v1010_v28, %v7393_v20 }
 0x1c9   :  { %2349 = vmatpush.bf16.msrb.mxu0 %v7879_v49  ;;  %9285 = vst [vmem:[#allocation115_spill] sm:$0xff] %v7901_v25  ;;  %v7904_v49 = vor.u32 %v6560_v63, %v5423_v15  ;;  %v7914_v15 = vor.u32 %v6533_v53, %v5315_v4  ;;  %v5681_v63 = vld [vmem:[#allocation10 + $0x33c] sm:$0xf0]  ;;  %v6554_v36 = vld [vmem:[#allocation10 + $0x100] sm:$0xf0] }
 0x1ca   :  { %2363 = vmatpush.bf16.msrb.mxu1 %v7886_v0  ;;  %v5411_v0 = vld [vmem:[#allocation10 + $0x110] sm:$0xf]  ;;  %9287 = vst [vmem:[#allocation117_spill] sm:$0xff] %v7908_v55  ;;  %v7921_v45 = vor.u32 %v6624_v50, %v5681_v63  ;;  %v6621_v4 = vld [vmem:[#allocation10 + $0x31c] sm:$0xf]  ;;  %v1083_v53 = vmax.f32 %v1037_v7, 0.0  ;;  %v1025_v7 = vadd.f32 %v7881_v9, %v1011_v10 }
 0x1cb   :  { %2377 = vmatpush.bf16.msrb.mxu2 %v7888_v59  ;;  %2391 = vmatpush.bf16.msrb.mxu3 %v7891_v34  ;;  %9286 = vst [vmem:[#allocation116_spill] sm:$0xff] %v7904_v49  ;;  %v6557_v59 = vld [vmem:[#allocation10 + $0x118] sm:$0xf0]  ;;  %v6648_v34 = vld [vmem:[#allocation10 + $0x3f4] sm:$0xf] }
 0x1cc   :  { %9288 = vst [vmem:[#allocation118_spill] sm:$0xff] %v7912_v39  ;;  %v7917_v40 = vor.u32 %v6557_v59, %v5411_v0  ;;  %v7925_v0 = vor.u32 %v6648_v34, %v5777_v56  ;;  %v5669_v28 = vld [vmem:[#allocation10 + $0x324] sm:$0xf0]  ;;  %v5291_v63 = vld [vmem:[#allocation10 + $0x20] sm:$0xf] }
 0x1cd   :  { %2350 = vmatpush.bf16.msrb.mxu0 %v7894_v57  ;;  %9289 = vst [vmem:[#allocation119_spill] sm:$0xff] %v7914_v15  ;;  %v1078_v57 = vpop.f32.mrf.mxu3  ;;  %v5765_v50 = vld [vmem:[#allocation10 + $0x3e4] sm:$0xf0]  ;;  %v6551_v34 = vld [vmem:[#allocation10 + $0xe8] sm:$0xf0]  ;;  %v7935_v56 = vor.u32 %v6621_v4, %v5669_v28  ;;  %v1066_v4 = vpop.f32.mrf.mxu2 }
 0x1ce   :  { %2364 = vmatpush.bf16.msrb.mxu1 %v7899_v54  ;;  %9290 = vst [vmem:[#allocation120_spill] sm:$0xff] %v7917_v40  ;;  %v1065_v54 = vadd.f32 %v1064_v60, %v1051_v21  ;;  %v6645_v60 = vld [vmem:[#allocation10 + $0x3dc] sm:$0xf]  ;;  %v5279_v10 = vld [vmem:[#allocation10 + $0x8] sm:$0xf] }
 0x1cf   :  { %2378 = vmatpush.bf16.msrb.mxu2 %v7901_v25  ;;  %2392 = vmatpush.bf16.msrb.mxu3 %v7904_v49  ;;  %v5399_v25 = vld [vmem:[#allocation10 + $0xf8] sm:$0xf]  ;;  %9291 = vst [vmem:[#allocation121_spill] sm:$0xff] %v7921_v45  ;;  %v7927_v49 = vor.u32 %v6530_v11, %v5303_v1  ;;  %v6618_v1 = vld [vmem:[#allocation10 + $0x304] sm:$0xf] }
 0x1d0   :  { %v1079_v59 = vadd.f32 %v1078_v57, %v1065_v54  ;;  %9292 = vst [vmem:[#allocation122_spill] sm:$0xff] %v7925_v0  ;;  %v7930_v21 = vor.u32 %v6554_v36, %v5399_v25  ;;  %v5387_v57 = vld [vmem:[#allocation10 + $0xe0] sm:$0xf]  ;;  %v1038_v54 = vpop.f32.mrf.mxu0  ;;  %v5657_v11 = vld [vmem:[#allocation10 + $0x30c] sm:$0xf0]  ;;  %v7939_v36 = vor.u32 %v6645_v60, %v5765_v50 }
 0x1d1   :  { %2351 = vmatpush.bf16.msrb.mxu0 %v7908_v55  ;;  %9293 = vst [vmem:[#allocation123_spill] sm:$0xff] %v7927_v49  ;;  %v6527_v55 = vld [vmem:[#allocation10 + $0x28] sm:$0xf0]  ;;  %v5651_v60 = vld [vmem:[#allocation10 + $0x2f0] sm:$0xf] }
 0x1d2   :  { %2365 = vmatpush.bf16.msrb.mxu1 %v7912_v39  ;;  %9294 = vst [vmem:[#allocation124_spill] sm:$0xff] %v7930_v21  ;;  %v1084_v39 = vmax.f32 %v1079_v59, 0.0  ;;  %v7941_v9 = vor.u32 %v6527_v55, %v5291_v63  ;;  %v6524_v59 = vld [vmem:[#allocation10 + $0x10] sm:$0xf0]  ;;  %v7947_v55 = vor.u32 %v6618_v1, %v5657_v11  ;;  %v6617_v50 = vld [vmem:[#allocation10 + $0x2f8] sm:$0xf0] }
 0x1d3   :  { %2379 = vmatpush.bf16.msrb.mxu2 %v7914_v15  ;;  %2393 = vmatpush.bf16.msrb.mxu3 %v7917_v40  ;;  %v1053_v15 = vadd.f32 %v1052_v8, %v7405_v61  ;;  %9295 = vst [vmem:[#allocation125_spill] sm:$0xff] %v7935_v56  ;;  %v6642_v40 = vld [vmem:[#allocation10 + $0x3c4] sm:$0xf]  ;;  %v5753_v8 = vld [vmem:[#allocation10 + $0x3cc] sm:$0xf0] }
 0x1d4   :  { %v1087_v25 = vpack.c.bf16 %v1084_v39, %v1083_v53  ;;  %9296 = vst [vmem:[#allocation126_spill] sm:$0xff] %v7939_v36  ;;  %v5555_v39 = vld [vmem:[#allocation10 + $0x230] sm:$0xf]  ;;  %v1039_v53 = vadd.f32 %v1038_v54, %v1025_v7  ;;  %v7956_v54 = vor.u32 %v6548_v58, %v5375_v62  ;;  %v5543_v11 = vld [vmem:[#allocation10 + $0x218] sm:$0xf] }
 0x1d5   :  { %2352 = vmatpush.bf16.msrb.mxu0 %v7921_v45  ;;  %9297 = vst [vmem:[#allocation127_spill] sm:$0xff] %v7941_v9  ;;  %v7944_v45 = vor.u32 %v6551_v34, %v5387_v57  ;;  %v1080_v28 = vpop.f32.mrf.mxu3  ;;  %v5747_v63 = vld [vmem:[#allocation10 + $0x3b0] sm:$0xf]  ;;  %v7951_v34 = vor.u32 %v6642_v40, %v5753_v8  ;;  %v5639_v40 = vld [vmem:[#allocation10 + $0x2d8] sm:$0xf] }
 0x1d6   :  { %2366 = vmatpush.bf16.msrb.mxu1 %v7925_v0  ;;  %1089 = vst [vmem:[#allocation2 + $0x28] sm:$0xff] %v1087_v25  ;;  %v1067_v0 = vadd.f32 %v1066_v4, %v1053_v15  ;;  %v5843_v7 = vld [vmem:[#allocation10 + $0x470] sm:$0xf]  ;;  %v6665_v15 = vld [vmem:[#allocation10 + $0x478] sm:$0xf0]  ;;  %v1085_v25 = vmax.f32 %v1039_v53, 0.0 }
 0x1d7   :  { %2380 = vmatpush.bf16.msrb.mxu2 %v7927_v49  ;;  %2394 = vmatpush.bf16.msrb.mxu3 %v7930_v21  ;;  %v6593_v49 = vld [vmem:[#allocation10 + $0x238] sm:$0xf0]  ;;  %9298 = vst [vmem:[#allocation128_spill] sm:$0xff] %v7947_v55  ;;  %v7953_v21 = vor.u32 %v6524_v59, %v5279_v10  ;;  %v7965_v8 = vor.u32 %v6665_v15, %v5843_v7  ;;  %v6614_v10 = vld [vmem:[#allocation10 + $0x2e0] sm:$0xf0] }
 0x1d8   :  { %v1081_v57 = vadd.f32 %v1080_v28, %v1067_v0  ;;  %9299 = vst [vmem:[#allocation129_spill] sm:$0xff] %v7951_v34  ;;  %v7958_v1 = vor.u32 %v6593_v49, %v5555_v39  ;;  %v6590_v0 = vld [vmem:[#allocation10 + $0x220] sm:$0xf0]  ;;  %v5735_v59 = vld [vmem:[#allocation10 + $0x398] sm:$0xf]  ;;  %v7975_v53 = vor.u32 %v6614_v10, %v5639_v40 }
 0x1d9   :  { %2353 = vmatpush.bf16.msrb.mxu0 %v7935_v56  ;;  %9300 = vst [vmem:[#allocation130_spill] sm:$0xff] %v7953_v21  ;;  %v7960_v56 = vor.u32 %v6617_v50, %v5651_v60  ;;  %v6638_v28 = vld [vmem:[#allocation10 + $0x3a0] sm:$0xf0]  ;;  %v5831_v62 = vld [vmem:[#allocation10 + $0x458] sm:$0xf] }
 0x1da   :  { %2367 = vmatpush.bf16.msrb.mxu1 %v7939_v36  ;;  %9301 = vst [vmem:[#allocation131_spill] sm:$0xff] %v7956_v54  ;;  %v1086_v4 = vmax.f32 %v1081_v57, 0.0  ;;  %v7962_v36 = vor.u32 %v6641_v13, %v5747_v63  ;;  %v6662_v49 = vld [vmem:[#allocation10 + $0x460] sm:$0xf0]  ;;  %v7971_v13 = vor.u32 %v6590_v0, %v5543_v11  ;;  %v5531_v39 = vld [vmem:[#allocation10 + $0x200] sm:$0xf]  ;;  %v7977_v60 = vor.u32 %v6638_v28, %v5735_v59 }
 0x1db   :  { %2381 = vmatpush.bf16.msrb.mxu2 %v7941_v9  ;;  %2395 = vmatpush.bf16.msrb.mxu3 %v7944_v45  ;;  %9302 = vst [vmem:[#allocation132_spill] sm:$0xff] %v7958_v1  ;;  %v6587_v50 = vld [vmem:[#allocation10 + $0x208] sm:$0xf0]  ;;  %v5627_v63 = vld [vmem:[#allocation10 + $0x2c0] sm:$0xf]  ;;  %v7981_v57 = vor.u32 %v6662_v49, %v5831_v62 }
 0x1dc   :  { %9303 = vst [vmem:[#allocation133_spill] sm:$0xff] %v7960_v56  ;;  %v1088_v58 = vpack.c.bf16 %v1086_v4, %v1085_v25  ;;  %v6611_v7 = vld [vmem:[#allocation10 + $0x2c8] sm:$0xf0]  ;;  %v5723_v15 = vld [vmem:[#allocation10 + $0x380] sm:$0xf]  ;;  %v7987_v0 = vor.u32 %v6587_v50, %v5531_v39 }
 0x1dd   :  { %9304 = vst [vmem:[#allocation134_spill] sm:$0xff] %v7962_v36  ;;  %2354 = vmatpush.bf16.msrb.mxu0 %v7947_v55  ;;  %v6635_v11 = vld [vmem:[#allocation10 + $0x388] sm:$0xf0]  ;;  %v5819_v25 = vld [vmem:[#allocation10 + $0x440] sm:$0xf]  ;;  %v7991_v40 = vor.u32 %v6611_v7, %v5627_v63 }
 0x1de   :  { %9305 = vst [vmem:[#allocation135_spill] sm:$0xff] %v7965_v8  ;;  %2368 = vmatpush.bf16.msrb.mxu1 %v7951_v34  ;;  %v6659_v4 = vld [vmem:[#allocation10 + $0x448] sm:$0xf0]  ;;  %v7993_v10 = vor.u32 %v6635_v11, %v5723_v15  ;;  %v5519_v59 = vld [vmem:[#allocation10 + $0x1e8] sm:$0xf] }
 0x1df   :  { %2382 = vmatpush.bf16.msrb.mxu2 %v7953_v21  ;;  %2396 = vmatpush.bf16.msrb.mxu3 %v7956_v54  ;;  %9306 = vst [vmem:[#allocation136_spill] sm:$0xff] %v7971_v13  ;;  %v6584_v28 = vld [vmem:[#allocation10 + $0x1f0] sm:$0xf0]  ;;  %v5711_v62 = vld [vmem:[#allocation10 + $0x368] sm:$0xf] }
 0x1e0   :  { %1090 = vst [vmem:[#allocation2 + $0x60] sm:$0xff] %v1088_v58  ;;  %2355 = vmatmul.bf16.vlgmr.msrb.gmra.mxu0 %v7755_v46  ;;  %v5615_v58 = vld [vmem:[#allocation10 + $0x2a8] sm:$0xf]  ;;  %v6632_v49 = vld [vmem:[#allocation10 + $0x370] sm:$0xf0] }
 0x1e1   :  { %2403 = vmatpush.bf16.msra.mxu0 %v7958_v1  ;;  %9307 = vst [vmem:[#allocation137_spill] sm:$0xff] %v7975_v53  ;;  %2369 = vmatmul.bf16.vlgmr.msrb.gmra.mxu1 %v7764_v41  ;;  %v5807_v39 = vld [vmem:[#allocation10 + $0x428] sm:$0xf]  ;;  %v6656_v50 = vld [vmem:[#allocation10 + $0x430] sm:$0xf0]  ;;  %v8005_v7 = vor.u32 %v6632_v49, %v5711_v62 }
 0x1e2   :  { %2417 = vmatpush.bf16.msra.mxu1 %v7960_v56  ;;  %9308 = vst [vmem:[#allocation138_spill] sm:$0xff] %v7977_v60  ;;  %2383 = vmatmul.bf16.vlgmr.msrb.gmra.mxu2 %v7636_v18  ;;  %v7996_v18 = vor.u32 %v6659_v4, %v5819_v25  ;;  %v5507_v15 = vld [vmem:[#allocation10 + $0x1d0] sm:$0xf]  ;;  %v6581_v11 = vld [vmem:[#allocation10 + $0x1d8] sm:$0xf0]  ;;  %v8008_v4 = vor.u32 %v6656_v50, %v5807_v39 }
 0x1e3   :  { %2431 = vmatpush.bf16.msra.mxu2 %v7962_v36  ;;  %2445 = vmatpush.bf16.msra.mxu3 %v7965_v8  ;;  %9309 = vst [vmem:[#allocation139_spill] sm:$0xff] %v7981_v57  ;;  %v5603_v25 = vld [vmem:[#allocation10 + $0x290] sm:$0xf]  ;;  %v6605_v56 = vld [vmem:[#allocation10 + $0x298] sm:$0xf0] }
 0x1e4   :  { %2397 = vmatmul.bf16.vlgmr.msrb.gmra.mxu3 %v7642_v43  ;;  %9310 = vst [vmem:[#allocation140_spill] sm:$0xff] %v7987_v0  ;;  %v6608_v43 = vld [vmem:[#allocation10 + $0x2b0] sm:$0xf0]  ;;  %v5699_v34 = vld [vmem:[#allocation10 + $0x350] sm:$0xf] }
 0x1e5   :  { %2404 = vmatpush.bf16.msra.mxu0 %v7971_v13  ;;  %9311 = vst [vmem:[#allocation141_spill] sm:$0xff] %v7991_v40  ;;  %v8003_v63 = vor.u32 %v6608_v43, %v5615_v58  ;;  %v8015_v58 = vor.u32 %v6605_v56, %v5603_v25  ;;  %v5495_v62 = vld [vmem:[#allocation10 + $0x1b8] sm:$0xf]  ;;  %v6578_v49 = vld [vmem:[#allocation10 + $0x1c0] sm:$0xf0] }
 0x1e6   :  { %2418 = vmatpush.bf16.msra.mxu1 %v7975_v53  ;;  %9312 = vst [vmem:[#allocation142_spill] sm:$0xff] %v7993_v10  ;;  %v7999_v53 = vor.u32 %v6584_v28, %v5519_v59  ;;  %v5795_v59 = vld [vmem:[#allocation10 + $0x410] sm:$0xf]  ;;  %v6653_v28 = vld [vmem:[#allocation10 + $0x418] sm:$0xf0] }
 0x1e7   :  { %2432 = vmatpush.bf16.msra.mxu2 %v7977_v60  ;;  %2446 = vmatpush.bf16.msra.mxu3 %v7981_v57  ;;  %9313 = vst [vmem:[#allocation143_spill] sm:$0xff] %v7996_v18  ;;  %v5591_v39 = vld [vmem:[#allocation10 + $0x278] sm:$0xf]  ;;  %v8020_v50 = vor.u32 %v6653_v28, %v5795_v59  ;;  %v6602_v13 = vld [vmem:[#allocation10 + $0x280] sm:$0xf0] }
 0x1e8   :  { %9314 = vst [vmem:[#allocation144_spill] sm:$0xff] %v7999_v53  ;;  %v5687_v1 = vld [vmem:[#allocation10 + $0x338] sm:$0xf]  ;;  %v8027_v56 = vor.u32 %v6602_v13, %v5591_v39  ;;  %v5483_v25 = vld [vmem:[#allocation10 + $0x1a0] sm:$0xf] }
 0x1e9   :  { %2405 = vmatpush.bf16.msra.mxu0 %v7987_v0  ;;  %9315 = vst [vmem:[#allocation145_spill] sm:$0xff] %v8003_v63  ;;  %v6629_v0 = vld [vmem:[#allocation10 + $0x358] sm:$0xf0]  ;;  %v6575_v59 = vld [vmem:[#allocation10 + $0x1a8] sm:$0xf0] }
 0x1ea   :  { %2419 = vmatpush.bf16.msra.mxu1 %v7991_v40  ;;  %9316 = vst [vmem:[#allocation146_spill] sm:$0xff] %v8005_v7  ;;  %v8011_v40 = vor.u32 %v6581_v11, %v5507_v15  ;;  %v8017_v43 = vor.u32 %v6629_v0, %v5699_v34  ;;  %v5783_v15 = vld [vmem:[#allocation10 + $0x3f8] sm:$0xf]  ;;  %v6650_v11 = vld [vmem:[#allocation10 + $0x400] sm:$0xf0]  ;;  %v1120_v0 = vpop.f32.mrf.mxu0  ;;  %v8035_v13 = vor.u32 %v6575_v59, %v5483_v25 }
 0x1eb   :  { %2433 = vmatpush.bf16.msra.mxu2 %v7993_v10  ;;  %2447 = vmatpush.bf16.msra.mxu3 %v7996_v18  ;;  %9317 = vst [vmem:[#allocation147_spill] sm:$0xff] %v8008_v4  ;;  %v5579_v28 = vld [vmem:[#allocation10 + $0x260] sm:$0xf]  ;;  %v8032_v55 = vor.u32 %v6650_v11, %v5783_v15  ;;  %v6647_v18 = vld [vmem:[#allocation10 + $0x3e8] sm:$0xf0] }
 0x1ec   :  { %9318 = vst [vmem:[#allocation148_spill] sm:$0xff] %v8011_v40  ;;  %v5471_v39 = vld [vmem:[#allocation10 + $0x188] sm:$0xf]  ;;  %v6572_v15 = vld [vmem:[#allocation10 + $0x190] sm:$0xf0] }
 0x1ed   :  { %2406 = vmatpush.bf16.msra.mxu0 %v7999_v53  ;;  %9319 = vst [vmem:[#allocation149_spill] sm:$0xff] %v8015_v58  ;;  %v6626_v53 = vld [vmem:[#allocation10 + $0x340] sm:$0xf0]  ;;  %v5567_v11 = vld [vmem:[#allocation10 + $0x248] sm:$0xf] }
 0x1ee   :  { %2420 = vmatpush.bf16.msra.mxu1 %v8003_v63  ;;  %9320 = vst [vmem:[#allocation150_spill] sm:$0xff] %v8017_v43  ;;  %v8023_v63 = vor.u32 %v6578_v49, %v5495_v62  ;;  %v8029_v34 = vor.u32 %v6626_v53, %v5687_v1  ;;  %v6623_v62 = vld [vmem:[#allocation10 + $0x328] sm:$0xf0]  ;;  %v5771_v49 = vld [vmem:[#allocation10 + $0x3e0] sm:$0xf] }
 0x1ef   :  { %2434 = vmatpush.bf16.msra.mxu2 %v8005_v7  ;;  %2448 = vmatpush.bf16.msra.mxu3 %v8008_v4  ;;  %9321 = vst [vmem:[#allocation151_spill] sm:$0xff] %v8020_v50  ;;  %v6599_v4 = vld [vmem:[#allocation10 + $0x268] sm:$0xf0]  ;;  %v6596_v57 = vld [vmem:[#allocation10 + $0x250] sm:$0xf0] }
 0x1f0   :  { %9322 = vst [vmem:[#allocation152_spill] sm:$0xff] %v8023_v63  ;;  %v8039_v1 = vor.u32 %v6599_v4, %v5579_v28  ;;  %v5663_v8 = vld [vmem:[#allocation10 + $0x308] sm:$0xf]  ;;  %v6644_v59 = vld [vmem:[#allocation10 + $0x3d0] sm:$0xf0]  ;;  %v6679_v28 = vld [vmem:[#allocation12 + $0x38] sm:$0xff] }
 0x1f1   :  { %2407 = vmatpush.bf16.msra.mxu0 %v8011_v40  ;;  %9323 = vst [vmem:[#allocation153_spill] sm:$0xff] %v8027_v56  ;;  %v5675_v40 = vld [vmem:[#allocation10 + $0x320] sm:$0xf]  ;;  %v5759_v25 = vld [vmem:[#allocation10 + $0x3c8] sm:$0xf] }
 0x1f2   :  { %2421 = vmatpush.bf16.msra.mxu1 %v8015_v58  ;;  %9324 = vst [vmem:[#allocation154_spill] sm:$0xff] %v8029_v34  ;;  %v1134_v58 = vpop.f32.mrf.mxu1  ;;  %v8041_v53 = vor.u32 %v6623_v62, %v5675_v40  ;;  %v8051_v40 = vor.u32 %v6596_v57, %v5567_v11  ;;  %v1122_v62 = vpop.f32.mrf.mxu0 }
 0x1f3   :  { %2435 = vmatpush.bf16.msra.mxu2 %v8017_v43  ;;  %2449 = vmatpush.bf16.msra.mxu3 %v8020_v50  ;;  %9325 = vst [vmem:[#allocation155_spill] sm:$0xff] %v8032_v55  ;;  %v8044_v50 = vor.u32 %v6647_v18, %v5771_v49  ;;  %v8056_v18 = vor.u32 %v6644_v59, %v5759_v25  ;;  %v1162_v57 = vpop.f32.mrf.mxu3  ;;  %v1148_v11 = vpop.f32.mrf.mxu2 }
 0x1f4   :  { %9326 = vst [vmem:[#allocation156_spill] sm:$0xff] %v8035_v13  ;;  %v1121_v49 = vadd.f32 %v1120_v0, %v7393_v20  ;;  %v1163_v0 = vadd.f32 %v1162_v57, %v7405_v61 }
 0x1f5   :  { %2408 = vmatpush.bf16.msra.mxu0 %v8023_v63  ;;  %9327 = vst [vmem:[#allocation157_spill] sm:$0xff] %v8039_v1  ;;  %v6620_v63 = vld [vmem:[#allocation10 + $0x310] sm:$0xf0] }
 0x1f6   :  { %2422 = vmatpush.bf16.msra.mxu1 %v8027_v56  ;;  %9328 = vst [vmem:[#allocation158_spill] sm:$0xff] %v8041_v53  ;;  %v8047_v56 = vor.u32 %v6572_v15, %v5471_v39  ;;  %v8053_v4 = vor.u32 %v6620_v63, %v5663_v8  ;;  %v6678_v8 = vld [vmem:[#allocation12 + $0x30] sm:$0xff]  ;;  %v1135_v63 = vadd.f32 %v1134_v58, %v1121_v49  ;;  %v6677_v15 = vld [vmem:[#allocation12 + $0x28] sm:$0xff] }
 0x1f7   :  { %2436 = vmatpush.bf16.msra.mxu2 %v8029_v34  ;;  %2450 = vmatpush.bf16.msra.mxu3 %v8032_v55  ;;  %9329 = vst [vmem:[#allocation159_spill] sm:$0xff] %v8044_v50 }
 0x1f8   :  { %9330 = vst [vmem:[#allocation160_spill] sm:$0xff] %v8047_v56  ;;  %v1149_v25 = vadd.f32 %v1148_v11, %v1135_v63 }
 0x1f9   :  { %2409 = vmatpush.bf16.msra.mxu0 %v8035_v13  ;;  %9331 = vst [vmem:[#allocation161_spill] sm:$0xff] %v8051_v40 }
 0x1fa   :  { %2423 = vmatpush.bf16.msra.mxu1 %v8039_v1  ;;  %9332 = vst [vmem:[#allocation162_spill] sm:$0xff] %v8053_v4  ;;  %v1136_v39 = vpop.f32.mrf.mxu1  ;;  %v6675_v1 = vld [vmem:[#allocation12 + $0x18] sm:$0xff] }
 0x1fb   :  { %2437 = vmatpush.bf16.msra.mxu2 %v8041_v53  ;;  %2451 = vmatpush.bf16.msra.mxu3 %v8044_v50  ;;  %9333 = vst [vmem:[#allocation163_spill] sm:$0xff] %v8056_v18  ;;  %v1150_v11 = vpop.f32.mrf.mxu2 }
 0x1fd   :  { %2410 = vmatpush.bf16.msra.mxu0 %v8047_v56  ;;  %v1176_v59 = vpop.f32.mrf.mxu0 }
 0x1fe   :  { %2424 = vmatpush.bf16.msra.mxu1 %v8051_v40  ;;  %v1177_v40 = vadd.f32 %v1176_v59, %v1163_v0 }
 0x1ff   :  { %2438 = vmatpush.bf16.msra.mxu2 %v8053_v4  ;;  %2452 = vmatpush.bf16.msra.mxu3 %v8056_v18 }
 0x200   :  { %2411 = vmatmul.bf16.vlgmr.msra.gmra.mxu0 %v7747_v32  ;;  %v6676_v32 = vld [vmem:[#allocation12 + $0x20] sm:$0xff] }
 0x201   :  { %2660 = vmatpush.bf16.msrb.mxu0 %v6679_v28  ;;  %2425 = vmatmul.bf16.vlgmr.msra.gmra.mxu1 %v7749_v52  ;;  %v1123_v28 = vadd.f32 %v1122_v62, %v7393_v20 }
 0x202   :  { %2439 = vmatmul.bf16.vlgmr.msra.gmra.mxu2 %v7755_v46  ;;  %2453 = vmatmul.bf16.vlgmr.msra.gmra.mxu3 %v7764_v41  ;;  %v1190_v52 = vpop.f32.mrf.mxu1  ;;  %v1195_v46 = vmax.f32 %v1149_v25, 0.0  ;;  %v1164_v41 = vpop.f32.mrf.mxu3 }
 0x203   :  { %2740 = vmatpush.bf16.msrb.mxu3 %v7549_v44  ;;  %v1191_v58 = vadd.f32 %v1190_v52, %v1177_v40  ;;  %v1137_v49 = vadd.f32 %v1136_v39, %v1123_v28  ;;  %v6687_v52 = vld [vmem:[#allocation12 + $0x78] sm:$0xff] }
 0x204   :  { %2674 = vmatpush.bf16.msrb.mxu1 %v6687_v52  ;;  %v6682_v52 = vld [vmem:[#allocation12 + $0x50] sm:$0xff] }
 0x205   :  { %2661 = vmatpush.bf16.msrb.mxu0 %v6678_v8  ;;  %v1165_v8 = vadd.f32 %v1164_v41, %v7405_v61  ;;  %v1196_v57 = vmax.f32 %v1191_v58, 0.0  ;;  %v1178_v20 = vpop.f32.mrf.mxu0  ;;  %v1151_v62 = vadd.f32 %v1150_v11, %v1137_v49  ;;  %v6673_v61 = vld [vmem:[#allocation12 + $0x8] sm:$0xff]  ;;  %v6686_v41 = vld [vmem:[#allocation12 + $0x70] sm:$0xff] }
 0x206   :  { %v6699_v58 = vld [vmem:[#allocation2 + $0x3c] sm:$0xf0]  ;;  %v5943_v49 = vld [vmem:[#allocation2 + $0x8] sm:$0xf] }
 0x207   :  { %2741 = vmatpush.bf16.msrb.mxu3 %v7564_v42  ;;  %v1199_v63 = vpack.c.bf16 %v1196_v57, %v1195_v46  ;;  %v1179_v0 = vadd.f32 %v1178_v20, %v1165_v8  ;;  %v1197_v39 = vmax.f32 %v1151_v62, 0.0  ;;  %v2216_v46 = vpop.f32.mrf.mxu2  ;;  %v8082_v8 = vld [vmem:[%s8862_s4] sm:$0x7]  ;;  %v8085_v57 = vor.u32 %v6699_v58, %v5943_v49 }
 0x208   :  { %2675 = vmatpush.bf16.msrb.mxu1 %v6686_v41  ;;  %v8089_v11 = vperm.slane %v8082_v8, 0  ;;  %v6684_v62 = vld [vmem:[#allocation12 + $0x60] sm:$0xff] }
 0x209   :  { %2662 = vmatpush.bf16.msrb.mxu0 %v6677_v15  ;;  %1201 = vst [vmem:[#allocation2 + $0x30] sm:$0xff] %v1199_v63  ;;  %v6674_v15 = vld [vmem:[#allocation12 + $0x10] sm:$0xff]  ;;  %v6685_v63 = vld [vmem:[#allocation12 + $0x68] sm:$0xff] }
 0x20a   :  { %v1192_v40 = vpop.f32.mrf.mxu1  ;;  %9334 = vst [vmem:[#allocation164_spill] sm:$0xff] %v8089_v11 }
 0x20b   :  { %2742 = vmatpush.bf16.msrb.mxu3 %v7575_v16  ;;  %v1193_v25 = vadd.f32 %v1192_v40, %v1179_v0  ;;  %v2217_v0 = vadd.f32 %v2216_v46, %v8089_v11 }
 0x20c   :  { %2676 = vmatpush.bf16.msrb.mxu1 %v6685_v63  ;;  %v6681_v63 = vld [vmem:[#allocation12 + $0x48] sm:$0xff] }
 0x20d   :  { %2663 = vmatpush.bf16.msrb.mxu0 %v6676_v32  ;;  %v1198_v59 = vmax.f32 %v1193_v25, 0.0  ;;  %v6672_v32 = vld [vmem:[#allocation12] sm:$0xff]  ;;  %v6683_v25 = vld [vmem:[#allocation12 + $0x58] sm:$0xff] }
 0x20f   :  { %2743 = vmatpush.bf16.msrb.mxu3 %v7583_v19  ;;  %v1200_v28 = vpack.c.bf16 %v1198_v59, %v1197_v39  ;;  %v2218_v20 = vpop.f32.mrf.mxu2 }
 0x210   :  { %2677 = vmatpush.bf16.msrb.mxu1 %v6684_v62 }
 0x211   :  { %2664 = vmatpush.bf16.msrb.mxu0 %v6675_v1  ;;  %1202 = vst [vmem:[#allocation2 + $0x68] sm:$0xff] %v1200_v28  ;;  %v2230_v1 = vpop.f32.mrf.mxu3 }
 0x212   :  { %v2231_v59 = vadd.f32 %v2230_v1, %v2217_v0 }
 0x213   :  { %2744 = vmatpush.bf16.msrb.mxu3 %v7592_v30 }
 0x214   :  { %2678 = vmatpush.bf16.msrb.mxu1 %v6683_v25 }
 0x215   :  { %2665 = vmatpush.bf16.msrb.mxu0 %v6674_v15 }
 0x217   :  { %2745 = vmatpush.bf16.msrb.mxu3 %v7601_v5 }
 0x218   :  { %2679 = vmatpush.bf16.msrb.mxu1 %v6682_v52 }
 0x219   :  { %2666 = vmatpush.bf16.msrb.mxu0 %v6673_v61  ;;  %v2232_v15 = vpop.f32.mrf.mxu3  ;;  %v2219_v61 = vadd.f32 %v2218_v20, %v8089_v11  ;;  %v9356_v11 = vld [vmem:[#allocation99_spill] sm:$0xff] }
 0x21b   :  { %2746 = vmatpush.bf16.msrb.mxu3 %v7610_v27  ;;  %v2233_v46 = vadd.f32 %v2232_v15, %v2219_v61  ;;  %v6680_v15 = vld [vmem:[#allocation12 + $0x40] sm:$0xff] }
 0x21c   :  { %2680 = vmatpush.bf16.msrb.mxu1 %v6681_v63  ;;  %v9336_v63 = vld [vmem:[#allocation40_spill] sm:$0xff] }
 0x21d   :  { %2667 = vmatpush.bf16.msrb.mxu0 %v6672_v32  ;;  %v2244_v40 = vpop.f32.mrf.mxu0 }
 0x21e   :  { %v2258_v39 = vpop.f32.mrf.mxu1  ;;  %v2245_v28 = vadd.f32 %v2244_v40, %v2231_v59 }
 0x21f   :  { %2747 = vmatpush.bf16.msrb.mxu3 %v7618_v51 }
 0x220   :  { %v2259_v49 = vadd.f32 %v2258_v39, %v2245_v28  ;;  %2681 = vmatpush.bf16.msrb.mxu1 %v6680_v15  ;;  %v6701_v28 = vld [vmem:[#allocation2 + $0x4c] sm:$0xf0]  ;;  %v9340_v15 = vld [vmem:[#allocation79_spill] sm:$0xff] }
 0x221   :  { %2754 = vmatpush.bf16.msra.mxu0 %v7552_v23 }
 0x222   :  { %2748 = vmatmul.bf16.vlgmr.msrb.gmra.mxu3 %v8085_v57 }
 0x223   :  { %2796 = vmatpush.bf16.msra.mxu3 %v7627_v24 }
 0x224   :  { %2768 = vmatpush.bf16.msra.mxu1 %v7623_v38  ;;  %v8135_v38 = vperm.slane %v8082_v8, 1 }
 0x225   :  { %2755 = vmatpush.bf16.msra.mxu0 %v7567_v48  ;;  %v2272_v32 = vpop.f32.mrf.mxu2  ;;  %v2246_v41 = vpop.f32.mrf.mxu0 }
 0x226   :  { %v2247_v1 = vadd.f32 %v2246_v41, %v2233_v46  ;;  %v2273_v20 = vadd.f32 %v2272_v32, %v2259_v49  ;;  %v2260_v62 = vpop.f32.mrf.mxu1  ;;  %v5959_v46 = vld [vmem:[#allocation2 + $0x18] sm:$0xf]  ;;  %v9335_v49 = vld [vmem:[#allocation41_spill] sm:$0xff]  ;;  %9354 = vst [vmem:[#allocation165_spill] sm:$0xff] %v8135_v38 }
 0x227   :  { %2797 = vmatpush.bf16.msra.mxu3 %v7646_v3  ;;  %v2286_v58 = vpop.f32.mrf.mxu3 }
 0x228   :  { %v2261_v0 = vadd.f32 %v2260_v62, %v2247_v1  ;;  %v2287_v25 = vadd.f32 %v2286_v58, %v2273_v20  ;;  %v8109_v58 = vor.u32 %v6701_v28, %v5959_v46  ;;  %2769 = vmatpush.bf16.msra.mxu1 %v9335_v49  ;;  %v6695_v1 = vld [vmem:[#allocation12 + $0xb8] sm:$0xff]  ;;  %v9337_v20 = vld [vmem:[#allocation75_spill] sm:$0xff]  ;;  %v9338_v62 = vld [vmem:[#allocation45_spill] sm:$0xff] }
 0x229   :  { %2756 = vmatpush.bf16.msra.mxu0 %v7578_v33  ;;  %2688 = vmatpush.bf16.msrb.mxu2 %v6695_v1  ;;  %v9344_v28 = vld [vmem:[#allocation53_spill] sm:$0xff]  ;;  %v9345_v46 = vld [vmem:[#allocation52_spill] sm:$0xff]  ;;  %v9346_v1 = vld [vmem:[#allocation87_spill] sm:$0xff] }
 0x22a   :  { %v2459_v32 = vmax.f32 %v2287_v25, 0.0  ;;  %v9341_v25 = vld [vmem:[#allocation49_spill] sm:$0xff] }
 0x22b   :  { %2798 = vmatpush.bf16.msra.mxu3 %v7662_v17  ;;  %v6700_v49 = vld [vmem:[#allocation2 + $0x44] sm:$0xf0] }
 0x22c   :  { %2770 = vmatpush.bf16.msra.mxu1 %v9338_v62 }
 0x22d   :  { %2757 = vmatpush.bf16.msra.mxu0 %v7586_v29  ;;  %v2274_v40 = vpop.f32.mrf.mxu2  ;;  %v9358_v29 = vld [vmem:[#allocation68_spill] sm:$0xff] }
 0x22e   :  { %v2275_v59 = vadd.f32 %v2274_v40, %v2261_v0  ;;  %v6694_v0 = vld [vmem:[#allocation12 + $0xb0] sm:$0xff]  ;;  %v9339_v40 = vld [vmem:[#allocation44_spill] sm:$0xff] }
 0x22f   :  { %2799 = vmatpush.bf16.msra.mxu3 %v7674_v22  ;;  %v2288_v61 = vpop.f32.mrf.mxu3  ;;  %2689 = vmatpush.bf16.msrb.mxu2 %v6694_v0 }
 0x230   :  { %v2289_v39 = vadd.f32 %v2288_v61, %v2275_v59  ;;  %2771 = vmatpush.bf16.msra.mxu1 %v9341_v25  ;;  %v6693_v59 = vld [vmem:[#allocation12 + $0xa8] sm:$0xff]  ;;  %v9350_v25 = vld [vmem:[#allocation61_spill] sm:$0xff] }
 0x231   :  { %2758 = vmatpush.bf16.msra.mxu0 %v7595_v47  ;;  %v9342_v61 = vld [vmem:[#allocation48_spill] sm:$0xff] }
 0x232   :  { %v2462_v52 = vmax.f32 %v2289_v39, 0.0  ;;  %v9343_v39 = vld [vmem:[#allocation83_spill] sm:$0xff] }
 0x233   :  { %2800 = vmatpush.bf16.msra.mxu3 %v7686_v14  ;;  %2690 = vmatpush.bf16.msrb.mxu2 %v6693_v59  ;;  %v9348_v59 = vld [vmem:[#allocation56_spill] sm:$0xff] }
 0x234   :  { %v2465_v41 = vpack.c.bf16 %v2462_v52, %v2459_v32  ;;  %2772 = vmatpush.bf16.msra.mxu1 %v9344_v28  ;;  %v6692_v32 = vld [vmem:[#allocation12 + $0xa0] sm:$0xff]  ;;  %v5945_v52 = vld [vmem:[#allocation2 + $0x40] sm:$0xf0] }
 0x235   :  { %2759 = vmatpush.bf16.msra.mxu0 %v7604_v6  ;;  %v9349_v28 = vld [vmem:[#allocation91_spill] sm:$0xff] }
 0x236   :  { %2668 = vmatmul.bf16.vlgmr.msrb.gmra.mxu0 %v2465_v41  ;;  %v6696_v41 = vld [vmem:[#allocation2 + $0xc] sm:$0xf] }
 0x237   :  { %2801 = vmatpush.bf16.msra.mxu3 %v7698_v2  ;;  %2691 = vmatpush.bf16.msrb.mxu2 %v6692_v32  ;;  %v8124_v0 = vor.u32 %v6696_v41, %v5945_v52  ;;  %v9351_v32 = vld [vmem:[#allocation60_spill] sm:$0xff]  ;;  %v9352_v52 = vld [vmem:[#allocation95_spill] sm:$0xff]  ;;  %v9353_v41 = vld [vmem:[#allocation65_spill] sm:$0xff] }
 0x239   :  { %2760 = vmatpush.bf16.msra.mxu0 %v7613_v12  ;;  %v9357_v12 = vld [vmem:[#allocation103_spill] sm:$0xff] }
 0x23b   :  { %2802 = vmatpush.bf16.msra.mxu3 %v7712_v26 }
 0x23d   :  { %2761 = vmatpush.bf16.msra.mxu0 %v7621_v35  ;;  %v6688_v35 = vld [vmem:[#allocation12 + $0x80] sm:$0xff] }
 0x23e   :  { %v2314_v62 = vpop.f32.mrf.mxu1 }
 0x23f   :  { %2803 = vmatpush.bf16.msra.mxu3 %v7724_v31 }
 0x241   :  { %2810 = vmatpush.bf16.msrb.mxu0 %v9336_v63  ;;  %v6691_v63 = vld [vmem:[#allocation12 + $0x98] sm:$0xff] }
 0x242   :  { %2804 = vmatmul.bf16.vlgmr.msra.gmra.mxu3 %v8109_v58  ;;  %2692 = vmatpush.bf16.msrb.mxu2 %v6691_v63  ;;  %v9355_v63 = vld [vmem:[#allocation64_spill] sm:$0xff] }
 0x243   :  { %2852 = vmatpush.bf16.msrb.mxu3 %v7733_v37 }
 0x245   :  { %2811 = vmatpush.bf16.msrb.mxu0 %v9339_v40  ;;  %v9347_v40 = vld [vmem:[#allocation57_spill] sm:$0xff] }
 0x246   :  { %2773 = vmatpush.bf16.msra.mxu1 %v9347_v40  ;;  %2762 = vmatmul.bf16.vlgmr.msra.gmra.mxu0 %v8124_v0  ;;  %v6689_v40 = vld [vmem:[#allocation12 + $0x88] sm:$0xff]  ;;  %v2316_v47 = vpop.f32.mrf.mxu1 }
 0x247   :  { %2853 = vmatpush.bf16.msrb.mxu3 %v9337_v20 }
 0x249   :  { %2812 = vmatpush.bf16.msrb.mxu0 %v9342_v61  ;;  %v2300_v61 = vpop.f32.mrf.mxu0 }
 0x24a   :  { %2774 = vmatpush.bf16.msra.mxu1 %v9350_v25  ;;  %v5951_v25 = vld [vmem:[#allocation2 + $0x10] sm:$0xf] }
 0x24b   :  { %2854 = vmatpush.bf16.msrb.mxu3 %v9340_v15 }
 0x24d   :  { %2813 = vmatpush.bf16.msrb.mxu0 %v9345_v46  ;;  %v6690_v46 = vld [vmem:[#allocation12 + $0x90] sm:$0xff] }
 0x24e   :  { %2693 = vmatpush.bf16.msrb.mxu2 %v6690_v46  ;;  %2775 = vmatpush.bf16.msra.mxu1 %v9353_v41  ;;  %v8140_v46 = vor.u32 %v6700_v49, %v5951_v25  ;;  %v2301_v41 = vadd.f32 %v2300_v61, %v8135_v38  ;;  %v2342_v49 = vpop.f32.mrf.mxu3 }
 0x24f   :  { %2855 = vmatpush.bf16.msrb.mxu3 %v9343_v39 }
 0x250   :  { %v2315_v25 = vadd.f32 %v2314_v62, %v2301_v41  ;;  %v9367_v62 = vld [vmem:[#allocation46_spill] sm:$0xff] }
 0x251   :  { %2814 = vmatpush.bf16.msrb.mxu0 %v9348_v59  ;;  %v2328_v59 = vpop.f32.mrf.mxu2  ;;  %v2302_v6 = vpop.f32.mrf.mxu0 }
 0x252   :  { %2694 = vmatpush.bf16.msrb.mxu2 %v6689_v40  ;;  %v9359_v40 = vld [vmem:[#allocation72_spill] sm:$0xff]  ;;  %v2303_v61 = vadd.f32 %v2302_v6, %v8135_v38  ;;  %v2329_v48 = vadd.f32 %v2328_v59, %v2315_v25  ;;  %v9369_v25 = vld [vmem:[#allocation119_spill] sm:$0xff] }
 0x253   :  { %2856 = vmatpush.bf16.msrb.mxu3 %v9346_v1  ;;  %v9366_v1 = vld [vmem:[#allocation115_spill] sm:$0xff] }
 0x255   :  { %2815 = vmatpush.bf16.msrb.mxu0 %v9351_v32  ;;  %v5961_v32 = vld [vmem:[#allocation2 + $0x50] sm:$0xf0] }
 0x256   :  { %2695 = vmatpush.bf16.msrb.mxu2 %v6688_v35  ;;  %v2317_v35 = vadd.f32 %v2316_v47, %v2303_v61  ;;  %v2344_v41 = vpop.f32.mrf.mxu3 }
 0x257   :  { %2857 = vmatpush.bf16.msrb.mxu3 %v9349_v28  ;;  %v9364_v28 = vld [vmem:[#allocation42_spill] sm:$0xff] }
 0x259   :  { %2816 = vmatpush.bf16.msrb.mxu0 %v9355_v63  ;;  %v6698_v63 = vld [vmem:[#allocation2 + $0x1c] sm:$0xf] }
 0x25a   :  { %v8146_v33 = vor.u32 %v6698_v63, %v5961_v32  ;;  %v2330_v32 = vpop.f32.mrf.mxu2 }
 0x25b   :  { %2858 = vmatpush.bf16.msrb.mxu3 %v9352_v52  ;;  %v9362_v52 = vld [vmem:[#allocation76_spill] sm:$0xff]  ;;  %v2331_v23 = vadd.f32 %v2330_v32, %v2317_v35  ;;  %v9373_v32 = vld [vmem:[#allocation54_spill] sm:$0xff] }
 0x25c   :  { %v9374_v35 = vld [vmem:[#allocation92_spill] sm:$0xff] }
 0x25d   :  { %2817 = vmatpush.bf16.msrb.mxu0 %v9358_v29  ;;  %v9363_v29 = vld [vmem:[#allocation111_spill] sm:$0xff]  ;;  %v2356_v63 = vpop.f32.mrf.mxu0  ;;  %v2345_v59 = vadd.f32 %v2344_v41, %v2331_v23  ;;  %v9375_v41 = vld [vmem:[#allocation58_spill] sm:$0xff] }
 0x25f   :  { %2859 = vmatpush.bf16.msrb.mxu3 %v9356_v11  ;;  %v9360_v11 = vld [vmem:[#allocation107_spill] sm:$0xff] }
 0x260   :  { %2818 = vmatmul.bf16.vlgmr.msrb.gmra.mxu0 %v8146_v33 }
 0x261   :  { %2866 = vmatpush.bf16.msra.mxu0 %v9359_v40  ;;  %v2370_v40 = vpop.f32.mrf.mxu1 }
 0x262   :  { %2860 = vmatmul.bf16.vlgmr.msrb.gmra.mxu3 %v8140_v46 }
 0x263   :  { %2908 = vmatpush.bf16.msra.mxu3 %v9357_v12  ;;  %v9361_v12 = vld [vmem:[#allocation38_spill] sm:$0xff] }
 0x264   :  { %2782 = vmatpush.bf16.msra.mxu2 %v9361_v12  ;;  %v2343_v12 = vadd.f32 %v2342_v49, %v2329_v48  ;;  %v9372_v49 = vld [vmem:[#allocation123_spill] sm:$0xff] }
 0x265   :  { %2867 = vmatpush.bf16.msra.mxu0 %v9362_v52  ;;  %v9368_v52 = vld [vmem:[#allocation84_spill] sm:$0xff]  ;;  %v2358_v38 = vpop.f32.mrf.mxu0 }
 0x266   :  { %v2357_v6 = vadd.f32 %v2356_v63, %v2343_v12  ;;  %v2359_v61 = vadd.f32 %v2358_v38, %v2345_v59  ;;  %v9376_v38 = vld [vmem:[#allocation69_spill] sm:$0xff]  ;;  %v9378_v59 = vld [vmem:[#allocation62_spill] sm:$0xff] }
 0x267   :  { %2909 = vmatpush.bf16.msra.mxu3 %v9360_v11  ;;  %v9365_v11 = vld [vmem:[#allocation80_spill] sm:$0xff] }
 0x268   :  { %2783 = vmatpush.bf16.msra.mxu2 %v9364_v28  ;;  %v9370_v28 = vld [vmem:[#allocation50_spill] sm:$0xff]  ;;  %v2371_v47 = vadd.f32 %v2370_v40, %v2357_v6  ;;  %v2384_v40 = vpop.f32.mrf.mxu2  ;;  %v9377_v6 = vld [vmem:[#allocation96_spill] sm:$0xff] }
 0x269   :  { %2868 = vmatpush.bf16.msra.mxu0 %v9365_v11  ;;  %v9371_v11 = vld [vmem:[#allocation88_spill] sm:$0xff] }
 0x26a   :  { %v2460_v12 = vmax.f32 %v2371_v47, 0.0  ;;  %v5953_v47 = vld [vmem:[#allocation2 + $0x48] sm:$0xf0] }
 0x26b   :  { %2910 = vmatpush.bf16.msra.mxu3 %v9363_v29  ;;  %v2372_v29 = vpop.f32.mrf.mxu1 }
 0x26c   :  { %2784 = vmatpush.bf16.msra.mxu2 %v9367_v62  ;;  %v2373_v48 = vadd.f32 %v2372_v29, %v2359_v61  ;;  %v2398_v29 = vpop.f32.mrf.mxu3  ;;  %v9379_v61 = vld [vmem:[#allocation73_spill] sm:$0xff] }
 0x26d   :  { %2869 = vmatpush.bf16.msra.mxu0 %v9368_v52  ;;  %v9390_v62 = vld [vmem:[#allocation89_spill] sm:$0xff] }
 0x26e   :  { %v2463_v63 = vmax.f32 %v2373_v48, 0.0  ;;  %v9380_v48 = vld [vmem:[#allocation100_spill] sm:$0xff] }
 0x26f   :  { %2911 = vmatpush.bf16.msra.mxu3 %v9366_v1 }
 0x270   :  { %2785 = vmatpush.bf16.msra.mxu2 %v9370_v28  ;;  %v2466_v23 = vpack.c.bf16 %v2463_v63, %v2460_v12  ;;  %v6697_v12 = vld [vmem:[#allocation2 + $0x14] sm:$0xf]  ;;  %v2386_v52 = vpop.f32.mrf.mxu2 }
 0x271   :  { %2870 = vmatpush.bf16.msra.mxu0 %v9371_v11  ;;  %v9381_v63 = vld [vmem:[#allocation66_spill] sm:$0xff]  ;;  %v9384_v11 = vld [vmem:[#allocation77_spill] sm:$0xff] }
 0x272   :  { %2682 = vmatmul.bf16.vlgmr.msrb.gmra.mxu1 %v2466_v23  ;;  %v9382_v23 = vld [vmem:[#allocation104_spill] sm:$0xff] }
 0x273   :  { %2912 = vmatpush.bf16.msra.mxu3 %v9369_v25  ;;  %2824 = vmatpush.bf16.msrb.mxu1 %v9376_v38 }
 0x274   :  { %2786 = vmatpush.bf16.msra.mxu2 %v9373_v32  ;;  %v2400_v38 = vpop.f32.mrf.mxu3 }
 0x275   :  { %2871 = vmatpush.bf16.msra.mxu0 %v9374_v35  ;;  %v8181_v35 = vperm.slane %v8082_v8, 2  ;;  %v9387_v8 = vld [vmem:[#allocation112_spill] sm:$0xff] }
 0x277   :  { %2913 = vmatpush.bf16.msra.mxu3 %v9372_v49  ;;  %2825 = vmatpush.bf16.msrb.mxu1 %v9379_v61  ;;  %9383 = vst [vmem:[#allocation166_spill] sm:$0xff] %v8181_v35  ;;  %v2385_v61 = vadd.f32 %v2384_v40, %v8181_v35 }
 0x278   :  { %2787 = vmatpush.bf16.msra.mxu2 %v9375_v41 }
 0x279   :  { %2872 = vmatpush.bf16.msra.mxu0 %v9377_v6  ;;  %v8178_v6 = vor.u32 %v6697_v12, %v5953_v47  ;;  %v2399_v12 = vadd.f32 %v2398_v29, %v2385_v61 }
 0x27b   :  { %2914 = vmatpush.bf16.msra.mxu3 %v7941_v9  ;;  %2826 = vmatpush.bf16.msrb.mxu1 %v9384_v11  ;;  %v9388_v11 = vld [vmem:[#allocation85_spill] sm:$0xff] }
 0x27c   :  { %2788 = vmatpush.bf16.msra.mxu2 %v9378_v59  ;;  %v9386_v59 = vld [vmem:[#allocation81_spill] sm:$0xff] }
 0x27d   :  { %2873 = vmatpush.bf16.msra.mxu0 %v9380_v48  ;;  %v9385_v48 = vld [vmem:[#allocation108_spill] sm:$0xff] }
 0x27e   :  { %v2426_v47 = vpop.f32.mrf.mxu1 }
 0x27f   :  { %2915 = vmatpush.bf16.msra.mxu3 %v7953_v21  ;;  %2827 = vmatpush.bf16.msrb.mxu1 %v9386_v59 }
 0x280   :  { %2789 = vmatpush.bf16.msra.mxu2 %v9381_v63  ;;  %2874 = vmatmul.bf16.vlgmr.msra.gmra.mxu0 %v8178_v6  ;;  %v2412_v63 = vpop.f32.mrf.mxu0 }
 0x281   :  { %2922 = vmatpush.bf16.msrb.mxu0 %v9382_v23  ;;  %v2387_v23 = vadd.f32 %v2386_v52, %v8181_v35  ;;  %v2413_v41 = vadd.f32 %v2412_v63, %v2399_v12  ;;  %v9391_v52 = vld [vmem:[#allocation120_spill] sm:$0xff] }
 0x282   :  { %2916 = vmatmul.bf16.vlgmr.msra.gmra.mxu3 %v8085_v57  ;;  %2776 = vmatmul.bf16.vlgmr.msra.gmra.mxu1 %v8140_v46 }
 0x283   :  { %2964 = vmatpush.bf16.msrb.mxu3 %v7962_v36  ;;  %2828 = vmatpush.bf16.msrb.mxu1 %v9388_v11  ;;  %v2401_v32 = vadd.f32 %v2400_v38, %v2387_v23  ;;  %v9392_v11 = vld [vmem:[#allocation93_spill] sm:$0xff] }
 0x285   :  { %2923 = vmatpush.bf16.msrb.mxu0 %v9385_v48  ;;  %v2440_v40 = vpop.f32.mrf.mxu2  ;;  %v9389_v48 = vld [vmem:[#allocation116_spill] sm:$0xff]  ;;  %v2454_v59 = vpop.f32.mrf.mxu3 }
 0x286   :  { %v2428_v61 = vpop.f32.mrf.mxu1 }
 0x287   :  { %2965 = vmatpush.bf16.msrb.mxu3 %v7977_v60  ;;  %2829 = vmatpush.bf16.msrb.mxu1 %v9390_v62  ;;  %v9394_v62 = vld [vmem:[#allocation97_spill] sm:$0xff] }
 0x288   :  { %v2414_v28 = vpop.f32.mrf.mxu0 }
 0x289   :  { %2924 = vmatpush.bf16.msrb.mxu0 %v9387_v8  ;;  %v2415_v8 = vadd.f32 %v2414_v28, %v2401_v32  ;;  %v9395_v32 = vld [vmem:[#allocation101_spill] sm:$0xff] }
 0x28b   :  { %2966 = vmatpush.bf16.msrb.mxu3 %v7993_v10  ;;  %2830 = vmatpush.bf16.msrb.mxu1 %v9392_v11  ;;  %v2429_v63 = vadd.f32 %v2428_v61, %v2415_v8  ;;  %v9396_v8 = vld [vmem:[#allocation105_spill] sm:$0xff]  ;;  %v9401_v61 = vld [vmem:[#allocation74_spill] sm:$0xff] }
 0x28d   :  { %2925 = vmatpush.bf16.msrb.mxu0 %v9389_v48  ;;  %v2442_v12 = vpop.f32.mrf.mxu2  ;;  %v9393_v48 = vld [vmem:[#allocation124_spill] sm:$0xff]  ;;  %v2456_v35 = vpop.f32.mrf.mxu3 }
 0x28e   :  { %v2443_v23 = vadd.f32 %v2442_v12, %v2429_v63  ;;  %v9403_v63 = vld [vmem:[#allocation143_spill] sm:$0xff]  ;;  %v9404_v12 = vld [vmem:[#allocation78_spill] sm:$0xff] }
 0x28f   :  { %2967 = vmatpush.bf16.msrb.mxu3 %v8005_v7  ;;  %v2427_v7 = vadd.f32 %v2426_v47, %v2413_v41  ;;  %2831 = vmatpush.bf16.msrb.mxu1 %v9394_v62 }
 0x290   :  { %v2457_v28 = vadd.f32 %v2456_v35, %v2443_v23  ;;  %v9398_v35 = vld [vmem:[#allocation70_spill] sm:$0xff]  ;;  %v9406_v23 = vld [vmem:[#allocation147_spill] sm:$0xff] }
 0x291   :  { %2926 = vmatpush.bf16.msrb.mxu0 %v9391_v52  ;;  %v2441_v29 = vadd.f32 %v2440_v40, %v2427_v7  ;;  %v9399_v40 = vld [vmem:[#allocation109_spill] sm:$0xff] }
 0x292   :  { %v2464_v41 = vmax.f32 %v2457_v28, 0.0  ;;  %2832 = vmatmul.bf16.vlgmr.msrb.gmra.mxu1 %v8085_v57  ;;  %v9402_v57 = vld [vmem:[#allocation113_spill] sm:$0xff]  ;;  %v9407_v28 = vld [vmem:[#allocation82_spill] sm:$0xff] }
 0x293   :  { %2968 = vmatpush.bf16.msrb.mxu3 %v8017_v43  ;;  %v2455_v38 = vadd.f32 %v2454_v59, %v2441_v29  ;;  %2880 = vmatpush.bf16.msra.mxu1 %v9395_v32  ;;  %v9397_v59 = vld [vmem:[#allocation135_spill] sm:$0xff] }
 0x294   :  { %v9400_v29 = vld [vmem:[#allocation139_spill] sm:$0xff] }
 0x295   :  { %2927 = vmatpush.bf16.msrb.mxu0 %v9393_v48  ;;  %v2461_v7 = vmax.f32 %v2455_v38, 0.0  ;;  %v9405_v38 = vld [vmem:[#allocation117_spill] sm:$0xff] }
 0x297   :  { %2969 = vmatpush.bf16.msrb.mxu3 %v8029_v34  ;;  %v2467_v47 = vpack.c.bf16 %v2464_v41, %v2461_v7  ;;  %2881 = vmatpush.bf16.msra.mxu1 %v9396_v8  ;;  %v9408_v7 = vld [vmem:[#allocation121_spill] sm:$0xff]  ;;  %v9409_v41 = vld [vmem:[#allocation151_spill] sm:$0xff] }
 0x299   :  { %2928 = vmatpush.bf16.msrb.mxu0 %v7944_v45  ;;  %2696 = vmatmul.bf16.vlgmr.msrb.gmra.mxu2 %v2467_v47  ;;  %v9410_v47 = vld [vmem:[#allocation86_spill] sm:$0xff] }
 0x29a   :  { %2838 = vmatpush.bf16.msrb.mxu2 %v9398_v35 }
 0x29b   :  { %2970 = vmatpush.bf16.msrb.mxu3 %v8041_v53  ;;  %2882 = vmatpush.bf16.msra.mxu1 %v9399_v40 }
 0x29d   :  { %2929 = vmatpush.bf16.msrb.mxu0 %v7956_v54  ;;  %v9414_v54 = vld [vmem:[#allocation132_spill] sm:$0xff] }
 0x29e   :  { %2839 = vmatpush.bf16.msrb.mxu2 %v9401_v61 }
 0x29f   :  { %2971 = vmatpush.bf16.msrb.mxu3 %v8053_v4  ;;  %2883 = vmatpush.bf16.msra.mxu1 %v9402_v57 }
 0x2a0   :  { %2930 = vmatmul.bf16.vlgmr.msrb.gmra.mxu0 %v8124_v0 }
 0x2a1   :  { %2978 = vmatpush.bf16.msra.mxu0 %v9397_v59  ;;  %v9413_v59 = vld [vmem:[#allocation128_spill] sm:$0xff] }
 0x2a2   :  { %2972 = vmatmul.bf16.vlgmr.msrb.gmra.mxu3 %v8109_v58  ;;  %2840 = vmatpush.bf16.msrb.mxu2 %v9404_v12 }
 0x2a3   :  { %2884 = vmatpush.bf16.msra.mxu1 %v9405_v38 }
 0x2a5   :  { %2979 = vmatpush.bf16.msra.mxu0 %v9400_v29  ;;  %v9411_v29 = vld [vmem:[#allocation125_spill] sm:$0xff] }
 0x2a6   :  { %2841 = vmatpush.bf16.msrb.mxu2 %v9407_v28 }
 0x2a7   :  { %2885 = vmatpush.bf16.msra.mxu1 %v9408_v7  ;;  %v9416_v7 = vld [vmem:[#allocation136_spill] sm:$0xff] }
 0x2a9   :  { %2980 = vmatpush.bf16.msra.mxu0 %v9403_v63  ;;  %2790 = vmatmul.bf16.vlgmr.msra.gmra.mxu2 %v8178_v6  ;;  %v9412_v63 = vld [vmem:[#allocation90_spill] sm:$0xff] }
 0x2aa   :  { %2842 = vmatpush.bf16.msrb.mxu2 %v9410_v47 }
 0x2ab   :  { %2886 = vmatpush.bf16.msra.mxu1 %v9411_v29  ;;  %v9419_v29 = vld [vmem:[#allocation140_spill] sm:$0xff] }
 0x2ad   :  { %2981 = vmatpush.bf16.msra.mxu0 %v9406_v23  ;;  %v9415_v23 = vld [vmem:[#allocation94_spill] sm:$0xff] }
 0x2ae   :  { %2843 = vmatpush.bf16.msrb.mxu2 %v9412_v63 }
 0x2af   :  { %2887 = vmatpush.bf16.msra.mxu1 %v9413_v59 }
 0x2b1   :  { %2982 = vmatpush.bf16.msra.mxu0 %v9409_v41  ;;  %v9417_v41 = vld [vmem:[#allocation98_spill] sm:$0xff] }
 0x2b2   :  { %2844 = vmatpush.bf16.msrb.mxu2 %v9415_v23  ;;  %2888 = vmatmul.bf16.vlgmr.msra.gmra.mxu1 %v8109_v58  ;;  %v9421_v58 = vld [vmem:[#allocation144_spill] sm:$0xff] }
 0x2b3   :  { %2936 = vmatpush.bf16.msrb.mxu1 %v9414_v54 }
 0x2b5   :  { %2983 = vmatpush.bf16.msra.mxu0 %v8032_v55  ;;  %v9418_v55 = vld [vmem:[#allocation102_spill] sm:$0xff] }
 0x2b6   :  { %2845 = vmatpush.bf16.msrb.mxu2 %v9417_v41 }
 0x2b7   :  { %2937 = vmatpush.bf16.msrb.mxu1 %v9416_v7  ;;  %v9423_v7 = vld [vmem:[#allocation148_spill] sm:$0xff] }
 0x2b9   :  { %2984 = vmatpush.bf16.msra.mxu0 %v8044_v50  ;;  %2846 = vmatmul.bf16.vlgmr.msrb.gmra.mxu2 %v8124_v0  ;;  %v9420_v50 = vld [vmem:[#allocation106_spill] sm:$0xff] }
 0x2ba   :  { %2894 = vmatpush.bf16.msra.mxu2 %v9418_v55  ;;  %v9426_v0 = vld [vmem:[#allocation118_spill] sm:$0xff] }
 0x2bb   :  { %2938 = vmatpush.bf16.msrb.mxu1 %v9419_v29  ;;  %v9425_v29 = vld [vmem:[#allocation152_spill] sm:$0xff] }
 0x2bd   :  { %2985 = vmatpush.bf16.msra.mxu0 %v8056_v18  ;;  %v9422_v18 = vld [vmem:[#allocation110_spill] sm:$0xff] }
 0x2be   :  { %2895 = vmatpush.bf16.msra.mxu2 %v9420_v50 }
 0x2bf   :  { %2939 = vmatpush.bf16.msrb.mxu1 %v9421_v58 }
 0x2c0   :  { %2986 = vmatmul.bf16.vlgmr.msra.gmra.mxu0 %v8146_v33 }
 0x2c1   :  { %3277 = vmatpush.bf16.msrb.mxu0 %v7549_v44  ;;  %v9424_v44 = vld [vmem:[#allocation114_spill] sm:$0xff] }
 0x2c2   :  { %2896 = vmatpush.bf16.msra.mxu2 %v9422_v18 }
 0x2c3   :  { %2940 = vmatpush.bf16.msrb.mxu1 %v9423_v7 }
 0x2c5   :  { %3278 = vmatpush.bf16.msrb.mxu0 %v7564_v42  ;;  %v9427_v42 = vld [vmem:[#allocation122_spill] sm:$0xff] }
 0x2c6   :  { %2897 = vmatpush.bf16.msra.mxu2 %v9424_v44 }
 0x2c7   :  { %2941 = vmatpush.bf16.msrb.mxu1 %v9425_v29  ;;  %v9429_v29 = vld [vmem:[#allocation129_spill] sm:$0xff] }
 0x2c9   :  { %3279 = vmatpush.bf16.msrb.mxu0 %v7575_v16  ;;  %v9428_v16 = vld [vmem:[#allocation126_spill] sm:$0xff] }
 0x2ca   :  { %2898 = vmatpush.bf16.msra.mxu2 %v9426_v0 }
 0x2cb   :  { %2942 = vmatpush.bf16.msrb.mxu1 %v8035_v13 }
 0x2cd   :  { %3280 = vmatpush.bf16.msrb.mxu0 %v7583_v19  ;;  %v6729_v19 = vld [vmem:[#allocation2 + $0x44] sm:$0xf0] }
 0x2ce   :  { %2899 = vmatpush.bf16.msra.mxu2 %v9427_v42 }
 0x2cf   :  { %2943 = vmatpush.bf16.msrb.mxu1 %v8047_v56 }
 0x2d1   :  { %3281 = vmatpush.bf16.msrb.mxu0 %v7592_v30  ;;  %v6063_v30 = vld [vmem:[#allocation2 + $0x10] sm:$0xf] }
 0x2d2   :  { %2900 = vmatpush.bf16.msra.mxu2 %v9428_v16  ;;  %2944 = vmatmul.bf16.vlgmr.msrb.gmra.mxu1 %v8140_v46  ;;  %v8263_v13 = vor.u32 %v6729_v19, %v6063_v30  ;;  %v9432_v46 = vld [vmem:[#allocation141_spill] sm:$0xff]  ;;  %v6709_v30 = vld [vmem:[#allocation12 + $0xf8] sm:$0xff] }
 0x2d3   :  { %v9434_v19 = vld [vmem:[#allocation149_spill] sm:$0xff]  ;;  %3193 = vmatpush.bf16.msra.mxu1 %v6709_v30 }
 0x2d5   :  { %3282 = vmatpush.bf16.msrb.mxu0 %v7601_v5  ;;  %v9430_v5 = vld [vmem:[#allocation133_spill] sm:$0xff] }
 0x2d6   :  { %2901 = vmatpush.bf16.msra.mxu2 %v9429_v29 }
 0x2d9   :  { %3283 = vmatpush.bf16.msrb.mxu0 %v7610_v27  ;;  %2902 = vmatmul.bf16.vlgmr.msra.gmra.mxu2 %v8146_v33  ;;  %v9431_v27 = vld [vmem:[#allocation137_spill] sm:$0xff] }
 0x2da   :  { %2950 = vmatpush.bf16.msrb.mxu2 %v9430_v5  ;;  %v9435_v33 = vld [vmem:[#allocation153_spill] sm:$0xff] }
 0x2dd   :  { %3284 = vmatpush.bf16.msrb.mxu0 %v7618_v51  ;;  %v9433_v51 = vld [vmem:[#allocation145_spill] sm:$0xff] }
 0x2de   :  { %2951 = vmatpush.bf16.msrb.mxu2 %v9431_v27 }
 0x2e0   :  { %3285 = vmatmul.bf16.vlgmr.msrb.gmra.mxu0 %v8263_v13 }
 0x2e1   :  { %3333 = vmatpush.bf16.msra.mxu0 %v7627_v24  ;;  %v6707_v24 = vld [vmem:[#allocation12 + $0xe8] sm:$0xff] }
 0x2e2   :  { %2952 = vmatpush.bf16.msrb.mxu2 %v9432_v46 }
 0x2e5   :  { %3334 = vmatpush.bf16.msra.mxu0 %v7646_v3  ;;  %v6708_v3 = vld [vmem:[#allocation12 + $0xf0] sm:$0xff] }
 0x2e6   :  { %2953 = vmatpush.bf16.msrb.mxu2 %v9433_v51  ;;  %3194 = vmatpush.bf16.msra.mxu1 %v6708_v3  ;;  %v6706_v51 = vld [vmem:[#allocation12 + $0xe0] sm:$0xff] }
 0x2e9   :  { %3335 = vmatpush.bf16.msra.mxu0 %v7662_v17  ;;  %v9436_v17 = vld [vmem:[#allocation157_spill] sm:$0xff] }
 0x2ea   :  { %2954 = vmatpush.bf16.msrb.mxu2 %v9434_v19  ;;  %3195 = vmatpush.bf16.msra.mxu1 %v6707_v24  ;;  %v9437_v19 = vld [vmem:[#allocation161_spill] sm:$0xff] }
 0x2eb   :  { %v6704_v24 = vld [vmem:[#allocation12 + $0xd0] sm:$0xff] }
 0x2ed   :  { %3336 = vmatpush.bf16.msra.mxu0 %v7674_v22  ;;  %v6731_v22 = vld [vmem:[#allocation2 + $0x54] sm:$0xf0] }
 0x2ee   :  { %2955 = vmatpush.bf16.msrb.mxu2 %v9435_v33  ;;  %3196 = vmatpush.bf16.msra.mxu1 %v6706_v51  ;;  %v9439_v51 = vld [vmem:[#allocation22_spill] sm:$0xff] }
 0x2ef   :  { %v2683_v3 = vpop.f32.mrf.mxu1  ;;  %v9461_v33 = vld [vmem:[#allocation146_spill] sm:$0xff] }
 0x2f1   :  { %3337 = vmatpush.bf16.msra.mxu0 %v7686_v14  ;;  %v6079_v14 = vld [vmem:[#allocation2 + $0x20] sm:$0xf] }
 0x2f2   :  { %2956 = vmatpush.bf16.msrb.mxu2 %v9436_v17  ;;  %v8283_v30 = vor.u32 %v6731_v22, %v6079_v14  ;;  %v6705_v17 = vld [vmem:[#allocation12 + $0xd8] sm:$0xff]  ;;  %v6703_v22 = vld [vmem:[#allocation12 + $0xc8] sm:$0xff]  ;;  %v9438_v14 = vld [vmem:[#allocation87_spill] sm:$0xff] }
 0x2f3   :  { %3197 = vmatpush.bf16.msra.mxu1 %v6705_v17  ;;  %v6730_v17 = vld [vmem:[#allocation2 + $0x4c] sm:$0xf0] }
 0x2f5   :  { %3338 = vmatpush.bf16.msra.mxu0 %v7698_v2  ;;  %v2669_v2 = vpop.f32.mrf.mxu0 }
 0x2f6   :  { %2957 = vmatpush.bf16.msrb.mxu2 %v9437_v19  ;;  %v6723_v19 = vld [vmem:[#allocation12 + $0x168] sm:$0xff] }
 0x2f7   :  { %3198 = vmatpush.bf16.msra.mxu1 %v6704_v24  ;;  %v9444_v24 = vld [vmem:[#allocation99_spill] sm:$0xff] }
 0x2f9   :  { %3339 = vmatpush.bf16.msra.mxu0 %v7712_v26  ;;  %2958 = vmatmul.bf16.vlgmr.msrb.gmra.mxu2 %v8178_v6  ;;  %v2684_v26 = vadd.f32 %v2683_v3, %v2669_v2  ;;  %v9440_v6 = vld [vmem:[#allocation91_spill] sm:$0xff]  ;;  %v9441_v2 = vld [vmem:[#allocation24_spill] sm:$0xff] }
 0x2fa   :  { %v9442_v3 = vld [vmem:[#allocation95_spill] sm:$0xff] }
 0x2fb   :  { %3199 = vmatpush.bf16.msra.mxu1 %v6703_v22  ;;  %v9445_v22 = vld [vmem:[#allocation103_spill] sm:$0xff] }
 0x2fd   :  { %3340 = vmatpush.bf16.msra.mxu0 %v7724_v31 }
 0x300   :  { %3341 = vmatmul.bf16.vlgmr.msra.gmra.mxu0 %v8283_v30 }
 0x301   :  { %3389 = vmatpush.bf16.msrb.mxu0 %v7733_v37  ;;  %v6702_v37 = vld [vmem:[#allocation12 + $0xc0] sm:$0xff] }
 0x302   :  { %3200 = vmatpush.bf16.msra.mxu1 %v6702_v37  ;;  %v9446_v37 = vld [vmem:[#allocation28_spill] sm:$0xff] }
 0x305   :  { %3390 = vmatpush.bf16.msrb.mxu0 %v9337_v20  ;;  %v6717_v20 = vld [vmem:[#allocation12 + $0x138] sm:$0xff] }
 0x306   :  { %3291 = vmatpush.bf16.msrb.mxu1 %v9439_v51  ;;  %3207 = vmatpush.bf16.msra.mxu2 %v6717_v20  ;;  %v9450_v51 = vld [vmem:[#allocation111_spill] sm:$0xff]  ;;  %v2749_v20 = vpop.f32.mrf.mxu3 }
 0x309   :  { %3391 = vmatpush.bf16.msrb.mxu0 %v9340_v15  ;;  %v9443_v15 = vld [vmem:[#allocation26_spill] sm:$0xff] }
 0x30a   :  { %3292 = vmatpush.bf16.msrb.mxu1 %v9441_v2  ;;  %v6716_v2 = vld [vmem:[#allocation12 + $0x130] sm:$0xff] }
 0x30b   :  { %3208 = vmatpush.bf16.msra.mxu2 %v6716_v2  ;;  %v6713_v2 = vld [vmem:[#allocation12 + $0x118] sm:$0xff] }
 0x30d   :  { %3392 = vmatpush.bf16.msrb.mxu0 %v9343_v39  ;;  %v6071_v39 = vld [vmem:[#allocation2 + $0x18] sm:$0xf] }
 0x30e   :  { %3293 = vmatpush.bf16.msrb.mxu1 %v9443_v15  ;;  %v9449_v15 = vld [vmem:[#allocation30_spill] sm:$0xff] }
 0x311   :  { %3393 = vmatpush.bf16.msrb.mxu0 %v9438_v14  ;;  %v8298_v14 = vor.u32 %v6730_v17, %v6071_v39  ;;  %v6714_v39 = vld [vmem:[#allocation12 + $0x120] sm:$0xff] }
 0x312   :  { %3294 = vmatpush.bf16.msrb.mxu1 %v9446_v37  ;;  %v9452_v37 = vld [vmem:[#allocation34_spill] sm:$0xff] }
 0x315   :  { %3394 = vmatpush.bf16.msrb.mxu0 %v9440_v6  ;;  %v8302_v6 = vpop.f32.mrf.mxu0 }
 0x316   :  { %9447 = vst [vmem:[#allocation120_spill] sm:$0xff] %v8302_v6  ;;  %3295 = vmatpush.bf16.msrb.mxu1 %v9449_v15  ;;  %v8310_v6 = vpop.f32.mrf.mxu1  ;;  %v9460_v15 = vld [vmem:[#allocation45_spill] sm:$0xff] }
 0x317   :  { %9453 = vst [vmem:[#allocation93_spill] sm:$0xff] %v8310_v6 }
 0x319   :  { %3395 = vmatpush.bf16.msrb.mxu0 %v9442_v3  ;;  %v9448_v3 = vld [vmem:[#allocation107_spill] sm:$0xff] }
 0x31d   :  { %3396 = vmatpush.bf16.msrb.mxu0 %v9444_v24  ;;  %v6715_v24 = vld [vmem:[#allocation12 + $0x128] sm:$0xff]  ;;  %v2763_v17 = vpop.f32.mrf.mxu0 }
 0x31e   :  { %3209 = vmatpush.bf16.msra.mxu2 %v6715_v24  ;;  %v9455_v24 = vld [vmem:[#allocation36_spill] sm:$0xff]  ;;  %v2777_v6 = vpop.f32.mrf.mxu1 }
 0x320   :  { %3397 = vmatmul.bf16.vlgmr.msrb.gmra.mxu0 %v8298_v14 }
 0x321   :  { %3445 = vmatpush.bf16.msra.mxu0 %v9445_v22  ;;  %v9451_v22 = vld [vmem:[#allocation32_spill] sm:$0xff] }
 0x322   :  { %3296 = vmatpush.bf16.msrb.mxu1 %v9451_v22  ;;  %3210 = vmatpush.bf16.msra.mxu2 %v6714_v39 }
 0x325   :  { %3446 = vmatpush.bf16.msra.mxu0 %v9448_v3  ;;  %v2697_v3 = vpop.f32.mrf.mxu2  ;;  %v2765_v22 = vpop.f32.mrf.mxu0 }
 0x326   :  { %3297 = vmatpush.bf16.msrb.mxu1 %v9452_v37  ;;  %v8312_v31 = vadd.f32 %v2697_v3, %v2684_v26  ;;  %3211 = vmatpush.bf16.msra.mxu2 %v6713_v2  ;;  %v6711_v37 = vld [vmem:[#allocation12 + $0x108] sm:$0xff]  ;;  %v6710_v26 = vld [vmem:[#allocation12 + $0x100] sm:$0xff] }
 0x327   :  { %v9457_v3 = vld [vmem:[#allocation164_spill] sm:$0xff] }
 0x328   :  { %9454 = vst [vmem:[#allocation124_spill] sm:$0xff] %v8312_v31  ;;  %v2750_v31 = vadd.f32 %v2749_v20, %v9457_v3 }
 0x329   :  { %3447 = vmatpush.bf16.msra.mxu0 %v9450_v51  ;;  %v6712_v51 = vld [vmem:[#allocation12 + $0x110] sm:$0xff] }
 0x32a   :  { %3298 = vmatpush.bf16.msrb.mxu1 %v9455_v24  ;;  %3212 = vmatpush.bf16.msra.mxu2 %v6712_v51  ;;  %v2764_v2 = vadd.f32 %v2763_v17, %v2750_v31  ;;  %v6725_v24 = vld [vmem:[#allocation12 + $0x178] sm:$0xff] }
 0x32b   :  { %3221 = vmatpush.bf16.msra.mxu3 %v6725_v24  ;;  %v9462_v24 = vld [vmem:[#allocation49_spill] sm:$0xff] }
 0x32d   :  { %3448 = vmatpush.bf16.msra.mxu0 %v9366_v1  ;;  %v2751_v1 = vpop.f32.mrf.mxu3  ;;  %v8317_v39 = vpop.f32.mrf.mxu2 }
 0x32e   :  { %9456 = vst [vmem:[#allocation97_spill] sm:$0xff] %v8317_v39  ;;  %3213 = vmatpush.bf16.msra.mxu2 %v6711_v37  ;;  %v2778_v39 = vadd.f32 %v2777_v6, %v2764_v2  ;;  %v2752_v37 = vadd.f32 %v2751_v1, %v9457_v3 }
 0x330   :  { %v2766_v31 = vadd.f32 %v2765_v22, %v2752_v37  ;;  %v6722_v37 = vld [vmem:[#allocation12 + $0x160] sm:$0xff] }
 0x331   :  { %3449 = vmatpush.bf16.msra.mxu0 %v9369_v25 }
 0x332   :  { %3214 = vmatpush.bf16.msra.mxu2 %v6710_v26  ;;  %v6724_v26 = vld [vmem:[#allocation12 + $0x170] sm:$0xff] }
 0x333   :  { %3222 = vmatpush.bf16.msra.mxu3 %v6724_v26 }
 0x335   :  { %3450 = vmatpush.bf16.msra.mxu0 %v9372_v49  ;;  %v9458_v49 = vld [vmem:[#allocation37_spill] sm:$0xff]  ;;  %v2805_v51 = vpop.f32.mrf.mxu3  ;;  %v2791_v25 = vpop.f32.mrf.mxu2 }
 0x336   :  { %3305 = vmatpush.bf16.msrb.mxu2 %v9458_v49  ;;  %v2792_v20 = vadd.f32 %v2791_v25, %v2778_v39 }
 0x337   :  { %3223 = vmatpush.bf16.msra.mxu3 %v6723_v19 }
 0x338   :  { %v2806_v49 = vadd.f32 %v2805_v51, %v2792_v20  ;;  %v9463_v20 = vld [vmem:[#allocation53_spill] sm:$0xff] }
 0x339   :  { %3451 = vmatpush.bf16.msra.mxu0 %v7941_v9  ;;  %v2819_v9 = vpop.f32.mrf.mxu0 }
 0x33a   :  { %v2820_v1 = vadd.f32 %v2819_v9, %v2806_v49  ;;  %v9464_v9 = vld [vmem:[#allocation40_spill] sm:$0xff]  ;;  %v6720_v49 = vld [vmem:[#allocation12 + $0x150] sm:$0xff] }
 0x33b   :  { %3224 = vmatpush.bf16.msra.mxu3 %v6722_v37  ;;  %v6065_v37 = vld [vmem:[#allocation2 + $0x48] sm:$0xf0] }
 0x33d   :  { %3452 = vmatpush.bf16.msra.mxu0 %v7953_v21  ;;  %v9459_v21 = vld [vmem:[#allocation41_spill] sm:$0xff]  ;;  %v2793_v6 = vpop.f32.mrf.mxu2 }
 0x33e   :  { %3306 = vmatpush.bf16.msrb.mxu2 %v9459_v21 }
 0x340   :  { %3453 = vmatmul.bf16.vlgmr.msra.gmra.mxu0 %v8263_v13 }
 0x341   :  { %3501 = vmatpush.bf16.msrb.mxu0 %v7962_v36  ;;  %v2779_v36 = vpop.f32.mrf.mxu1  ;;  %v2821_v39 = vpop.f32.mrf.mxu0 }
 0x342   :  { %v2780_v17 = vadd.f32 %v2779_v36, %v2766_v31  ;;  %3307 = vmatpush.bf16.msrb.mxu2 %v9460_v15  ;;  %v2992_v36 = vmax.f32 %v2820_v1, 0.0  ;;  %v6721_v31 = vld [vmem:[#allocation12 + $0x158] sm:$0xff] }
 0x343   :  { %3225 = vmatpush.bf16.msra.mxu3 %v6721_v31 }
 0x344   :  { %v2794_v2 = vadd.f32 %v2793_v6, %v2780_v17  ;;  %v9466_v17 = vld [vmem:[#allocation44_spill] sm:$0xff]  ;;  %v9467_v6 = vld [vmem:[#allocation61_spill] sm:$0xff] }
 0x345   :  { %3502 = vmatpush.bf16.msrb.mxu0 %v7977_v60  ;;  %v2807_v60 = vpop.f32.mrf.mxu3  ;;  %v2847_v1 = vpop.f32.mrf.mxu2 }
 0x346   :  { %v2808_v25 = vadd.f32 %v2807_v60, %v2794_v2  ;;  %3308 = vmatpush.bf16.msrb.mxu2 %v9462_v24  ;;  %v9465_v60 = vld [vmem:[#allocation57_spill] sm:$0xff]  ;;  %v6719_v2 = vld [vmem:[#allocation12 + $0x148] sm:$0xff] }
 0x347   :  { %3226 = vmatpush.bf16.msra.mxu3 %v6720_v49  ;;  %v9479_v24 = vld [vmem:[#allocation68_spill] sm:$0xff] }
 0x348   :  { %v2822_v22 = vadd.f32 %v2821_v39, %v2808_v25  ;;  %v9468_v25 = vld [vmem:[#allocation48_spill] sm:$0xff]  ;;  %v9469_v39 = vld [vmem:[#allocation65_spill] sm:$0xff] }
 0x349   :  { %3503 = vmatpush.bf16.msrb.mxu0 %v7993_v10  ;;  %v2833_v19 = vpop.f32.mrf.mxu1  ;;  %v9477_v10 = vld [vmem:[#allocation64_spill] sm:$0xff] }
 0x34a   :  { %v2995_v51 = vmax.f32 %v2822_v22, 0.0  ;;  %3309 = vmatpush.bf16.msrb.mxu2 %v9463_v20  ;;  %v6718_v22 = vld [vmem:[#allocation12 + $0x140] sm:$0xff] }
 0x34b   :  { %3227 = vmatpush.bf16.msra.mxu3 %v6719_v2  ;;  %v9472_v2 = vld [vmem:[#allocation165_spill] sm:$0xff] }
 0x34c   :  { %v2998_v26 = vpack.c.bf16 %v2995_v51, %v2992_v36  ;;  %v9470_v36 = vld [vmem:[#allocation52_spill] sm:$0xff]  ;;  %v6726_v51 = vld [vmem:[#allocation2 + $0x14] sm:$0xf] }
 0x34d   :  { %3504 = vmatpush.bf16.msrb.mxu0 %v9461_v33  ;;  %v2861_v31 = vpop.f32.mrf.mxu3  ;;  %v9475_v33 = vld [vmem:[#allocation60_spill] sm:$0xff] }
 0x34e   :  { %3201 = vmatmul.bf16.vlgmr.msra.gmra.mxu1 %v2998_v26  ;;  %3310 = vmatpush.bf16.msrb.mxu2 %v9465_v60  ;;  %v9471_v26 = vld [vmem:[#allocation38_spill] sm:$0xff] }
 0x34f   :  { %3347 = vmatpush.bf16.msra.mxu1 %v9464_v9  ;;  %3228 = vmatpush.bf16.msra.mxu3 %v6718_v22  ;;  %v6081_v9 = vld [vmem:[#allocation2 + $0x58] sm:$0xf0] }
 0x351   :  { %3505 = vmatpush.bf16.msrb.mxu0 %v8017_v43  ;;  %v2835_v49 = vpop.f32.mrf.mxu1  ;;  %v2875_v43 = vpop.f32.mrf.mxu0 }
 0x352   :  { %3311 = vmatpush.bf16.msrb.mxu2 %v9467_v6  ;;  %v2836_v22 = vadd.f32 %v2835_v49, %v9472_v2  ;;  %v9481_v49 = vld [vmem:[#allocation72_spill] sm:$0xff] }
 0x353   :  { %3348 = vmatpush.bf16.msra.mxu1 %v9466_v17  ;;  %3319 = vmatpush.bf16.msrb.mxu3 %v9471_v26  ;;  %v9476_v26 = vld [vmem:[#allocation46_spill] sm:$0xff] }
 0x355   :  { %3506 = vmatpush.bf16.msrb.mxu0 %v8029_v34  ;;  %v9473_v34 = vld [vmem:[#allocation56_spill] sm:$0xff]  ;;  %v2863_v17 = vpop.f32.mrf.mxu3 }
 0x356   :  { %3312 = vmatpush.bf16.msrb.mxu2 %v9469_v39  ;;  %v9474_v39 = vld [vmem:[#allocation42_spill] sm:$0xff] }
 0x357   :  { %3349 = vmatpush.bf16.msra.mxu1 %v9468_v25  ;;  %3320 = vmatpush.bf16.msrb.mxu3 %v9474_v39  ;;  %v2849_v25 = vpop.f32.mrf.mxu2 }
 0x358   :  { %v2850_v6 = vadd.f32 %v2849_v25, %v2836_v22  ;;  %v9480_v25 = vld [vmem:[#allocation54_spill] sm:$0xff] }
 0x359   :  { %3507 = vmatpush.bf16.msrb.mxu0 %v8041_v53  ;;  %v8346_v53 = vor.u32 %v6726_v51, %v6065_v37  ;;  %v2889_v37 = vpop.f32.mrf.mxu1  ;;  %v2877_v20 = vpop.f32.mrf.mxu0 }
 0x35a   :  { %v2864_v60 = vadd.f32 %v2863_v17, %v2850_v6 }
 0x35b   :  { %3350 = vmatpush.bf16.msra.mxu1 %v9470_v36  ;;  %3321 = vmatpush.bf16.msrb.mxu3 %v9476_v26  ;;  %v9499_v26 = vld [vmem:[#allocation89_spill] sm:$0xff] }
 0x35d   :  { %3508 = vmatpush.bf16.msrb.mxu0 %v8053_v4  ;;  %v2834_v4 = vadd.f32 %v2833_v19, %v9472_v2  ;;  %v9478_v19 = vld [vmem:[#allocation50_spill] sm:$0xff] }
 0x35e   :  { %3299 = vmatmul.bf16.vlgmr.msrb.gmra.mxu1 %v8346_v53 }
 0x35f   :  { %3351 = vmatpush.bf16.msra.mxu1 %v9473_v34  ;;  %v2848_v36 = vadd.f32 %v2847_v1, %v2834_v4  ;;  %3322 = vmatpush.bf16.msrb.mxu3 %v9478_v19  ;;  %v2903_v34 = vpop.f32.mrf.mxu2  ;;  %v6728_v4 = vld [vmem:[#allocation2 + $0x24] sm:$0xf]  ;;  %v2878_v1 = vadd.f32 %v2877_v20, %v2864_v60  ;;  %v9482_v19 = vld [vmem:[#allocation58_spill] sm:$0xff] }
 0x360   :  { %3509 = vmatmul.bf16.vlgmr.msrb.gmra.mxu0 %v8283_v30  ;;  %v8360_v22 = vor.u32 %v6728_v4, %v6081_v9  ;;  %v9488_v4 = vld [vmem:[#allocation84_spill] sm:$0xff] }
 0x361   :  { %v2862_v51 = vadd.f32 %v2861_v31, %v2848_v36  ;;  %v2891_v17 = vpop.f32.mrf.mxu1  ;;  %v2931_v9 = vpop.f32.mrf.mxu0 }
 0x362   :  { %v2892_v31 = vadd.f32 %v2891_v17, %v2878_v1  ;;  %v9489_v1 = vld [vmem:[#allocation73_spill] sm:$0xff] }
 0x363   :  { %3352 = vmatpush.bf16.msra.mxu1 %v9475_v33  ;;  %v2876_v39 = vadd.f32 %v2875_v43, %v2862_v51  ;;  %3323 = vmatpush.bf16.msrb.mxu3 %v9480_v25  ;;  %v9483_v51 = vld [vmem:[#allocation76_spill] sm:$0xff]  ;;  %v9484_v25 = vld [vmem:[#allocation62_spill] sm:$0xff] }
 0x365   :  { %v2890_v36 = vadd.f32 %v2889_v37, %v2876_v39  ;;  %v9486_v37 = vld [vmem:[#allocation66_spill] sm:$0xff] }
 0x367   :  { %3353 = vmatpush.bf16.msra.mxu1 %v9477_v10  ;;  %v2904_v6 = vadd.f32 %v2903_v34, %v2890_v36  ;;  %3324 = vmatpush.bf16.msrb.mxu3 %v9482_v19  ;;  %v2905_v43 = vpop.f32.mrf.mxu2  ;;  %v2917_v10 = vpop.f32.mrf.mxu3  ;;  %v9487_v34 = vld [vmem:[#allocation69_spill] sm:$0xff]  ;;  %v9490_v36 = vld [vmem:[#allocation88_spill] sm:$0xff] }
 0x369   :  { %v2993_v20 = vmax.f32 %v2904_v6, 0.0  ;;  %v2933_v6 = vpop.f32.mrf.mxu0 }
 0x36b   :  { %3354 = vmatpush.bf16.msra.mxu1 %v9479_v24  ;;  %v2906_v24 = vadd.f32 %v2905_v43, %v2892_v31  ;;  %3325 = vmatpush.bf16.msrb.mxu3 %v9484_v25  ;;  %v9491_v31 = vld [vmem:[#allocation77_spill] sm:$0xff]  ;;  %v9492_v43 = vld [vmem:[#allocation92_spill] sm:$0xff]  ;;  %v9493_v25 = vld [vmem:[#allocation166_spill] sm:$0xff] }
 0x36d   :  { %v2996_v60 = vmax.f32 %v2906_v24, 0.0  ;;  %v2945_v24 = vpop.f32.mrf.mxu1 }
 0x36e   :  { %3355 = vmatmul.bf16.vlgmr.msra.gmra.mxu1 %v8360_v22 }
 0x36f   :  { %3403 = vmatpush.bf16.msrb.mxu1 %v9481_v49  ;;  %v9485_v49 = vld [vmem:[#allocation80_spill] sm:$0xff]  ;;  %v2999_v39 = vpack.c.bf16 %v2996_v60, %v2993_v20  ;;  %3326 = vmatpush.bf16.msrb.mxu3 %v9486_v37  ;;  %v2919_v17 = vpop.f32.mrf.mxu3  ;;  %v2918_v20 = vadd.f32 %v2917_v10, %v9493_v25  ;;  %v6727_v10 = vld [vmem:[#allocation2 + $0x1c] sm:$0xf] }
 0x370   :  { %v9495_v37 = vld [vmem:[#allocation96_spill] sm:$0xff] }
 0x371   :  { %3215 = vmatmul.bf16.vlgmr.msra.gmra.mxu2 %v2999_v39  ;;  %v2932_v60 = vadd.f32 %v2931_v9, %v2918_v20  ;;  %v9494_v39 = vld [vmem:[#allocation81_spill] sm:$0xff]  ;;  %v2987_v19 = vpop.f32.mrf.mxu0  ;;  %v9498_v20 = vld [vmem:[#allocation104_spill] sm:$0xff] }
 0x372   :  { %3361 = vmatpush.bf16.msra.mxu2 %v9487_v34 }
 0x373   :  { %3404 = vmatpush.bf16.msrb.mxu1 %v9483_v51 }
 0x375   :  { %v2947_v9 = vpop.f32.mrf.mxu1 }
 0x376   :  { %3362 = vmatpush.bf16.msra.mxu2 %v9489_v1  ;;  %v6073_v1 = vld [vmem:[#allocation2 + $0x50] sm:$0xf0] }
 0x377   :  { %3405 = vmatpush.bf16.msrb.mxu1 %v9485_v49  ;;  %v2973_v34 = vpop.f32.mrf.mxu3  ;;  %v2946_v49 = vadd.f32 %v2945_v24, %v2932_v60 }
 0x37a   :  { %3363 = vmatpush.bf16.msra.mxu2 %v9491_v31  ;;  %v9496_v31 = vld [vmem:[#allocation85_spill] sm:$0xff] }
 0x37b   :  { %3406 = vmatpush.bf16.msrb.mxu1 %v9488_v4 }
 0x37c   :  { %v2959_v4 = vpop.f32.mrf.mxu2 }
 0x37d   :  { %v2960_v51 = vadd.f32 %v2959_v4, %v2946_v49 }
 0x37e   :  { %3364 = vmatpush.bf16.msra.mxu2 %v9494_v39  ;;  %v8382_v39 = vor.u32 %v6727_v10, %v6073_v1  ;;  %v9510_v10 = vld [vmem:[#allocation136_spill] sm:$0xff] }
 0x37f   :  { %3407 = vmatpush.bf16.msrb.mxu1 %v9490_v36  ;;  %v2920_v36 = vadd.f32 %v2919_v17, %v9493_v25  ;;  %v2974_v60 = vadd.f32 %v2973_v34, %v2960_v51  ;;  %v9500_v17 = vld [vmem:[#allocation108_spill] sm:$0xff]  ;;  %v2975_v4 = vpop.f32.mrf.mxu3  ;;  %v2989_v25 = vpop.f32.mrf.mxu0  ;;  %v9507_v34 = vld [vmem:[#allocation125_spill] sm:$0xff] }
 0x380   :  { %v9502_v51 = vld [vmem:[#allocation116_spill] sm:$0xff] }
 0x381   :  { %3313 = vmatmul.bf16.vlgmr.msrb.gmra.mxu2 %v8298_v14 }
 0x382   :  { %3365 = vmatpush.bf16.msra.mxu2 %v9496_v31  ;;  %v2988_v31 = vadd.f32 %v2987_v19, %v2974_v60  ;;  %v9505_v19 = vld [vmem:[#allocation121_spill] sm:$0xff]  ;;  %v9513_v60 = vld [vmem:[#allocation155_spill] sm:$0xff] }
 0x383   :  { %3408 = vmatpush.bf16.msrb.mxu1 %v9492_v43  ;;  %v9497_v43 = vld [vmem:[#allocation100_spill] sm:$0xff] }
 0x384   :  { %v2961_v33 = vpop.f32.mrf.mxu2 }
 0x386   :  { %3366 = vmatpush.bf16.msra.mxu2 %v9499_v26 }
 0x387   :  { %3409 = vmatpush.bf16.msrb.mxu1 %v9495_v37  ;;  %v2934_v37 = vadd.f32 %v2933_v6, %v2920_v36  ;;  %v2994_v36 = vmax.f32 %v2988_v31, 0.0  ;;  %v9508_v31 = vld [vmem:[#allocation143_spill] sm:$0xff] }
 0x389   :  { %v2948_v24 = vadd.f32 %v2947_v9, %v2934_v37  ;;  %v9511_v9 = vld [vmem:[#allocation151_spill] sm:$0xff] }
 0x38a   :  { %3367 = vmatpush.bf16.msra.mxu2 %v9392_v11 }
 0x38b   :  { %3410 = vmatpush.bf16.msrb.mxu1 %v9497_v43  ;;  %v2962_v49 = vadd.f32 %v2961_v33, %v2948_v24  ;;  %v9504_v33 = vld [vmem:[#allocation135_spill] sm:$0xff]  ;;  %v9512_v24 = vld [vmem:[#allocation140_spill] sm:$0xff] }
 0x38d   :  { %v2976_v43 = vadd.f32 %v2975_v4, %v2962_v49  ;;  %v9515_v49 = vld [vmem:[#allocation163_spill] sm:$0xff]  ;;  %v9516_v4 = vld [vmem:[#allocation21_spill] sm:$0xff] }
 0x38e   :  { %3411 = vmatmul.bf16.vlgmr.msrb.gmra.mxu1 %v8382_v39  ;;  %3368 = vmatpush.bf16.msra.mxu2 %v9394_v62 }
 0x38f   :  { %3459 = vmatpush.bf16.msra.mxu1 %v9498_v20  ;;  %v9501_v20 = vld [vmem:[#allocation112_spill] sm:$0xff]  ;;  %v2990_v1 = vadd.f32 %v2989_v25, %v2976_v43  ;;  %v9506_v25 = vld [vmem:[#allocation139_spill] sm:$0xff] }
 0x390   :  { %v9509_v43 = vld [vmem:[#allocation147_spill] sm:$0xff] }
 0x391   :  { %v2997_v6 = vmax.f32 %v2990_v1, 0.0  ;;  %3369 = vmatmul.bf16.vlgmr.msra.gmra.mxu2 %v8263_v13  ;;  %v9503_v13 = vld [vmem:[#allocation131_spill] sm:$0xff] }
 0x392   :  { %3417 = vmatpush.bf16.msrb.mxu2 %v9395_v32  ;;  %v9518_v1 = vld [vmem:[#allocation23_spill] sm:$0xff] }
 0x393   :  { %3460 = vmatpush.bf16.msra.mxu1 %v9500_v17  ;;  %v3000_v37 = vpack.c.bf16 %v2997_v6, %v2994_v36  ;;  %v9519_v36 = vld [vmem:[#allocation156_spill] sm:$0xff]  ;;  %v9520_v6 = vld [vmem:[#allocation25_spill] sm:$0xff] }
 0x395   :  { %3229 = vmatmul.bf16.vlgmr.msra.gmra.mxu3 %v3000_v37  ;;  %v9521_v37 = vld [vmem:[#allocation27_spill] sm:$0xff] }
 0x396   :  { %3375 = vmatpush.bf16.msra.mxu3 %v9398_v35  ;;  %3418 = vmatpush.bf16.msrb.mxu2 %v9396_v8 }
 0x397   :  { %3461 = vmatpush.bf16.msra.mxu1 %v9501_v20 }
 0x39a   :  { %3376 = vmatpush.bf16.msra.mxu3 %v9401_v61  ;;  %3419 = vmatpush.bf16.msrb.mxu2 %v9399_v40 }
 0x39b   :  { %3462 = vmatpush.bf16.msra.mxu1 %v9502_v51 }
 0x39e   :  { %3377 = vmatpush.bf16.msra.mxu3 %v9404_v12  ;;  %3420 = vmatpush.bf16.msrb.mxu2 %v9402_v57 }
 0x39f   :  { %3463 = vmatpush.bf16.msra.mxu1 %v9391_v52 }
 0x3a2   :  { %3378 = vmatpush.bf16.msra.mxu3 %v9407_v28  ;;  %3421 = vmatpush.bf16.msrb.mxu2 %v9405_v38 }
 0x3a3   :  { %3464 = vmatpush.bf16.msra.mxu1 %v9393_v48 }
 0x3a5   :  { %3327 = vmatmul.bf16.vlgmr.msrb.gmra.mxu3 %v8382_v39 }
 0x3a6   :  { %3379 = vmatpush.bf16.msra.mxu3 %v9410_v47  ;;  %3422 = vmatpush.bf16.msrb.mxu2 %v9505_v19 }
 0x3a7   :  { %3465 = vmatpush.bf16.msra.mxu1 %v7944_v45 }
 0x3aa   :  { %3380 = vmatpush.bf16.msra.mxu3 %v9412_v63  ;;  %3423 = vmatpush.bf16.msrb.mxu2 %v9507_v34 }
 0x3ab   :  { %3466 = vmatpush.bf16.msra.mxu1 %v9503_v13 }
 0x3ae   :  { %3467 = vmatmul.bf16.vlgmr.msra.gmra.mxu1 %v8346_v53  ;;  %3381 = vmatpush.bf16.msra.mxu3 %v9415_v23 }
 0x3af   :  { %3515 = vmatpush.bf16.msrb.mxu1 %v9504_v33  ;;  %3424 = vmatpush.bf16.msrb.mxu2 %v9413_v59 }
 0x3b2   :  { %3425 = vmatmul.bf16.vlgmr.msrb.gmra.mxu2 %v8283_v30  ;;  %3382 = vmatpush.bf16.msra.mxu3 %v9417_v41  ;;  %v9514_v30 = vld [vmem:[#allocation159_spill] sm:$0xff] }
 0x3b3   :  { %3516 = vmatpush.bf16.msrb.mxu1 %v9506_v25  ;;  %3473 = vmatpush.bf16.msra.mxu2 %v9414_v54 }
 0x3b5   :  { %3383 = vmatmul.bf16.vlgmr.msra.gmra.mxu3 %v8346_v53  ;;  %v9517_v53 = vld [vmem:[#allocation152_spill] sm:$0xff] }
 0x3b6   :  { %3431 = vmatpush.bf16.msrb.mxu3 %v9418_v55 }
 0x3b7   :  { %3517 = vmatpush.bf16.msrb.mxu1 %v9508_v31  ;;  %3474 = vmatpush.bf16.msra.mxu2 %v9510_v10 }
 0x3ba   :  { %3432 = vmatpush.bf16.msrb.mxu3 %v9420_v50 }
 0x3bb   :  { %3518 = vmatpush.bf16.msrb.mxu1 %v9509_v43  ;;  %3475 = vmatpush.bf16.msra.mxu2 %v9512_v24 }
 0x3be   :  { %3433 = vmatpush.bf16.msrb.mxu3 %v9422_v18 }
 0x3bf   :  { %3519 = vmatpush.bf16.msrb.mxu1 %v9511_v9  ;;  %3476 = vmatpush.bf16.msra.mxu2 %v9421_v58 }
 0x3c2   :  { %3434 = vmatpush.bf16.msrb.mxu3 %v9424_v44 }
 0x3c3   :  { %3520 = vmatpush.bf16.msrb.mxu1 %v9513_v60  ;;  %3477 = vmatpush.bf16.msra.mxu2 %v9423_v7 }
 0x3c6   :  { %3435 = vmatpush.bf16.msrb.mxu3 %v9426_v0  ;;  %v9553_v0 = vld [vmem:[#allocation99_spill] sm:$0xff] }
 0x3c7   :  { %3521 = vmatpush.bf16.msrb.mxu1 %v9514_v30  ;;  %3478 = vmatpush.bf16.msra.mxu2 %v9517_v53  ;;  %v9522_v53 = vld [vmem:[#allocation29_spill] sm:$0xff] }
 0x3ca   :  { %3436 = vmatpush.bf16.msrb.mxu3 %v9427_v42  ;;  %v6733_v42 = vld [vmem:[#allocation12 + $0x188] sm:$0xff] }
 0x3cb   :  { %3522 = vmatpush.bf16.msrb.mxu1 %v9515_v49  ;;  %3479 = vmatpush.bf16.msra.mxu2 %v9519_v36  ;;  %v9523_v36 = vld [vmem:[#allocation31_spill] sm:$0xff] }
 0x3ce   :  { %3523 = vmatmul.bf16.vlgmr.msrb.gmra.mxu1 %v8360_v22  ;;  %3437 = vmatpush.bf16.msrb.mxu3 %v9428_v16  ;;  %v9524_v16 = vld [vmem:[#allocation33_spill] sm:$0xff] }
 0x3cf   :  { %3814 = vmatpush.bf16.msra.mxu1 %v9516_v4  ;;  %3480 = vmatpush.bf16.msra.mxu2 %v8047_v56  ;;  %v6759_v56 = vld [vmem:[#allocation2 + $0x4c] sm:$0xf0] }
 0x3d0   :  { %v9556_v4 = vld [vmem:[#allocation34_spill] sm:$0xff] }
 0x3d2   :  { %3481 = vmatmul.bf16.vlgmr.msra.gmra.mxu2 %v8298_v14  ;;  %3438 = vmatpush.bf16.msrb.mxu3 %v9429_v29  ;;  %v9526_v14 = vld [vmem:[#allocation35_spill] sm:$0xff] }
 0x3d3   :  { %3815 = vmatpush.bf16.msra.mxu1 %v9518_v1  ;;  %v6183_v29 = vld [vmem:[#allocation2 + $0x18] sm:$0xf]  ;;  %v6199_v1 = vld [vmem:[#allocation2 + $0x28] sm:$0xf] }
 0x3d5   :  { %3439 = vmatmul.bf16.vlgmr.msrb.gmra.mxu3 %v8360_v22  ;;  %v6739_v22 = vld [vmem:[#allocation12 + $0x1b8] sm:$0xff] }
 0x3d6   :  { %3487 = vmatpush.bf16.msra.mxu3 %v9430_v5  ;;  %v8456_v5 = vor.u32 %v6759_v56, %v6183_v29  ;;  %3730 = vmatpush.bf16.msrb.mxu2 %v6739_v22  ;;  %v9534_v56 = vld [vmem:[#allocation161_spill] sm:$0xff]  ;;  %v6736_v29 = vld [vmem:[#allocation12 + $0x1a0] sm:$0xff]  ;;  %v6735_v22 = vld [vmem:[#allocation12 + $0x198] sm:$0xff] }
 0x3d7   :  { %3816 = vmatpush.bf16.msra.mxu1 %v9520_v6  ;;  %v9527_v6 = vld [vmem:[#allocation39_spill] sm:$0xff] }
 0x3da   :  { %3488 = vmatpush.bf16.msra.mxu3 %v9431_v27  ;;  %v9531_v27 = vld [vmem:[#allocation47_spill] sm:$0xff] }
 0x3db   :  { %3817 = vmatpush.bf16.msra.mxu1 %v9521_v37  ;;  %v9525_v37 = vld [vmem:[#allocation145_spill] sm:$0xff] }
 0x3de   :  { %3489 = vmatpush.bf16.msra.mxu3 %v9432_v46  ;;  %v9530_v46 = vld [vmem:[#allocation153_spill] sm:$0xff] }
 0x3df   :  { %3818 = vmatpush.bf16.msra.mxu1 %v9522_v53  ;;  %v9528_v53 = vld [vmem:[#allocation149_spill] sm:$0xff] }
 0x3e2   :  { %3490 = vmatpush.bf16.msra.mxu3 %v9525_v37  ;;  %v6737_v37 = vld [vmem:[#allocation12 + $0x1a8] sm:$0xff] }
 0x3e3   :  { %3819 = vmatpush.bf16.msra.mxu1 %v9523_v36  ;;  %v9529_v36 = vld [vmem:[#allocation43_spill] sm:$0xff] }
 0x3e6   :  { %3491 = vmatpush.bf16.msra.mxu3 %v9528_v53  ;;  %v9535_v53 = vld [vmem:[#allocation55_spill] sm:$0xff] }
 0x3e7   :  { %3820 = vmatpush.bf16.msra.mxu1 %v9524_v16  ;;  %v6738_v16 = vld [vmem:[#allocation12 + $0x1b0] sm:$0xff] }
 0x3e8   :  { %3731 = vmatpush.bf16.msrb.mxu2 %v6738_v16  ;;  %v9537_v16 = vld [vmem:[#allocation63_spill] sm:$0xff] }
 0x3ea   :  { %3492 = vmatpush.bf16.msra.mxu3 %v9530_v46  ;;  %v9536_v46 = vld [vmem:[#allocation59_spill] sm:$0xff] }
 0x3eb   :  { %3821 = vmatpush.bf16.msra.mxu1 %v9526_v14  ;;  %v9532_v14 = vld [vmem:[#allocation157_spill] sm:$0xff] }
 0x3ec   :  { %3732 = vmatpush.bf16.msrb.mxu2 %v6737_v37  ;;  %v6761_v37 = vld [vmem:[#allocation2 + $0x5c] sm:$0xf0] }
 0x3ee   :  { %3822 = vmatmul.bf16.vlgmr.msra.gmra.mxu1 %v8456_v5  ;;  %3493 = vmatpush.bf16.msra.mxu3 %v9532_v14  ;;  %v3202_v14 = vpop.f32.mrf.mxu1 }
 0x3ef   :  { %3870 = vmatpush.bf16.msrb.mxu1 %v9527_v6  ;;  %v9533_v6 = vld [vmem:[#allocation51_spill] sm:$0xff] }
 0x3f0   :  { %3733 = vmatpush.bf16.msrb.mxu2 %v6736_v29  ;;  %v6732_v29 = vld [vmem:[#allocation12 + $0x180] sm:$0xff] }
 0x3f2   :  { %3494 = vmatpush.bf16.msra.mxu3 %v9534_v56  ;;  %v9538_v56 = vld [vmem:[#allocation67_spill] sm:$0xff] }
 0x3f3   :  { %3871 = vmatpush.bf16.msrb.mxu1 %v9529_v36 }
 0x3f4   :  { %3734 = vmatpush.bf16.msrb.mxu2 %v6735_v22  ;;  %v3216_v36 = vpop.f32.mrf.mxu2  ;;  %v9540_v22 = vld [vmem:[#allocation75_spill] sm:$0xff] }
 0x3f5   :  { %3495 = vmatmul.bf16.vlgmr.msra.gmra.mxu3 %v8382_v39  ;;  %v8472_v39 = vor.u32 %v6761_v37, %v6199_v1  ;;  %v9546_v1 = vld [vmem:[#allocation87_spill] sm:$0xff]  ;;  %v9548_v37 = vld [vmem:[#allocation28_spill] sm:$0xff] }
 0x3f7   :  { %3872 = vmatpush.bf16.msrb.mxu1 %v9531_v27  ;;  %v6734_v27 = vld [vmem:[#allocation12 + $0x190] sm:$0xff] }
 0x3f8   :  { %3735 = vmatpush.bf16.msrb.mxu2 %v6734_v27  ;;  %v9542_v27 = vld [vmem:[#allocation79_spill] sm:$0xff] }
 0x3fb   :  { %3873 = vmatpush.bf16.msrb.mxu1 %v9533_v6  ;;  %v3217_v6 = vadd.f32 %v3216_v36, %v3202_v14  ;;  %v9543_v36 = vld [vmem:[#allocation24_spill] sm:$0xff]  ;;  %v9544_v14 = vld [vmem:[#allocation83_spill] sm:$0xff] }
 0x3fc   :  { %3736 = vmatpush.bf16.msrb.mxu2 %v6733_v42  ;;  %v8482_v42 = vpop.f32.mrf.mxu1 }
 0x3fd   :  { %9547 = vst [vmem:[#allocation101_spill] sm:$0xff] %v8482_v42  ;;  %v6191_v42 = vld [vmem:[#allocation2 + $0x20] sm:$0xf] }
 0x3ff   :  { %3874 = vmatpush.bf16.msrb.mxu1 %v9535_v53  ;;  %v9539_v53 = vld [vmem:[#allocation71_spill] sm:$0xff] }
 0x400   :  { %3737 = vmatpush.bf16.msrb.mxu2 %v6732_v29  ;;  %v9549_v29 = vld [vmem:[#allocation91_spill] sm:$0xff] }
 0x403   :  { %3875 = vmatpush.bf16.msrb.mxu1 %v9536_v46  ;;  %v6760_v46 = vld [vmem:[#allocation2 + $0x54] sm:$0xf0] }
 0x407   :  { %3876 = vmatpush.bf16.msrb.mxu1 %v9537_v16  ;;  %v9541_v16 = vld [vmem:[#allocation22_spill] sm:$0xff] }
 0x408   :  { %3828 = vmatpush.bf16.msra.mxu2 %v9541_v16  ;;  %v9550_v16 = vld [vmem:[#allocation30_spill] sm:$0xff] }
 0x40b   :  { %3877 = vmatpush.bf16.msrb.mxu1 %v9538_v56  ;;  %v9545_v56 = vld [vmem:[#allocation26_spill] sm:$0xff] }
 0x40c   :  { %3829 = vmatpush.bf16.msra.mxu2 %v9543_v36  ;;  %v9551_v36 = vld [vmem:[#allocation95_spill] sm:$0xff] }
 0x40e   :  { %3878 = vmatmul.bf16.vlgmr.msrb.gmra.mxu1 %v8472_v39 }
 0x40f   :  { %3926 = vmatpush.bf16.msra.mxu1 %v9539_v53  ;;  %v6747_v53 = vld [vmem:[#allocation12 + $0x1f8] sm:$0xff] }
 0x410   :  { %3830 = vmatpush.bf16.msra.mxu2 %v9545_v56  ;;  %3744 = vmatpush.bf16.msrb.mxu3 %v6747_v53  ;;  %v3286_v56 = vpop.f32.mrf.mxu0  ;;  %v3300_v53 = vpop.f32.mrf.mxu1 }
 0x413   :  { %3927 = vmatpush.bf16.msra.mxu1 %v9540_v22  ;;  %v6746_v22 = vld [vmem:[#allocation12 + $0x1f0] sm:$0xff] }
 0x414   :  { %3831 = vmatpush.bf16.msra.mxu2 %v9548_v37  ;;  %3745 = vmatpush.bf16.msrb.mxu3 %v6746_v22  ;;  %v8490_v37 = vpop.f32.mrf.mxu2 }
 0x415   :  { %9554 = vst [vmem:[#allocation105_spill] sm:$0xff] %v8490_v37  ;;  %v6742_v37 = vld [vmem:[#allocation12 + $0x1d0] sm:$0xff] }
 0x417   :  { %3928 = vmatpush.bf16.msra.mxu1 %v9542_v27  ;;  %v6745_v27 = vld [vmem:[#allocation12 + $0x1e8] sm:$0xff] }
 0x418   :  { %3832 = vmatpush.bf16.msra.mxu2 %v9550_v16  ;;  %3746 = vmatpush.bf16.msrb.mxu3 %v6745_v27  ;;  %v3230_v22 = vpop.f32.mrf.mxu3  ;;  %v8493_v16 = vor.u32 %v6760_v46, %v6191_v42  ;;  %v3288_v7 = vpop.f32.mrf.mxu0  ;;  %v9561_v46 = vld [vmem:[#allocation111_spill] sm:$0xff] }
 0x419   :  { %v3231_v27 = vadd.f32 %v3230_v22, %v3217_v6  ;;  %v6741_v6 = vld [vmem:[#allocation12 + $0x1c8] sm:$0xff] }
 0x41b   :  { %3929 = vmatpush.bf16.msra.mxu1 %v9544_v14  ;;  %v9552_v14 = vld [vmem:[#allocation32_spill] sm:$0xff] }
 0x41c   :  { %3833 = vmatpush.bf16.msra.mxu2 %v9552_v14  ;;  %v9557_v14 = vld [vmem:[#allocation124_spill] sm:$0xff]  ;;  %v3314_v22 = vpop.f32.mrf.mxu2 }
 0x41d   :  { %v8498_v49 = vadd.f32 %v3231_v27, %v9557_v14  ;;  %v3287_v14 = vadd.f32 %v3286_v56, %v9457_v3 }
 0x41f   :  { %3930 = vmatpush.bf16.msra.mxu1 %v9546_v1  ;;  %v6744_v1 = vld [vmem:[#allocation12 + $0x1e0] sm:$0xff]  ;;  %9558 = vst [vmem:[#allocation70_spill] sm:$0xff] %v8498_v49  ;;  %v3301_v27 = vadd.f32 %v3300_v53, %v3287_v14  ;;  %v6754_v53 = vld [vmem:[#allocation12 + $0x230] sm:$0xff] }
 0x420   :  { %3747 = vmatpush.bf16.msrb.mxu3 %v6744_v1  ;;  %3834 = vmatpush.bf16.msra.mxu2 %v9556_v4  ;;  %v9560_v1 = vld [vmem:[#allocation36_spill] sm:$0xff]  ;;  %v8503_v42 = vpop.f32.mrf.mxu3  ;;  %v9563_v4 = vld [vmem:[#allocation115_spill] sm:$0xff] }
 0x421   :  { %9562 = vst [vmem:[#allocation109_spill] sm:$0xff] %v8503_v42  ;;  %v3315_v44 = vadd.f32 %v3314_v22, %v3301_v27  ;;  %v3289_v42 = vadd.f32 %v3288_v7, %v9457_v3  ;;  %v6753_v7 = vld [vmem:[#allocation12 + $0x228] sm:$0xff]  ;;  %v9568_v3 = vld [vmem:[#allocation130_spill] sm:$0xff] }
 0x423   :  { %3931 = vmatpush.bf16.msra.mxu1 %v9549_v29  ;;  %v9555_v29 = vld [vmem:[#allocation103_spill] sm:$0xff] }
 0x424   :  { %3835 = vmatpush.bf16.msra.mxu2 %v9560_v1  ;;  %v9564_v1 = vld [vmem:[#allocation119_spill] sm:$0xff] }
 0x427   :  { %3932 = vmatpush.bf16.msra.mxu1 %v9551_v36  ;;  %v6743_v36 = vld [vmem:[#allocation12 + $0x1d8] sm:$0xff] }
 0x428   :  { %3748 = vmatpush.bf16.msrb.mxu3 %v6743_v36  ;;  %v6740_v36 = vld [vmem:[#allocation12 + $0x1c0] sm:$0xff]  ;;  %v3328_v49 = vpop.f32.mrf.mxu3 }
 0x429   :  { %v3329_v58 = vadd.f32 %v3328_v49, %v3315_v44 }
 0x42b   :  { %3933 = vmatpush.bf16.msra.mxu1 %v9553_v0  ;;  %v9559_v0 = vld [vmem:[#allocation107_spill] sm:$0xff] }
 0x42c   :  { %3749 = vmatpush.bf16.msrb.mxu3 %v6742_v37  ;;  %v9565_v37 = vld [vmem:[#allocation37_spill] sm:$0xff] }
 0x42e   :  { %3934 = vmatmul.bf16.vlgmr.msra.gmra.mxu1 %v8493_v16 }
 0x42f   :  { %3982 = vmatpush.bf16.msrb.mxu1 %v9555_v29  ;;  %v3302_v29 = vpop.f32.mrf.mxu1 }
 0x430   :  { %3750 = vmatpush.bf16.msrb.mxu3 %v6741_v6  ;;  %v3316_v6 = vpop.f32.mrf.mxu2  ;;  %v3303_v56 = vadd.f32 %v3302_v29, %v3289_v42  ;;  %v9569_v29 = vld [vmem:[#allocation134_spill] sm:$0xff]  ;;  %v9570_v42 = vld [vmem:[#allocation49_spill] sm:$0xff] }
 0x432   :  { %v3317_v14 = vadd.f32 %v3316_v6, %v3303_v56  ;;  %v9571_v56 = vld [vmem:[#allocation138_spill] sm:$0xff] }
 0x433   :  { %3983 = vmatpush.bf16.msrb.mxu1 %v9559_v0  ;;  %v3342_v0 = vpop.f32.mrf.mxu0 }
 0x434   :  { %3751 = vmatpush.bf16.msrb.mxu3 %v6740_v36  ;;  %v3343_v36 = vadd.f32 %v3342_v0, %v3329_v58  ;;  %v6752_v58 = vld [vmem:[#allocation12 + $0x220] sm:$0xff] }
 0x437   :  { %3984 = vmatpush.bf16.msrb.mxu1 %v9561_v46  ;;  %v6755_v46 = vld [vmem:[#allocation12 + $0x238] sm:$0xff]  ;;  %v3356_v30 = vpop.f32.mrf.mxu1 }
 0x438   :  { %3842 = vmatpush.bf16.msra.mxu3 %v9565_v37  ;;  %3758 = vmatpush.bf16.msra.mxu0 %v6755_v46  ;;  %v3330_v37 = vpop.f32.mrf.mxu3  ;;  %v3357_v44 = vadd.f32 %v3356_v30, %v3343_v36  ;;  %v9572_v30 = vld [vmem:[#allocation53_spill] sm:$0xff]  ;;  %v9574_v36 = vld [vmem:[#allocation142_spill] sm:$0xff] }
 0x439   :  { %v3331_v22 = vadd.f32 %v3330_v37, %v3317_v14  ;;  %v9573_v14 = vld [vmem:[#allocation40_spill] sm:$0xff] }
 0x43a   :  { %v3529_v0 = vmax.f32 %v3357_v44, 0.0  ;;  %v9577_v44 = vld [vmem:[#allocation146_spill] sm:$0xff] }
 0x43b   :  { %3985 = vmatpush.bf16.msrb.mxu1 %v9563_v4  ;;  %v9566_v4 = vld [vmem:[#allocation123_spill] sm:$0xff]  ;;  %v3344_v27 = vpop.f32.mrf.mxu0 }
 0x43c   :  { %3843 = vmatpush.bf16.msra.mxu3 %v9459_v21  ;;  %3759 = vmatpush.bf16.msra.mxu0 %v6754_v53  ;;  %v3345_v49 = vadd.f32 %v3344_v27, %v3331_v22  ;;  %v6751_v53 = vld [vmem:[#allocation12 + $0x218] sm:$0xff]  ;;  %v9575_v22 = vld [vmem:[#allocation57_spill] sm:$0xff] }
 0x43d   :  { %v6750_v27 = vld [vmem:[#allocation12 + $0x210] sm:$0xff] }
 0x43f   :  { %3986 = vmatpush.bf16.msrb.mxu1 %v9564_v1  ;;  %v9567_v1 = vld [vmem:[#allocation127_spill] sm:$0xff]  ;;  %v3358_v46 = vpop.f32.mrf.mxu1 }
 0x440   :  { %3844 = vmatpush.bf16.msra.mxu3 %v9460_v15  ;;  %3760 = vmatpush.bf16.msra.mxu0 %v6753_v7  ;;  %v3370_v7 = vpop.f32.mrf.mxu2 }
 0x443   :  { %3987 = vmatpush.bf16.msrb.mxu1 %v9566_v4  ;;  %v3359_v4 = vadd.f32 %v3358_v46, %v3345_v49  ;;  %v9578_v49 = vld [vmem:[#allocation61_spill] sm:$0xff]  ;;  %v6749_v46 = vld [vmem:[#allocation12 + $0x208] sm:$0xff] }
 0x444   :  { %3845 = vmatpush.bf16.msra.mxu3 %v9570_v42  ;;  %3761 = vmatpush.bf16.msra.mxu0 %v6752_v58  ;;  %v3384_v58 = vpop.f32.mrf.mxu3  ;;  %v9591_v42 = vld [vmem:[#allocation64_spill] sm:$0xff] }
 0x445   :  { %v3532_v6 = vmax.f32 %v3359_v4, 0.0  ;;  %v9576_v4 = vld [vmem:[#allocation44_spill] sm:$0xff] }
 0x447   :  { %3988 = vmatpush.bf16.msrb.mxu1 %v9567_v1  ;;  %v3535_v37 = vpack.c.bf16 %v3532_v6, %v3529_v0  ;;  %v9579_v0 = vld [vmem:[#allocation48_spill] sm:$0xff]  ;;  %v9580_v6 = vld [vmem:[#allocation150_spill] sm:$0xff] }
 0x448   :  { %3846 = vmatpush.bf16.msra.mxu3 %v9572_v30  ;;  %3762 = vmatpush.bf16.msra.mxu0 %v6751_v53  ;;  %v6185_v53 = vld [vmem:[#allocation2 + $0x50] sm:$0xf0] }
 0x449   :  { %3738 = vmatmul.bf16.vlgmr.msrb.gmra.mxu2 %v3535_v37  ;;  %v9581_v37 = vld [vmem:[#allocation65_spill] sm:$0xff]  ;;  %v9590_v30 = vld [vmem:[#allocation46_spill] sm:$0xff] }
 0x44a   :  { %3884 = vmatpush.bf16.msrb.mxu2 %v9573_v14  ;;  %v9584_v14 = vld [vmem:[#allocation38_spill] sm:$0xff] }
 0x44b   :  { %3989 = vmatpush.bf16.msrb.mxu1 %v9568_v3 }
 0x44c   :  { %3847 = vmatpush.bf16.msra.mxu3 %v9575_v22  ;;  %3763 = vmatpush.bf16.msra.mxu0 %v6750_v27  ;;  %v6756_v22 = vld [vmem:[#allocation2 + $0x1c] sm:$0xf]  ;;  %v3398_v27 = vpop.f32.mrf.mxu0 }
 0x44e   :  { %3990 = vmatmul.bf16.vlgmr.msrb.gmra.mxu1 %v8456_v5  ;;  %3885 = vmatpush.bf16.msrb.mxu2 %v9576_v4  ;;  %v3372_v4 = vpop.f32.mrf.mxu2 }
 0x44f   :  { %4038 = vmatpush.bf16.msra.mxu1 %v9569_v29  ;;  %v9586_v29 = vld [vmem:[#allocation158_spill] sm:$0xff] }
 0x450   :  { %3848 = vmatpush.bf16.msra.mxu3 %v9578_v49  ;;  %3764 = vmatpush.bf16.msra.mxu0 %v6749_v46  ;;  %v8531_v49 = vor.u32 %v6756_v22, %v6185_v53  ;;  %v3371_v46 = vadd.f32 %v3370_v7, %v9472_v2  ;;  %v9588_v22 = vld [vmem:[#allocation60_spill] sm:$0xff] }
 0x452   :  { %3886 = vmatpush.bf16.msrb.mxu2 %v9579_v0  ;;  %v3386_v0 = vpop.f32.mrf.mxu3  ;;  %v3385_v3 = vadd.f32 %v3384_v58, %v3371_v46  ;;  %v6201_v58 = vld [vmem:[#allocation2 + $0x60] sm:$0xf0] }
 0x453   :  { %4039 = vmatpush.bf16.msra.mxu1 %v9571_v56  ;;  %v9582_v56 = vld [vmem:[#allocation52_spill] sm:$0xff] }
 0x454   :  { %3849 = vmatpush.bf16.msra.mxu3 %v9581_v37  ;;  %v3412_v37 = vpop.f32.mrf.mxu1  ;;  %v3399_v7 = vadd.f32 %v3398_v27, %v3385_v3  ;;  %v3400_v1 = vpop.f32.mrf.mxu0  ;;  %v9593_v46 = vld [vmem:[#allocation68_spill] sm:$0xff]  ;;  %v9595_v3 = vld [vmem:[#allocation54_spill] sm:$0xff] }
 0x456   :  { %3887 = vmatpush.bf16.msrb.mxu2 %v9582_v56  ;;  %v9587_v56 = vld [vmem:[#allocation42_spill] sm:$0xff]  ;;  %v3426_v53 = vpop.f32.mrf.mxu2 }
 0x457   :  { %4040 = vmatpush.bf16.msra.mxu1 %v9574_v36  ;;  %v6748_v36 = vld [vmem:[#allocation12 + $0x200] sm:$0xff] }
 0x458   :  { %3765 = vmatpush.bf16.msra.mxu0 %v6748_v36  ;;  %v3373_v36 = vadd.f32 %v3372_v4, %v9472_v2  ;;  %v3413_v4 = vadd.f32 %v3412_v37, %v3399_v7  ;;  %v9596_v37 = vld [vmem:[#allocation76_spill] sm:$0xff]  ;;  %v9597_v7 = vld [vmem:[#allocation58_spill] sm:$0xff] }
 0x459   :  { %3836 = vmatmul.bf16.vlgmr.msra.gmra.mxu2 %v8531_v49 }
 0x45b   :  { %4041 = vmatpush.bf16.msra.mxu1 %v9577_v44  ;;  %v9583_v44 = vld [vmem:[#allocation154_spill] sm:$0xff] }
 0x45c   :  { %3856 = vmatpush.bf16.msrb.mxu0 %v9584_v14  ;;  %v9589_v14 = vld [vmem:[#allocation162_spill] sm:$0xff]  ;;  %v3454_v2 = vpop.f32.mrf.mxu0 }
 0x45f   :  { %4042 = vmatpush.bf16.msra.mxu1 %v9580_v6  ;;  %v9585_v6 = vld [vmem:[#allocation56_spill] sm:$0xff] }
 0x460   :  { %3888 = vmatpush.bf16.msrb.mxu2 %v9585_v6  ;;  %3857 = vmatpush.bf16.msrb.mxu0 %v9587_v56  ;;  %v9592_v56 = vld [vmem:[#allocation50_spill] sm:$0xff] }
 0x463   :  { %4043 = vmatpush.bf16.msra.mxu1 %v9583_v44  ;;  %v3387_v44 = vadd.f32 %v3386_v0, %v3373_v36  ;;  %v3414_v0 = vpop.f32.mrf.mxu1  ;;  %v6758_v36 = vld [vmem:[#allocation2 + $0x2c] sm:$0xf] }
 0x464   :  { %3889 = vmatpush.bf16.msrb.mxu2 %v9588_v22  ;;  %3858 = vmatpush.bf16.msrb.mxu0 %v9590_v30  ;;  %v8548_v30 = vor.u32 %v6758_v36, %v6201_v58  ;;  %v9599_v58 = vld [vmem:[#allocation62_spill] sm:$0xff] }
 0x465   :  { %v3401_v6 = vadd.f32 %v3400_v1, %v3387_v44  ;;  %v3427_v1 = vadd.f32 %v3426_v53, %v3413_v4  ;;  %v3428_v44 = vpop.f32.mrf.mxu2  ;;  %v9600_v4 = vld [vmem:[#allocation69_spill] sm:$0xff] }
 0x467   :  { %4044 = vmatpush.bf16.msra.mxu1 %v9586_v29  ;;  %v3440_v29 = vpop.f32.mrf.mxu3  ;;  %v3415_v22 = vadd.f32 %v3414_v0, %v3401_v6 }
 0x468   :  { %3890 = vmatpush.bf16.msrb.mxu2 %v9591_v42  ;;  %3859 = vmatpush.bf16.msrb.mxu0 %v9592_v56  ;;  %v3441_v27 = vadd.f32 %v3440_v29, %v3427_v1  ;;  %v9601_v29 = vld [vmem:[#allocation84_spill] sm:$0xff]  ;;  %v9603_v1 = vld [vmem:[#allocation73_spill] sm:$0xff] }
 0x469   :  { %v3429_v42 = vadd.f32 %v3428_v44, %v3415_v22  ;;  %v9602_v22 = vld [vmem:[#allocation66_spill] sm:$0xff]  ;;  %v9604_v44 = vld [vmem:[#allocation88_spill] sm:$0xff] }
 0x46a   :  { %v3530_v6 = vmax.f32 %v3441_v27, 0.0  ;;  %v9605_v27 = vld [vmem:[#allocation77_spill] sm:$0xff] }
 0x46b   :  { %4045 = vmatpush.bf16.msra.mxu1 %v9589_v14  ;;  %v9594_v14 = vld [vmem:[#allocation72_spill] sm:$0xff]  ;;  %v3468_v36 = vpop.f32.mrf.mxu1 }
 0x46c   :  { %3891 = vmatpush.bf16.msrb.mxu2 %v9593_v46  ;;  %3860 = vmatpush.bf16.msrb.mxu0 %v9595_v3 }
 0x46e   :  { %4046 = vmatmul.bf16.vlgmr.msra.gmra.mxu1 %v8472_v39 }
 0x46f   :  { %3892 = vmatmul.bf16.vlgmr.msrb.gmra.mxu2 %v8548_v30  ;;  %v3442_v56 = vpop.f32.mrf.mxu3 }
 0x470   :  { %3940 = vmatpush.bf16.msra.mxu2 %v9594_v14  ;;  %3861 = vmatpush.bf16.msrb.mxu0 %v9597_v7  ;;  %v3443_v46 = vadd.f32 %v3442_v56, %v3429_v42  ;;  %v9598_v14 = vld [vmem:[#allocation80_spill] sm:$0xff]  ;;  %v3456_v42 = vpop.f32.mrf.mxu0 }
 0x472   :  { %v3533_v0 = vmax.f32 %v3443_v46, 0.0  ;;  %v3482_v46 = vpop.f32.mrf.mxu2 }
 0x473   :  { %v3470_v56 = vpop.f32.mrf.mxu1 }
 0x474   :  { %3941 = vmatpush.bf16.msra.mxu2 %v9596_v37  ;;  %3862 = vmatpush.bf16.msrb.mxu0 %v9599_v58  ;;  %v3536_v53 = vpack.c.bf16 %v3533_v0, %v3530_v6  ;;  %v9607_v58 = vld [vmem:[#allocation166_spill] sm:$0xff] }
 0x475   :  { %v3455_v6 = vadd.f32 %v3454_v2, %v9607_v58  ;;  %v6757_v2 = vld [vmem:[#allocation2 + $0x24] sm:$0xf] }
 0x476   :  { %3752 = vmatmul.bf16.vlgmr.msrb.gmra.mxu3 %v3536_v53  ;;  %v9608_v53 = vld [vmem:[#allocation81_spill] sm:$0xff] }
 0x477   :  { %3898 = vmatpush.bf16.msrb.mxu3 %v9600_v4  ;;  %v3469_v0 = vadd.f32 %v3468_v36, %v3455_v6  ;;  %v9609_v4 = vld [vmem:[#allocation96_spill] sm:$0xff] }
 0x478   :  { %3942 = vmatpush.bf16.msra.mxu2 %v9598_v14  ;;  %3863 = vmatpush.bf16.msrb.mxu0 %v9602_v22  ;;  %v9606_v14 = vld [vmem:[#allocation92_spill] sm:$0xff]  ;;  %v3496_v22 = vpop.f32.mrf.mxu3 }
 0x479   :  { %v3483_v7 = vadd.f32 %v3482_v46, %v3469_v0  ;;  %v9612_v6 = vld [vmem:[#allocation104_spill] sm:$0xff] }
 0x47a   :  { %v3484_v36 = vpop.f32.mrf.mxu2 }
 0x47b   :  { %3899 = vmatpush.bf16.msrb.mxu3 %v9603_v1  ;;  %v6193_v1 = vld [vmem:[#allocation2 + $0x58] sm:$0xf0]  ;;  %v3524_v37 = vpop.f32.mrf.mxu1  ;;  %v3497_v3 = vadd.f32 %v3496_v22, %v3483_v7 }
 0x47c   :  { %3943 = vmatpush.bf16.msra.mxu2 %v9601_v29  ;;  %v3510_v29 = vpop.f32.mrf.mxu0 }
 0x47d   :  { %v3511_v0 = vadd.f32 %v3510_v29, %v3497_v3  ;;  %v9620_v29 = vld [vmem:[#allocation152_spill] sm:$0xff] }
 0x47f   :  { %3900 = vmatpush.bf16.msrb.mxu3 %v9605_v27  ;;  %v9610_v27 = vld [vmem:[#allocation85_spill] sm:$0xff] }
 0x480   :  { %3944 = vmatpush.bf16.msra.mxu2 %v9604_v44  ;;  %v3457_v44 = vadd.f32 %v3456_v42, %v9607_v58  ;;  %v3498_v15 = vpop.f32.mrf.mxu3  ;;  %v3525_v42 = vadd.f32 %v3524_v37, %v3511_v0  ;;  %v9617_v37 = vld [vmem:[#allocation163_spill] sm:$0xff]  ;;  %v9625_v0 = vld [vmem:[#allocation126_spill] sm:$0xff] }
 0x483   :  { %3901 = vmatpush.bf16.msrb.mxu3 %v9608_v53  ;;  %v8571_v53 = vor.u32 %v6757_v2, %v6193_v1  ;;  %v9622_v2 = vld [vmem:[#allocation122_spill] sm:$0xff] }
 0x484   :  { %3945 = vmatpush.bf16.msra.mxu2 %v9606_v14  ;;  %v9611_v14 = vld [vmem:[#allocation100_spill] sm:$0xff]  ;;  %v3512_v22 = vpop.f32.mrf.mxu0 }
 0x486   :  { %3850 = vmatmul.bf16.vlgmr.msra.gmra.mxu3 %v8493_v16 }
 0x487   :  { %3902 = vmatpush.bf16.msrb.mxu3 %v9610_v27  ;;  %v3526_v27 = vpop.f32.mrf.mxu1 }
 0x488   :  { %3946 = vmatpush.bf16.msra.mxu2 %v9609_v4  ;;  %v3471_v4 = vadd.f32 %v3470_v56, %v3457_v44  ;;  %v3531_v44 = vmax.f32 %v3525_v42, 0.0  ;;  %v9628_v42 = vld [vmem:[#allocation129_spill] sm:$0xff] }
 0x48a   :  { %v3485_v46 = vadd.f32 %v3484_v36, %v3471_v4  ;;  %v9618_v4 = vld [vmem:[#allocation21_spill] sm:$0xff]  ;;  %v9623_v36 = vld [vmem:[#allocation156_spill] sm:$0xff] }
 0x48b   :  { %3903 = vmatpush.bf16.msrb.mxu3 %v9499_v26 }
 0x48c   :  { %3947 = vmatpush.bf16.msra.mxu2 %v9611_v14  ;;  %v3499_v7 = vadd.f32 %v3498_v15, %v3485_v46  ;;  %v9614_v15 = vld [vmem:[#allocation159_spill] sm:$0xff]  ;;  %v9624_v46 = vld [vmem:[#allocation25_spill] sm:$0xff] }
 0x48e   :  { %v3513_v14 = vadd.f32 %v3512_v22, %v3499_v7  ;;  %v9626_v7 = vld [vmem:[#allocation160_spill] sm:$0xff]  ;;  %v9627_v22 = vld [vmem:[#allocation27_spill] sm:$0xff] }
 0x48f   :  { %3948 = vmatmul.bf16.vlgmr.msra.gmra.mxu2 %v8571_v53  ;;  %3904 = vmatpush.bf16.msrb.mxu3 %v9392_v11 }
 0x490   :  { %3996 = vmatpush.bf16.msrb.mxu2 %v9612_v6  ;;  %v3527_v1 = vadd.f32 %v3526_v27, %v3513_v14  ;;  %v9616_v14 = vld [vmem:[#allocation148_spill] sm:$0xff]  ;;  %v9621_v27 = vld [vmem:[#allocation23_spill] sm:$0xff] }
 0x492   :  { %v3534_v56 = vmax.f32 %v3527_v1, 0.0  ;;  %v9629_v1 = vld [vmem:[#allocation133_spill] sm:$0xff] }
 0x493   :  { %3905 = vmatpush.bf16.msrb.mxu3 %v9394_v62 }
 0x494   :  { %3997 = vmatpush.bf16.msrb.mxu2 %v9500_v17  ;;  %v3537_v3 = vpack.c.bf16 %v3534_v56, %v3531_v44  ;;  %v9630_v44 = vld [vmem:[#allocation29_spill] sm:$0xff] }
 0x495   :  { %v9631_v56 = vld [vmem:[#allocation137_spill] sm:$0xff] }
 0x496   :  { %3906 = vmatmul.bf16.vlgmr.msrb.gmra.mxu3 %v8456_v5  ;;  %3766 = vmatmul.bf16.vlgmr.msra.gmra.mxu0 %v3537_v3  ;;  %v9613_v5 = vld [vmem:[#allocation144_spill] sm:$0xff]  ;;  %v9632_v3 = vld [vmem:[#allocation31_spill] sm:$0xff] }
 0x497   :  { %3954 = vmatpush.bf16.msra.mxu3 %v9395_v32  ;;  %3912 = vmatpush.bf16.msra.mxu0 %v9398_v35 }
 0x498   :  { %3998 = vmatpush.bf16.msrb.mxu2 %v9501_v20 }
 0x49b   :  { %3955 = vmatpush.bf16.msra.mxu3 %v9396_v8  ;;  %3913 = vmatpush.bf16.msra.mxu0 %v9401_v61 }
 0x49c   :  { %3999 = vmatpush.bf16.msrb.mxu2 %v9502_v51 }
 0x49f   :  { %3956 = vmatpush.bf16.msra.mxu3 %v9399_v40  ;;  %3914 = vmatpush.bf16.msra.mxu0 %v9404_v12 }
 0x4a0   :  { %4000 = vmatpush.bf16.msrb.mxu2 %v9391_v52 }
 0x4a3   :  { %3957 = vmatpush.bf16.msra.mxu3 %v9402_v57  ;;  %3915 = vmatpush.bf16.msra.mxu0 %v9407_v28 }
 0x4a4   :  { %4001 = vmatpush.bf16.msrb.mxu2 %v9393_v48 }
 0x4a6   :  { %3864 = vmatmul.bf16.vlgmr.msrb.gmra.mxu0 %v8571_v53 }
 0x4a7   :  { %3958 = vmatpush.bf16.msra.mxu3 %v9405_v38  ;;  %3916 = vmatpush.bf16.msra.mxu0 %v9410_v47 }
 0x4a8   :  { %4002 = vmatpush.bf16.msrb.mxu2 %v7944_v45 }
 0x4ab   :  { %3959 = vmatpush.bf16.msra.mxu3 %v9505_v19  ;;  %3917 = vmatpush.bf16.msra.mxu0 %v9412_v63 }
 0x4ac   :  { %4003 = vmatpush.bf16.msrb.mxu2 %v9503_v13 }
 0x4af   :  { %4004 = vmatmul.bf16.vlgmr.msrb.gmra.mxu2 %v8531_v49  ;;  %3960 = vmatpush.bf16.msra.mxu3 %v9507_v34 }
 0x4b0   :  { %4052 = vmatpush.bf16.msra.mxu2 %v9504_v33  ;;  %3918 = vmatpush.bf16.msra.mxu0 %v9415_v23 }
 0x4b3   :  { %3961 = vmatpush.bf16.msra.mxu3 %v9413_v59 }
 0x4b4   :  { %4053 = vmatpush.bf16.msra.mxu2 %v9506_v25  ;;  %3919 = vmatpush.bf16.msra.mxu0 %v9417_v41 }
 0x4b6   :  { %3962 = vmatmul.bf16.vlgmr.msra.gmra.mxu3 %v8472_v39  ;;  %v9615_v39 = vld [vmem:[#allocation114_spill] sm:$0xff] }
 0x4b7   :  { %4010 = vmatpush.bf16.msrb.mxu3 %v9414_v54  ;;  %3920 = vmatmul.bf16.vlgmr.msra.gmra.mxu0 %v8531_v49  ;;  %v9619_v49 = vld [vmem:[#allocation118_spill] sm:$0xff] }
 0x4b8   :  { %4054 = vmatpush.bf16.msra.mxu2 %v9508_v31  ;;  %3968 = vmatpush.bf16.msrb.mxu0 %v9418_v55 }
 0x4bb   :  { %4011 = vmatpush.bf16.msrb.mxu3 %v9510_v10 }
 0x4bc   :  { %4055 = vmatpush.bf16.msra.mxu2 %v9509_v43  ;;  %3969 = vmatpush.bf16.msrb.mxu0 %v9420_v50 }
 0x4bf   :  { %4012 = vmatpush.bf16.msrb.mxu3 %v9512_v24 }
 0x4c0   :  { %4056 = vmatpush.bf16.msra.mxu2 %v9511_v9  ;;  %3970 = vmatpush.bf16.msrb.mxu0 %v9422_v18  ;;  %v9675_v18 = vld [vmem:[#allocation45_spill] sm:$0xff] }
 0x4c3   :  { %4013 = vmatpush.bf16.msrb.mxu3 %v9613_v5 }
 0x4c4   :  { %4057 = vmatpush.bf16.msra.mxu2 %v9513_v60  ;;  %3971 = vmatpush.bf16.msrb.mxu0 %v9615_v39  ;;  %v9671_v39 = vld [vmem:[#allocation111_spill] sm:$0xff] }
 0x4c7   :  { %4014 = vmatpush.bf16.msrb.mxu3 %v9616_v14  ;;  %v9667_v14 = vld [vmem:[#allocation103_spill] sm:$0xff] }
 0x4c8   :  { %4058 = vmatpush.bf16.msra.mxu2 %v9614_v15  ;;  %3972 = vmatpush.bf16.msrb.mxu0 %v9619_v49  ;;  %v6785_v15 = vld [vmem:[#allocation12 + $0x2f8] sm:$0xff] }
 0x4c9   :  { %4295 = vmatpush.bf16.msrb.mxu1 %v6785_v15  ;;  %v9676_v15 = vld [vmem:[#allocation123_spill] sm:$0xff] }
 0x4cb   :  { %4015 = vmatpush.bf16.msrb.mxu3 %v9620_v29  ;;  %v9662_v29 = vld [vmem:[#allocation95_spill] sm:$0xff] }
 0x4cc   :  { %4059 = vmatpush.bf16.msra.mxu2 %v9617_v37  ;;  %3973 = vmatpush.bf16.msrb.mxu0 %v9622_v2  ;;  %v6775_v2 = vld [vmem:[#allocation12 + $0x2a8] sm:$0xff]  ;;  %v6772_v37 = vld [vmem:[#allocation12 + $0x290] sm:$0xff] }
 0x4cf   :  { %4060 = vmatmul.bf16.vlgmr.msra.gmra.mxu2 %v8548_v30  ;;  %4016 = vmatpush.bf16.msrb.mxu3 %v9623_v36 }
 0x4d0   :  { %4351 = vmatpush.bf16.msrb.mxu2 %v9618_v4  ;;  %3974 = vmatpush.bf16.msrb.mxu0 %v9625_v0  ;;  %v9633_v4 = vld [vmem:[#allocation141_spill] sm:$0xff] }
 0x4d1   :  { %v6791_v0 = vld [vmem:[#allocation2 + $0x64] sm:$0xf0] }
 0x4d3   :  { %4017 = vmatpush.bf16.msrb.mxu3 %v9626_v7  ;;  %v9635_v7 = vld [vmem:[#allocation145_spill] sm:$0xff] }
 0x4d4   :  { %4352 = vmatpush.bf16.msrb.mxu2 %v9621_v27  ;;  %3975 = vmatpush.bf16.msrb.mxu0 %v9628_v42  ;;  %v9634_v27 = vld [vmem:[#allocation33_spill] sm:$0xff]  ;;  %v6303_v42 = vld [vmem:[#allocation2 + $0x20] sm:$0xf] }
 0x4d6   :  { %4018 = vmatmul.bf16.vlgmr.msrb.gmra.mxu3 %v8493_v16  ;;  %v9636_v16 = vld [vmem:[#allocation35_spill] sm:$0xff] }
 0x4d7   :  { %3976 = vmatmul.bf16.vlgmr.msrb.gmra.mxu0 %v8548_v30  ;;  %v6768_v30 = vld [vmem:[#allocation12 + $0x270] sm:$0xff] }
 0x4d8   :  { %4353 = vmatpush.bf16.msrb.mxu2 %v9624_v46  ;;  %4024 = vmatpush.bf16.msra.mxu0 %v9629_v1  ;;  %v6789_v46 = vld [vmem:[#allocation2 + $0x54] sm:$0xf0] }
 0x4d9   :  { %v9637_v1 = vld [vmem:[#allocation39_spill] sm:$0xff] }
 0x4dc   :  { %4354 = vmatpush.bf16.msrb.mxu2 %v9627_v22  ;;  %4025 = vmatpush.bf16.msra.mxu0 %v9631_v56  ;;  %v6769_v22 = vld [vmem:[#allocation12 + $0x278] sm:$0xff]  ;;  %v9638_v56 = vld [vmem:[#allocation149_spill] sm:$0xff] }
 0x4dd   :  { %4267 = vmatpush.bf16.msra.mxu3 %v6769_v22  ;;  %v9642_v22 = vld [vmem:[#allocation157_spill] sm:$0xff] }
 0x4e0   :  { %4355 = vmatpush.bf16.msrb.mxu2 %v9630_v44  ;;  %4026 = vmatpush.bf16.msra.mxu0 %v9633_v4  ;;  %v8645_v44 = vor.u32 %v6789_v46, %v6303_v42  ;;  %v9640_v4 = vld [vmem:[#allocation153_spill] sm:$0xff]  ;;  %v9643_v42 = vld [vmem:[#allocation51_spill] sm:$0xff] }
 0x4e1   :  { %4268 = vmatpush.bf16.msra.mxu3 %v6768_v30  ;;  %v9644_v46 = vld [vmem:[#allocation161_spill] sm:$0xff] }
 0x4e2   :  { %v6764_v30 = vld [vmem:[#allocation12 + $0x250] sm:$0xff] }
 0x4e4   :  { %4356 = vmatpush.bf16.msrb.mxu2 %v9632_v3  ;;  %4027 = vmatpush.bf16.msra.mxu0 %v9635_v7  ;;  %v9639_v3 = vld [vmem:[#allocation43_spill] sm:$0xff] }
 0x4e5   :  { %v9641_v7 = vld [vmem:[#allocation47_spill] sm:$0xff] }
 0x4e8   :  { %4357 = vmatpush.bf16.msrb.mxu2 %v9634_v27  ;;  %4028 = vmatpush.bf16.msra.mxu0 %v9638_v56  ;;  %v6767_v27 = vld [vmem:[#allocation12 + $0x268] sm:$0xff]  ;;  %v9645_v56 = vld [vmem:[#allocation55_spill] sm:$0xff] }
 0x4e9   :  { %4269 = vmatpush.bf16.msra.mxu3 %v6767_v27  ;;  %v6763_v27 = vld [vmem:[#allocation12 + $0x248] sm:$0xff] }
 0x4ec   :  { %4358 = vmatpush.bf16.msrb.mxu2 %v9636_v16  ;;  %4029 = vmatpush.bf16.msra.mxu0 %v9640_v4  ;;  %v6766_v16 = vld [vmem:[#allocation12 + $0x260] sm:$0xff] }
 0x4ed   :  { %4270 = vmatpush.bf16.msra.mxu3 %v6766_v16  ;;  %v9647_v4 = vld [vmem:[#allocation63_spill] sm:$0xff] }
 0x4ef   :  { %4359 = vmatmul.bf16.vlgmr.msrb.gmra.mxu2 %v8645_v44 }
 0x4f0   :  { %4407 = vmatpush.bf16.msra.mxu2 %v9637_v1  ;;  %4030 = vmatpush.bf16.msra.mxu0 %v9642_v22  ;;  %v6765_v1 = vld [vmem:[#allocation12 + $0x258] sm:$0xff]  ;;  %v6762_v22 = vld [vmem:[#allocation12 + $0x240] sm:$0xff] }
 0x4f1   :  { %4271 = vmatpush.bf16.msra.mxu3 %v6765_v1  ;;  %v6319_v1 = vld [vmem:[#allocation2 + $0x30] sm:$0xf] }
 0x4f4   :  { %4408 = vmatpush.bf16.msra.mxu2 %v9639_v3  ;;  %4031 = vmatpush.bf16.msra.mxu0 %v9644_v46  ;;  %v9646_v3 = vld [vmem:[#allocation59_spill] sm:$0xff] }
 0x4f5   :  { %4272 = vmatpush.bf16.msra.mxu3 %v6764_v30  ;;  %v9648_v46 = vld [vmem:[#allocation67_spill] sm:$0xff]  ;;  %v8662_v30 = vor.u32 %v6791_v0, %v6319_v1  ;;  %v6776_v0 = vld [vmem:[#allocation12 + $0x2b0] sm:$0xff]  ;;  %v9657_v1 = vld [vmem:[#allocation30_spill] sm:$0xff] }
 0x4f7   :  { %4032 = vmatmul.bf16.vlgmr.msra.gmra.mxu0 %v8571_v53  ;;  %v9650_v53 = vld [vmem:[#allocation71_spill] sm:$0xff] }
 0x4f8   :  { %4409 = vmatpush.bf16.msra.mxu2 %v9641_v7  ;;  %v3739_v7 = vpop.f32.mrf.mxu2 }
 0x4f9   :  { %4273 = vmatpush.bf16.msra.mxu3 %v6763_v27  ;;  %v3753_v16 = vpop.f32.mrf.mxu3 }
 0x4fc   :  { %4410 = vmatpush.bf16.msra.mxu2 %v9643_v42  ;;  %v3754_v42 = vadd.f32 %v3753_v16, %v3739_v7  ;;  %v9653_v16 = vld [vmem:[#allocation26_spill] sm:$0xff] }
 0x4fd   :  { %4274 = vmatpush.bf16.msra.mxu3 %v6762_v22  ;;  %v9654_v22 = vld [vmem:[#allocation79_spill] sm:$0xff] }
 0x500   :  { %4411 = vmatpush.bf16.msra.mxu2 %v9645_v56  ;;  %v9649_v56 = vld [vmem:[#allocation22_spill] sm:$0xff]  ;;  %v3741_v27 = vpop.f32.mrf.mxu2 }
 0x501   :  { %4365 = vmatpush.bf16.msrb.mxu3 %v9649_v56  ;;  %v3755_v36 = vpop.f32.mrf.mxu3  ;;  %v9655_v56 = vld [vmem:[#allocation28_spill] sm:$0xff] }
 0x502   :  { %v3756_v7 = vadd.f32 %v3755_v36, %v3741_v27  ;;  %v3823_v36 = vpop.f32.mrf.mxu1  ;;  %v9660_v27 = vld [vmem:[#allocation91_spill] sm:$0xff] }
 0x504   :  { %4412 = vmatpush.bf16.msra.mxu2 %v9646_v3  ;;  %v9651_v3 = vld [vmem:[#allocation24_spill] sm:$0xff] }
 0x505   :  { %4366 = vmatpush.bf16.msrb.mxu3 %v9651_v3  ;;  %v9658_v3 = vld [vmem:[#allocation87_spill] sm:$0xff] }
 0x508   :  { %4413 = vmatpush.bf16.msra.mxu2 %v9647_v4  ;;  %v9652_v4 = vld [vmem:[#allocation75_spill] sm:$0xff] }
 0x509   :  { %4367 = vmatpush.bf16.msrb.mxu3 %v9653_v16  ;;  %v6774_v16 = vld [vmem:[#allocation12 + $0x2a0] sm:$0xff] }
 0x50c   :  { %4414 = vmatpush.bf16.msra.mxu2 %v9648_v46  ;;  %v6777_v46 = vld [vmem:[#allocation12 + $0x2b8] sm:$0xff] }
 0x50d   :  { %4281 = vmatpush.bf16.msrb.mxu0 %v6777_v46  ;;  %4368 = vmatpush.bf16.msrb.mxu3 %v9655_v56  ;;  %v9661_v56 = vld [vmem:[#allocation34_spill] sm:$0xff] }
 0x50f   :  { %4415 = vmatmul.bf16.vlgmr.msra.gmra.mxu2 %v8662_v30 }
 0x510   :  { %4463 = vmatpush.bf16.msrb.mxu2 %v9650_v53  ;;  %v9656_v53 = vld [vmem:[#allocation83_spill] sm:$0xff] }
 0x511   :  { %4282 = vmatpush.bf16.msrb.mxu0 %v6776_v0  ;;  %4369 = vmatpush.bf16.msrb.mxu3 %v9657_v1  ;;  %v6773_v0 = vld [vmem:[#allocation12 + $0x298] sm:$0xff] }
 0x512   :  { %v9663_v1 = vld [vmem:[#allocation70_spill] sm:$0xff] }
 0x513   :  { %v3767_v46 = vpop.f32.mrf.mxu0 }
 0x514   :  { %4464 = vmatpush.bf16.msrb.mxu2 %v9652_v4  ;;  %v9659_v4 = vld [vmem:[#allocation32_spill] sm:$0xff] }
 0x515   :  { %4283 = vmatpush.bf16.msrb.mxu0 %v6775_v2  ;;  %4370 = vmatpush.bf16.msrb.mxu3 %v9659_v4  ;;  %v9665_v2 = vld [vmem:[#allocation36_spill] sm:$0xff]  ;;  %v9666_v4 = vld [vmem:[#allocation99_spill] sm:$0xff] }
 0x518   :  { %4465 = vmatpush.bf16.msrb.mxu2 %v9654_v22  ;;  %v3837_v22 = vpop.f32.mrf.mxu2 }
 0x519   :  { %4284 = vmatpush.bf16.msrb.mxu0 %v6774_v16  ;;  %4371 = vmatpush.bf16.msrb.mxu3 %v9661_v56  ;;  %v3825_v56 = vpop.f32.mrf.mxu1 }
 0x51c   :  { %4466 = vmatpush.bf16.msrb.mxu2 %v9656_v53  ;;  %v3768_v53 = vadd.f32 %v3767_v46, %v3754_v42 }
 0x51d   :  { %4285 = vmatpush.bf16.msrb.mxu0 %v6773_v0  ;;  %4372 = vmatpush.bf16.msrb.mxu3 %v9665_v2  ;;  %v3851_v0 = vpop.f32.mrf.mxu3  ;;  %v9670_v2 = vld [vmem:[#allocation164_spill] sm:$0xff] }
 0x51e   :  { %v8678_v49 = vadd.f32 %v3768_v53, %v9663_v1  ;;  %v6771_v53 = vld [vmem:[#allocation12 + $0x288] sm:$0xff]  ;;  %v9669_v1 = vld [vmem:[#allocation107_spill] sm:$0xff] }
 0x520   :  { %4467 = vmatpush.bf16.msrb.mxu2 %v9658_v3  ;;  %9664 = vst [vmem:[#allocation74_spill] sm:$0xff] %v8678_v49  ;;  %v6790_v3 = vld [vmem:[#allocation2 + $0x5c] sm:$0xf0]  ;;  %v3839_v42 = vpop.f32.mrf.mxu2 }
 0x521   :  { %4286 = vmatpush.bf16.msrb.mxu0 %v6772_v37  ;;  %v6770_v49 = vld [vmem:[#allocation12 + $0x280] sm:$0xff] }
 0x524   :  { %4468 = vmatpush.bf16.msrb.mxu2 %v9660_v27  ;;  %v6311_v27 = vld [vmem:[#allocation2 + $0x28] sm:$0xf] }
 0x525   :  { %v8683_v16 = vor.u32 %v6790_v3, %v6311_v27  ;;  %4287 = vmatpush.bf16.msrb.mxu0 %v6771_v53  ;;  %v3879_v3 = vpop.f32.mrf.mxu1  ;;  %v9672_v27 = vld [vmem:[#allocation37_spill] sm:$0xff] }
 0x528   :  { %4469 = vmatpush.bf16.msrb.mxu2 %v9662_v29  ;;  %v3769_v29 = vpop.f32.mrf.mxu0 }
 0x529   :  { %v8686_v46 = vadd.f32 %v3769_v29, %v3756_v7  ;;  %4288 = vmatpush.bf16.msrb.mxu0 %v6770_v49  ;;  %v3893_v7 = vpop.f32.mrf.mxu2  ;;  %v9673_v29 = vld [vmem:[#allocation115_spill] sm:$0xff] }
 0x52b   :  { %9668 = vst [vmem:[#allocation113_spill] sm:$0xff] %v8686_v46  ;;  %v3853_v46 = vpop.f32.mrf.mxu3 }
 0x52c   :  { %4470 = vmatpush.bf16.msrb.mxu2 %v9666_v4  ;;  %v3824_v4 = vadd.f32 %v3823_v36, %v9670_v2 }
 0x52d   :  { %4379 = vmatpush.bf16.msra.mxu0 %v9672_v27 }
 0x52f   :  { %4471 = vmatmul.bf16.vlgmr.msrb.gmra.mxu2 %v8683_v16 }
 0x530   :  { %4519 = vmatpush.bf16.msra.mxu2 %v9667_v14  ;;  %v3838_v14 = vadd.f32 %v3837_v22, %v3824_v4  ;;  %v3865_v37 = vpop.f32.mrf.mxu0  ;;  %v9674_v22 = vld [vmem:[#allocation119_spill] sm:$0xff] }
 0x531   :  { %4380 = vmatpush.bf16.msra.mxu0 %v9459_v21  ;;  %v9677_v21 = vld [vmem:[#allocation49_spill] sm:$0xff] }
 0x532   :  { %v3852_v5 = vadd.f32 %v3851_v0, %v3838_v14  ;;  %v6783_v0 = vld [vmem:[#allocation12 + $0x2e8] sm:$0xff] }
 0x534   :  { %4520 = vmatpush.bf16.msra.mxu2 %v9669_v1  ;;  %v3826_v1 = vadd.f32 %v3825_v56, %v9670_v2  ;;  %v3866_v53 = vadd.f32 %v3865_v37, %v3852_v5  ;;  %v3895_v37 = vpop.f32.mrf.mxu2 }
 0x535   :  { %4381 = vmatpush.bf16.msra.mxu0 %v9675_v18 }
 0x536   :  { %v3840_v36 = vadd.f32 %v3839_v42, %v3826_v1  ;;  %v3880_v4 = vadd.f32 %v3879_v3, %v3866_v53  ;;  %v9678_v1 = vld [vmem:[#allocation127_spill] sm:$0xff] }
 0x537   :  { %v6782_v53 = vld [vmem:[#allocation12 + $0x2e0] sm:$0xff] }
 0x538   :  { %4521 = vmatpush.bf16.msra.mxu2 %v9671_v39  ;;  %v6784_v39 = vld [vmem:[#allocation12 + $0x2f0] sm:$0xff]  ;;  %v3854_v49 = vadd.f32 %v3853_v46, %v3840_v36  ;;  %v3867_v27 = vpop.f32.mrf.mxu0  ;;  %v3894_v56 = vadd.f32 %v3893_v7, %v3880_v4  ;;  %v9682_v7 = vld [vmem:[#allocation40_spill] sm:$0xff] }
 0x539   :  { %4296 = vmatpush.bf16.msrb.mxu1 %v6784_v39  ;;  %4382 = vmatpush.bf16.msra.mxu0 %v9677_v21  ;;  %v9679_v36 = vld [vmem:[#allocation53_spill] sm:$0xff]  ;;  %v9680_v39 = vld [vmem:[#allocation130_spill] sm:$0xff]  ;;  %v9688_v21 = vld [vmem:[#allocation48_spill] sm:$0xff] }
 0x53a   :  { %v3868_v14 = vadd.f32 %v3867_v27, %v3854_v49  ;;  %v4066_v46 = vmax.f32 %v3894_v56, 0.0  ;;  %v9681_v49 = vld [vmem:[#allocation134_spill] sm:$0xff]  ;;  %v9683_v4 = vld [vmem:[#allocation57_spill] sm:$0xff]  ;;  %v3907_v27 = vpop.f32.mrf.mxu3  ;;  %v6779_v56 = vld [vmem:[#allocation12 + $0x2c8] sm:$0xff] }
 0x53c   :  { %4522 = vmatpush.bf16.msra.mxu2 %v9673_v29  ;;  %v3881_v29 = vpop.f32.mrf.mxu1 }
 0x53d   :  { %v3882_v5 = vadd.f32 %v3881_v29, %v3868_v14  ;;  %4297 = vmatpush.bf16.msrb.mxu1 %v6783_v0  ;;  %4383 = vmatpush.bf16.msra.mxu0 %v9679_v36  ;;  %v9684_v0 = vld [vmem:[#allocation138_spill] sm:$0xff]  ;;  %v9685_v14 = vld [vmem:[#allocation44_spill] sm:$0xff]  ;;  %v6780_v29 = vld [vmem:[#allocation12 + $0x2d0] sm:$0xff] }
 0x53e   :  { %v6786_v36 = vld [vmem:[#allocation2 + $0x24] sm:$0xf] }
 0x53f   :  { %v3896_v42 = vadd.f32 %v3895_v37, %v3882_v5  ;;  %v9687_v37 = vld [vmem:[#allocation142_spill] sm:$0xff] }
 0x540   :  { %4523 = vmatpush.bf16.msra.mxu2 %v9674_v22  ;;  %v6781_v22 = vld [vmem:[#allocation12 + $0x2d8] sm:$0xff]  ;;  %v3921_v5 = vpop.f32.mrf.mxu0 }
 0x541   :  { %v4069_v3 = vmax.f32 %v3896_v42, 0.0  ;;  %4298 = vmatpush.bf16.msrb.mxu1 %v6782_v53  ;;  %4384 = vmatpush.bf16.msra.mxu0 %v9683_v4  ;;  %v9689_v42 = vld [vmem:[#allocation65_spill] sm:$0xff]  ;;  %v9691_v53 = vld [vmem:[#allocation52_spill] sm:$0xff] }
 0x543   :  { %v4072_v18 = vpack.c.bf16 %v4069_v3, %v4066_v46  ;;  %v6778_v46 = vld [vmem:[#allocation12 + $0x2c0] sm:$0xff]  ;;  %v9690_v3 = vld [vmem:[#allocation146_spill] sm:$0xff] }
 0x544   :  { %4524 = vmatpush.bf16.msra.mxu2 %v9676_v15  ;;  %v9686_v15 = vld [vmem:[#allocation61_spill] sm:$0xff] }
 0x545   :  { %4275 = vmatmul.bf16.vlgmr.msra.gmra.mxu3 %v4072_v18  ;;  %4299 = vmatpush.bf16.msrb.mxu1 %v6781_v22  ;;  %v3935_v18 = vpop.f32.mrf.mxu1 }
 0x546   :  { %4421 = vmatpush.bf16.msra.mxu3 %v9682_v7  ;;  %4385 = vmatpush.bf16.msra.mxu0 %v9686_v15  ;;  %v9693_v7 = vld [vmem:[#allocation165_spill] sm:$0xff] }
 0x547   :  { %v3908_v4 = vadd.f32 %v3907_v27, %v9693_v7  ;;  %v9699_v27 = vld [vmem:[#allocation158_spill] sm:$0xff] }
 0x548   :  { %4525 = vmatpush.bf16.msra.mxu2 %v9678_v1  ;;  %v6305_v1 = vld [vmem:[#allocation2 + $0x58] sm:$0xf0]  ;;  %v3923_v15 = vpop.f32.mrf.mxu0 }
 0x549   :  { %4300 = vmatpush.bf16.msrb.mxu1 %v6780_v29  ;;  %v8714_v22 = vor.u32 %v6786_v36, %v6305_v1  ;;  %v3949_v29 = vpop.f32.mrf.mxu2  ;;  %v9697_v1 = vld [vmem:[#allocation60_spill] sm:$0xff] }
 0x54a   :  { %4422 = vmatpush.bf16.msra.mxu3 %v9685_v14  ;;  %4386 = vmatpush.bf16.msra.mxu0 %v9689_v42  ;;  %v9695_v14 = vld [vmem:[#allocation38_spill] sm:$0xff] }
 0x54c   :  { %4526 = vmatpush.bf16.msra.mxu2 %v9680_v39  ;;  %v3909_v39 = vpop.f32.mrf.mxu3 }
 0x54d   :  { %4301 = vmatpush.bf16.msrb.mxu1 %v6779_v56  ;;  %v3910_v56 = vadd.f32 %v3909_v39, %v9693_v7  ;;  %v3937_v36 = vpop.f32.mrf.mxu1 }
 0x54e   :  { %4423 = vmatpush.bf16.msra.mxu3 %v9688_v21  ;;  %v9696_v21 = vld [vmem:[#allocation154_spill] sm:$0xff] }
 0x54f   :  { %4527 = vmatmul.bf16.vlgmr.msra.gmra.mxu2 %v8645_v44  ;;  %v3924_v42 = vadd.f32 %v3923_v15, %v3910_v56  ;;  %v9703_v56 = vld [vmem:[#allocation68_spill] sm:$0xff] }
 0x550   :  { %4575 = vmatpush.bf16.msrb.mxu2 %v9681_v49  ;;  %v9692_v49 = vld [vmem:[#allocation150_spill] sm:$0xff] }
 0x551   :  { %4302 = vmatpush.bf16.msrb.mxu1 %v6778_v46  ;;  %v9698_v46 = vld [vmem:[#allocation42_spill] sm:$0xff] }
 0x552   :  { %4424 = vmatpush.bf16.msra.mxu3 %v9691_v53 }
 0x554   :  { %4576 = vmatpush.bf16.msrb.mxu2 %v9684_v0  ;;  %v9694_v0 = vld [vmem:[#allocation56_spill] sm:$0xff]  ;;  %v3977_v2 = vpop.f32.mrf.mxu0 }
 0x555   :  { %4373 = vmatmul.bf16.vlgmr.msrb.gmra.mxu3 %v8714_v22  ;;  %4393 = vmatpush.bf16.msra.mxu1 %v9695_v14  ;;  %v9701_v14 = vld [vmem:[#allocation46_spill] sm:$0xff] }
 0x556   :  { %4425 = vmatpush.bf16.msra.mxu3 %v9694_v0  ;;  %v9700_v0 = vld [vmem:[#allocation64_spill] sm:$0xff] }
 0x558   :  { %4577 = vmatpush.bf16.msrb.mxu2 %v9687_v37  ;;  %v3922_v37 = vadd.f32 %v3921_v5, %v3908_v4  ;;  %v6321_v5 = vld [vmem:[#allocation2 + $0x68] sm:$0xf0]  ;;  %v3951_v4 = vpop.f32.mrf.mxu2 }
 0x559   :  { %4394 = vmatpush.bf16.msra.mxu1 %v9698_v46  ;;  %v9704_v46 = vld [vmem:[#allocation50_spill] sm:$0xff] }
 0x55a   :  { %4426 = vmatpush.bf16.msra.mxu3 %v9697_v1  ;;  %v3936_v53 = vadd.f32 %v3935_v18, %v3922_v37  ;;  %v6788_v1 = vld [vmem:[#allocation2 + $0x34] sm:$0xf]  ;;  %v9705_v18 = vld [vmem:[#allocation72_spill] sm:$0xff] }
 0x55b   :  { %v8732_v37 = vor.u32 %v6788_v1, %v6321_v5  ;;  %v9709_v5 = vld [vmem:[#allocation80_spill] sm:$0xff]  ;;  %v9710_v1 = vld [vmem:[#allocation62_spill] sm:$0xff] }
 0x55c   :  { %4578 = vmatpush.bf16.msrb.mxu2 %v9690_v3  ;;  %v3963_v3 = vpop.f32.mrf.mxu3  ;;  %v3950_v39 = vadd.f32 %v3949_v29, %v3936_v53 }
 0x55d   :  { %4395 = vmatpush.bf16.msra.mxu1 %v9701_v14 }
 0x55e   :  { %4427 = vmatpush.bf16.msra.mxu3 %v9700_v0  ;;  %v9707_v0 = vld [vmem:[#allocation76_spill] sm:$0xff] }
 0x560   :  { %4579 = vmatpush.bf16.msrb.mxu2 %v9692_v49  ;;  %v3938_v49 = vadd.f32 %v3937_v36, %v3924_v42  ;;  %v3964_v42 = vadd.f32 %v3963_v3, %v3950_v39  ;;  %v4005_v3 = vpop.f32.mrf.mxu2 }
 0x561   :  { %4396 = vmatpush.bf16.msra.mxu1 %v9704_v46  ;;  %v9708_v46 = vld [vmem:[#allocation58_spill] sm:$0xff] }
 0x562   :  { %v3952_v15 = vadd.f32 %v3951_v4, %v3938_v49  ;;  %4428 = vmatpush.bf16.msra.mxu3 %v9703_v56  ;;  %v3978_v53 = vadd.f32 %v3977_v2, %v3964_v42  ;;  %v3979_v49 = vpop.f32.mrf.mxu0  ;;  %v3991_v4 = vpop.f32.mrf.mxu1  ;;  %v9712_v2 = vld [vmem:[#allocation84_spill] sm:$0xff]  ;;  %v9714_v42 = vld [vmem:[#allocation73_spill] sm:$0xff] }
 0x564   :  { %4580 = vmatpush.bf16.msrb.mxu2 %v9696_v21  ;;  %v9702_v21 = vld [vmem:[#allocation162_spill] sm:$0xff]  ;;  %v3965_v36 = vpop.f32.mrf.mxu3 }
 0x565   :  { %4429 = vmatmul.bf16.vlgmr.msra.gmra.mxu3 %v8732_v37  ;;  %v3966_v29 = vadd.f32 %v3965_v36, %v3952_v15  ;;  %v9711_v15 = vld [vmem:[#allocation69_spill] sm:$0xff]  ;;  %v9715_v36 = vld [vmem:[#allocation88_spill] sm:$0xff] }
 0x566   :  { %4477 = vmatpush.bf16.msrb.mxu3 %v9705_v18  ;;  %v9713_v18 = vld [vmem:[#allocation66_spill] sm:$0xff] }
 0x567   :  { %v3980_v14 = vadd.f32 %v3979_v49, %v3966_v29  ;;  %v9716_v49 = vld [vmem:[#allocation77_spill] sm:$0xff] }
 0x568   :  { %4581 = vmatpush.bf16.msrb.mxu2 %v9699_v27  ;;  %v9706_v27 = vld [vmem:[#allocation54_spill] sm:$0xff] }
 0x569   :  { %4397 = vmatpush.bf16.msra.mxu1 %v9706_v27  ;;  %v4070_v56 = vmax.f32 %v3980_v14, 0.0  ;;  %v3992_v14 = vadd.f32 %v3991_v4, %v9607_v58  ;;  %v6787_v4 = vld [vmem:[#allocation2 + $0x2c] sm:$0xf] }
 0x56a   :  { %4478 = vmatpush.bf16.msrb.mxu3 %v9707_v0  ;;  %v3993_v29 = vpop.f32.mrf.mxu1  ;;  %v9717_v0 = vld [vmem:[#allocation92_spill] sm:$0xff] }
 0x56c   :  { %4582 = vmatpush.bf16.msrb.mxu2 %v9702_v21  ;;  %v4067_v21 = vmax.f32 %v3978_v53, 0.0  ;;  %v4007_v53 = vpop.f32.mrf.mxu2  ;;  %v4019_v27 = vpop.f32.mrf.mxu3 }
 0x56d   :  { %4398 = vmatpush.bf16.msra.mxu1 %v9708_v46  ;;  %v9719_v46 = vld [vmem:[#allocation96_spill] sm:$0xff] }
 0x56e   :  { %4479 = vmatpush.bf16.msrb.mxu3 %v9709_v5  ;;  %v4073_v39 = vpack.c.bf16 %v4070_v56, %v4067_v21  ;;  %v4006_v21 = vadd.f32 %v4005_v3, %v3992_v14  ;;  %v9718_v56 = vld [vmem:[#allocation81_spill] sm:$0xff] }
 0x56f   :  { %4583 = vmatmul.bf16.vlgmr.msrb.gmra.mxu2 %v8662_v30 }
 0x570   :  { %4289 = vmatmul.bf16.vlgmr.msrb.gmra.mxu0 %v4073_v39 }
 0x571   :  { %4399 = vmatpush.bf16.msra.mxu1 %v9710_v1  ;;  %4435 = vmatpush.bf16.msrb.mxu0 %v9711_v15  ;;  %v4020_v1 = vadd.f32 %v4019_v27, %v4006_v21  ;;  %v6313_v15 = vld [vmem:[#allocation2 + $0x60] sm:$0xf0] }
 0x572   :  { %4480 = vmatpush.bf16.msrb.mxu3 %v9712_v2  ;;  %v4047_v5 = vpop.f32.mrf.mxu1 }
 0x574   :  { %v4033_v39 = vpop.f32.mrf.mxu0  ;;  %v4061_v2 = vpop.f32.mrf.mxu2 }
 0x575   :  { %4400 = vmatpush.bf16.msra.mxu1 %v9713_v18  ;;  %4436 = vmatpush.bf16.msrb.mxu0 %v9714_v42  ;;  %v3994_v18 = vadd.f32 %v3993_v29, %v9607_v58  ;;  %v4034_v42 = vadd.f32 %v4033_v39, %v4020_v1  ;;  %v4021_v3 = vpop.f32.mrf.mxu3 }
 0x576   :  { %4481 = vmatpush.bf16.msrb.mxu3 %v9715_v36  ;;  %v9720_v36 = vld [vmem:[#allocation85_spill] sm:$0xff] }
 0x577   :  { %v4008_v14 = vadd.f32 %v4007_v53, %v3994_v18  ;;  %v4048_v21 = vadd.f32 %v4047_v5, %v4034_v42  ;;  %v6792_v5 = vld [vmem:[#allocation12 + $0x300] sm:$0xff]  ;;  %v9746_v18 = vld [vmem:[#allocation93_spill] sm:$0xff] }
 0x579   :  { %4437 = vmatpush.bf16.msrb.mxu0 %v9716_v49  ;;  %v9721_v49 = vld [vmem:[#allocation100_spill] sm:$0xff]  ;;  %v4022_v27 = vadd.f32 %v4021_v3, %v4008_v14  ;;  %v4062_v39 = vadd.f32 %v4061_v2, %v4048_v21  ;;  %v9748_v3 = vld [vmem:[#allocation74_spill] sm:$0xff]  ;;  %v9749_v14 = vld [vmem:[#allocation97_spill] sm:$0xff] }
 0x57a   :  { %4482 = vmatpush.bf16.msrb.mxu3 %v9717_v0  ;;  %v8756_v0 = vor.u32 %v6787_v4, %v6313_v15  ;;  %v9745_v2 = vld [vmem:[#allocation120_spill] sm:$0xff] }
 0x57b   :  { %v4068_v53 = vmax.f32 %v4062_v39, 0.0  ;;  %v2686_v42 = vadd.f32 %v9746_v18, %v9745_v2  ;;  %v9750_v39 = vld [vmem:[#allocation113_spill] sm:$0xff] }
 0x57d   :  { %4438 = vmatpush.bf16.msrb.mxu0 %v9718_v56  ;;  %v4035_v56 = vpop.f32.mrf.mxu0 }
 0x57e   :  { %4483 = vmatpush.bf16.msrb.mxu3 %v9719_v46  ;;  %v4036_v29 = vadd.f32 %v4035_v56, %v4022_v27  ;;  %v4049_v46 = vpop.f32.mrf.mxu1  ;;  %v2700_v27 = vadd.f32 %v9749_v14, %v2686_v42  ;;  %v6812_v42 = vld [vmem:[#allocation12 + $0x3a0] sm:$0xff] }
 0x580   :  { %4387 = vmatmul.bf16.vlgmr.msra.gmra.mxu0 %v8683_v16  ;;  %v4050_v1 = vadd.f32 %v4049_v46, %v4036_v29 }
 0x581   :  { %4439 = vmatpush.bf16.msrb.mxu0 %v9720_v36  ;;  %v4063_v36 = vpop.f32.mrf.mxu2 }
 0x582   :  { %4484 = vmatpush.bf16.msrb.mxu3 %v9721_v49  ;;  %v9747_v49 = vld [vmem:[#allocation109_spill] sm:$0xff] }
 0x585   :  { %4485 = vmatmul.bf16.vlgmr.msrb.gmra.mxu3 %v8756_v0  ;;  %4440 = vmatpush.bf16.msrb.mxu0 %v9499_v26 }
 0x586   :  { %4533 = vmatpush.bf16.msra.mxu3 %v9612_v6  ;;  %v4064_v6 = vadd.f32 %v4063_v36, %v4050_v1 }
 0x588   :  { %v4071_v15 = vmax.f32 %v4064_v6, 0.0 }
 0x589   :  { %4441 = vmatpush.bf16.msrb.mxu0 %v9392_v11  ;;  %v9724_v11 = vld [vmem:[#allocation159_spill] sm:$0xff] }
 0x58a   :  { %4534 = vmatpush.bf16.msra.mxu3 %v9500_v17  ;;  %v4074_v26 = vpack.c.bf16 %v4071_v15, %v4068_v53  ;;  %v6807_v15 = vld [vmem:[#allocation12 + $0x378] sm:$0xff] }
 0x58c   :  { %4303 = vmatmul.bf16.vlgmr.msrb.gmra.mxu1 %v4074_v26  ;;  %v9751_v26 = vld [vmem:[#allocation164_spill] sm:$0xff] }
 0x58d   :  { %4442 = vmatpush.bf16.msrb.mxu0 %v9394_v62  ;;  %4449 = vmatpush.bf16.msrb.mxu1 %v9398_v35  ;;  %v9725_v62 = vld [vmem:[#allocation114_spill] sm:$0xff]  ;;  %v9733_v35 = vld [vmem:[#allocation160_spill] sm:$0xff] }
 0x58e   :  { %4535 = vmatpush.bf16.msra.mxu3 %v9501_v20 }
 0x590   :  { %4443 = vmatmul.bf16.vlgmr.msrb.gmra.mxu0 %v8645_v44 }
 0x591   :  { %4491 = vmatpush.bf16.msra.mxu0 %v9395_v32  ;;  %4450 = vmatpush.bf16.msrb.mxu1 %v9401_v61  ;;  %v9729_v32 = vld [vmem:[#allocation152_spill] sm:$0xff]  ;;  %v9735_v61 = vld [vmem:[#allocation133_spill] sm:$0xff] }
 0x592   :  { %4536 = vmatpush.bf16.msra.mxu3 %v9502_v51  ;;  %v6799_v51 = vld [vmem:[#allocation12 + $0x338] sm:$0xff] }
 0x595   :  { %4492 = vmatpush.bf16.msra.mxu0 %v9396_v8  ;;  %4451 = vmatpush.bf16.msrb.mxu1 %v9404_v12  ;;  %v9731_v8 = vld [vmem:[#allocation156_spill] sm:$0xff]  ;;  %v9738_v12 = vld [vmem:[#allocation145_spill] sm:$0xff] }
 0x596   :  { %4537 = vmatpush.bf16.msra.mxu3 %v9391_v52  ;;  %v9728_v52 = vld [vmem:[#allocation118_spill] sm:$0xff] }
 0x599   :  { %4493 = vmatpush.bf16.msra.mxu0 %v9399_v40  ;;  %4452 = vmatpush.bf16.msrb.mxu1 %v9407_v28  ;;  %v9734_v40 = vld [vmem:[#allocation129_spill] sm:$0xff] }
 0x59a   :  { %4538 = vmatpush.bf16.msra.mxu3 %v9393_v48  ;;  %v9727_v48 = vld [vmem:[#allocation163_spill] sm:$0xff]  ;;  %v9741_v28 = vld [vmem:[#allocation157_spill] sm:$0xff] }
 0x59c   :  { %4401 = vmatmul.bf16.vlgmr.msra.gmra.mxu1 %v8756_v0 }
 0x59d   :  { %4494 = vmatpush.bf16.msra.mxu0 %v9402_v57  ;;  %4453 = vmatpush.bf16.msrb.mxu1 %v9410_v47  ;;  %v9736_v57 = vld [vmem:[#allocation137_spill] sm:$0xff] }
 0x59e   :  { %4539 = vmatpush.bf16.msra.mxu3 %v7944_v45  ;;  %v9722_v45 = vld [vmem:[#allocation110_spill] sm:$0xff] }
 0x5a1   :  { %4495 = vmatpush.bf16.msra.mxu0 %v9405_v38  ;;  %4454 = vmatpush.bf16.msrb.mxu1 %v9412_v63  ;;  %v9737_v63 = vld [vmem:[#allocation141_spill] sm:$0xff] }
 0x5a2   :  { %4540 = vmatpush.bf16.msra.mxu3 %v9503_v13  ;;  %v9739_v38 = vld [vmem:[#allocation149_spill] sm:$0xff] }
 0x5a5   :  { %4496 = vmatpush.bf16.msra.mxu0 %v9505_v19  ;;  %4541 = vmatmul.bf16.vlgmr.msra.gmra.mxu3 %v8714_v22 }
 0x5a6   :  { %4589 = vmatpush.bf16.msrb.mxu3 %v9504_v33  ;;  %4455 = vmatpush.bf16.msrb.mxu1 %v9415_v23  ;;  %v9740_v23 = vld [vmem:[#allocation153_spill] sm:$0xff] }
 0x5a9   :  { %4497 = vmatpush.bf16.msra.mxu0 %v9507_v34  ;;  %v6797_v34 = vld [vmem:[#allocation12 + $0x328] sm:$0xff] }
 0x5aa   :  { %4590 = vmatpush.bf16.msrb.mxu3 %v9506_v25  ;;  %4456 = vmatpush.bf16.msrb.mxu1 %v9417_v41  ;;  %v9742_v41 = vld [vmem:[#allocation161_spill] sm:$0xff] }
 0x5ab   :  { %v6798_v25 = vld [vmem:[#allocation12 + $0x330] sm:$0xff] }
 0x5ad   :  { %4498 = vmatpush.bf16.msra.mxu0 %v9413_v59  ;;  %4457 = vmatmul.bf16.vlgmr.msrb.gmra.mxu1 %v8714_v22  ;;  %v9732_v59 = vld [vmem:[#allocation126_spill] sm:$0xff] }
 0x5ae   :  { %4591 = vmatpush.bf16.msrb.mxu3 %v9508_v31  ;;  %4505 = vmatpush.bf16.msra.mxu1 %v9418_v55  ;;  %v9726_v55 = vld [vmem:[#allocation148_spill] sm:$0xff]  ;;  %v6796_v31 = vld [vmem:[#allocation12 + $0x320] sm:$0xff] }
 0x5b0   :  { %4499 = vmatmul.bf16.vlgmr.msra.gmra.mxu0 %v8662_v30  ;;  %v9743_v30 = vld [vmem:[#allocation101_spill] sm:$0xff] }
 0x5b1   :  { %4547 = vmatpush.bf16.msrb.mxu0 %v9414_v54  ;;  %v9723_v54 = vld [vmem:[#allocation144_spill] sm:$0xff] }
 0x5b2   :  { %4592 = vmatpush.bf16.msrb.mxu3 %v9509_v43  ;;  %4506 = vmatpush.bf16.msra.mxu1 %v9420_v50  ;;  %v9730_v50 = vld [vmem:[#allocation122_spill] sm:$0xff] }
 0x5b3   :  { %v6795_v43 = vld [vmem:[#allocation12 + $0x318] sm:$0xff] }
 0x5b5   :  { %4548 = vmatpush.bf16.msrb.mxu0 %v9510_v10  ;;  %v6794_v10 = vld [vmem:[#allocation12 + $0x310] sm:$0xff] }
 0x5b6   :  { %4593 = vmatpush.bf16.msrb.mxu3 %v9511_v9  ;;  %4507 = vmatpush.bf16.msra.mxu1 %v9722_v45  ;;  %v4360_v9 = vpop.f32.mrf.mxu2 }
 0x5b7   :  { %v4361_v45 = vadd.f32 %v4360_v9, %v9751_v26 }
 0x5b9   :  { %4549 = vmatpush.bf16.msrb.mxu0 %v9512_v24  ;;  %v6793_v24 = vld [vmem:[#allocation12 + $0x308] sm:$0xff] }
 0x5ba   :  { %4594 = vmatpush.bf16.msrb.mxu3 %v9513_v60  ;;  %4508 = vmatpush.bf16.msra.mxu1 %v9725_v62 }
 0x5bd   :  { %4550 = vmatpush.bf16.msrb.mxu0 %v9723_v54  ;;  %v6806_v54 = vld [vmem:[#allocation12 + $0x370] sm:$0xff] }
 0x5be   :  { %4595 = vmatpush.bf16.msrb.mxu3 %v9724_v11  ;;  %4509 = vmatpush.bf16.msra.mxu1 %v9728_v52  ;;  %v4362_v56 = vpop.f32.mrf.mxu2 }
 0x5c1   :  { %4551 = vmatpush.bf16.msrb.mxu0 %v9726_v55 }
 0x5c2   :  { %4596 = vmatpush.bf16.msrb.mxu3 %v9727_v48  ;;  %4510 = vmatpush.bf16.msra.mxu1 %v9730_v50 }
 0x5c5   :  { %4552 = vmatpush.bf16.msrb.mxu0 %v9729_v32  ;;  %4597 = vmatmul.bf16.vlgmr.msrb.gmra.mxu3 %v8732_v37  ;;  %v4363_v32 = vadd.f32 %v4362_v56, %v9751_v26 }
 0x5c6   :  { %4511 = vmatpush.bf16.msra.mxu1 %v9732_v59  ;;  %v4416_v62 = vpop.f32.mrf.mxu2 }
 0x5c8   :  { %v4276_v47 = vpop.f32.mrf.mxu3 }
 0x5c9   :  { %4553 = vmatpush.bf16.msrb.mxu0 %v9731_v8 }
 0x5ca   :  { %4512 = vmatpush.bf16.msra.mxu1 %v9734_v40 }
 0x5cd   :  { %4554 = vmatpush.bf16.msrb.mxu0 %v9733_v35  ;;  %4513 = vmatmul.bf16.vlgmr.msra.gmra.mxu1 %v8732_v37  ;;  %v6805_v35 = vld [vmem:[#allocation12 + $0x368] sm:$0xff] }
 0x5ce   :  { %4561 = vmatpush.bf16.msrb.mxu1 %v9735_v61 }
 0x5d0   :  { %4555 = vmatmul.bf16.vlgmr.msrb.gmra.mxu0 %v8683_v16  ;;  %v4278_v13 = vpop.f32.mrf.mxu3  ;;  %v9744_v16 = vld [vmem:[#allocation105_spill] sm:$0xff] }
 0x5d1   :  { %4804 = vmatpush.bf16.msra.mxu0 %v6799_v51  ;;  %v3219_v22 = vadd.f32 %v9744_v16, %v9743_v30 }
 0x5d2   :  { %4562 = vmatpush.bf16.msrb.mxu1 %v9736_v57 }
 0x5d3   :  { %v3233_v4 = vadd.f32 %v9747_v49, %v3219_v22 }
 0x5d5   :  { %4805 = vmatpush.bf16.msra.mxu0 %v6798_v25  ;;  %v3238_v21 = vadd.f32 %v3233_v4, %v2700_v27  ;;  %v6811_v27 = vld [vmem:[#allocation12 + $0x398] sm:$0xff] }
 0x5d6   :  { %4563 = vmatpush.bf16.msrb.mxu1 %v9737_v63 }
 0x5d7   :  { %v3775_v1 = vadd.f32 %v9750_v39, %v3238_v21 }
 0x5d8   :  { %v4374_v60 = vpop.f32.mrf.mxu3 }
 0x5d9   :  { %4806 = vmatpush.bf16.msra.mxu0 %v6797_v34  ;;  %v4375_v11 = vadd.f32 %v4374_v60, %v4361_v45  ;;  %v6800_v34 = vld [vmem:[#allocation12 + $0x340] sm:$0xff]  ;;  %v6813_v60 = vld [vmem:[#allocation12 + $0x3a8] sm:$0xff] }
 0x5da   :  { %4564 = vmatpush.bf16.msrb.mxu1 %v9738_v12  ;;  %v6804_v12 = vld [vmem:[#allocation12 + $0x360] sm:$0xff] }
 0x5dd   :  { %4807 = vmatpush.bf16.msra.mxu0 %v6796_v31 }
 0x5de   :  { %4565 = vmatpush.bf16.msrb.mxu1 %v9739_v38  ;;  %v4418_v38 = vpop.f32.mrf.mxu2 }
 0x5e0   :  { %v4376_v29 = vpop.f32.mrf.mxu3 }
 0x5e1   :  { %4808 = vmatpush.bf16.msra.mxu0 %v6795_v43  ;;  %v4377_v59 = vadd.f32 %v4376_v29, %v4363_v32  ;;  %v6815_v43 = vld [vmem:[#allocation12 + $0x3b8] sm:$0xff] }
 0x5e2   :  { %4566 = vmatpush.bf16.msrb.mxu1 %v9740_v23  ;;  %4832 = vmatpush.bf16.msra.mxu2 %v6815_v43  ;;  %v6822_v43 = vld [vmem:[#allocation13 + $0x30] sm:$0xff] }
 0x5e5   :  { %4809 = vmatpush.bf16.msra.mxu0 %v6794_v10  ;;  %v6814_v10 = vld [vmem:[#allocation12 + $0x3b0] sm:$0xff] }
 0x5e6   :  { %4567 = vmatpush.bf16.msrb.mxu1 %v9741_v28  ;;  %v4472_v9 = vpop.f32.mrf.mxu2  ;;  %4833 = vmatpush.bf16.msra.mxu2 %v6814_v10  ;;  %v6820_v10 = vld [vmem:[#allocation13 + $0x20] sm:$0xff] }
 0x5e8   :  { %v4430_v52 = vpop.f32.mrf.mxu3 }
 0x5e9   :  { %4810 = vmatpush.bf16.msra.mxu0 %v6793_v24 }
 0x5ea   :  { %4568 = vmatpush.bf16.msrb.mxu1 %v9742_v41  ;;  %4834 = vmatpush.bf16.msra.mxu2 %v6813_v60  ;;  %v6817_v60 = vld [vmem:[#allocation13 + $0x8] sm:$0xff] }
 0x5ed   :  { %4569 = vmatmul.bf16.vlgmr.msrb.gmra.mxu1 %v8756_v0  ;;  %v4290_v20 = vpop.f32.mrf.mxu0  ;;  %4811 = vmatpush.bf16.msra.mxu0 %v6792_v5 }
 0x5ee   :  { %v4291_v17 = vadd.f32 %v4290_v20, %v4276_v47  ;;  %4818 = vmatpush.bf16.msra.mxu1 %v6807_v15  ;;  %v6803_v20 = vld [vmem:[#allocation12 + $0x358] sm:$0xff]  ;;  %v4474_v49 = vpop.f32.mrf.mxu2  ;;  %4835 = vmatpush.bf16.msra.mxu2 %v6812_v42  ;;  %v6809_v15 = vld [vmem:[#allocation12 + $0x388] sm:$0xff] }
 0x5f0   :  { %v4432_v41 = vpop.f32.mrf.mxu3 }
 0x5f2   :  { %4819 = vmatpush.bf16.msra.mxu1 %v6806_v54  ;;  %4836 = vmatpush.bf16.msra.mxu2 %v6811_v27 }
 0x5f5   :  { %v4292_v33 = vpop.f32.mrf.mxu0 }
 0x5f6   :  { %v4293_v19 = vadd.f32 %v4292_v33, %v4278_v13  ;;  %4820 = vmatpush.bf16.msra.mxu1 %v6805_v35  ;;  %v6802_v33 = vld [vmem:[#allocation12 + $0x350] sm:$0xff]  ;;  %v4528_v26 = vpop.f32.mrf.mxu2 }
 0x5fa   :  { %4821 = vmatpush.bf16.msra.mxu1 %v6804_v12 }
 0x5fd   :  { %v4388_v6 = vpop.f32.mrf.mxu0 }
 0x5fe   :  { %v4389_v48 = vadd.f32 %v4388_v6, %v4375_v11  ;;  %4822 = vmatpush.bf16.msra.mxu1 %v6803_v20 }
 0x602   :  { %4823 = vmatpush.bf16.msra.mxu1 %v6802_v33 }
 0x605   :  { %v4390_v8 = vpop.f32.mrf.mxu0 }
 0x606   :  { %v4391_v40 = vadd.f32 %v4390_v8, %v4377_v59 }
 0x608   :  { %v4486_v30 = vpop.f32.mrf.mxu3 }
 0x609   :  { %v4304_v44 = vpop.f32.mrf.mxu1 }
 0x60a   :  { %v4305_v37 = vadd.f32 %v4304_v44, %v4291_v17 }
 0x60c   :  { %v8832_v0 = vadd.f32 %v4305_v37, %v9748_v3 }
 0x60d   :  { %v4444_v25 = vpop.f32.mrf.mxu0 }
 0x60e   :  { %v4445_v44 = vadd.f32 %v4444_v25, %v9693_v7 }
 0x610   :  { %v4488_v21 = vpop.f32.mrf.mxu3 }
 0x611   :  { %v4306_v46 = vpop.f32.mrf.mxu1 }
 0x612   :  { %v4307_v36 = vadd.f32 %v4306_v46, %v4293_v19  ;;  %v6801_v19 = vld [vmem:[#allocation12 + $0x348] sm:$0xff]  ;;  %v6810_v46 = vld [vmem:[#allocation12 + $0x390] sm:$0xff] }
 0x613   :  { %4824 = vmatpush.bf16.msra.mxu1 %v6801_v19  ;;  %4837 = vmatpush.bf16.msra.mxu2 %v6810_v46 }
 0x614   :  { %v8836_v53 = vadd.f32 %v4307_v36, %v3775_v1 }
 0x615   :  { %v4446_v24 = vpop.f32.mrf.mxu0 }
 0x616   :  { %v4447_v22 = vadd.f32 %v4446_v24, %v9693_v7  ;;  %v6818_v24 = vld [vmem:[#allocation13 + $0x10] sm:$0xff] }
 0x617   :  { %4825 = vmatpush.bf16.msra.mxu1 %v6800_v34  ;;  %4838 = vmatpush.bf16.msra.mxu2 %v6809_v15 }
 0x619   :  { %v4402_v55 = vpop.f32.mrf.mxu1 }
 0x61a   :  { %v4403_v50 = vadd.f32 %v4402_v55, %v4389_v48  ;;  %v6808_v55 = vld [vmem:[#allocation12 + $0x380] sm:$0xff]  ;;  %v4530_v48 = vpop.f32.mrf.mxu2 }
 0x61b   :  { %4839 = vmatpush.bf16.msra.mxu2 %v6808_v55 }
 0x61c   :  { %v4417_v61 = vadd.f32 %v4416_v62, %v4403_v50  ;;  %v4529_v50 = vadd.f32 %v4528_v26, %v9607_v58 }
 0x61e   :  { %v4431_v23 = vadd.f32 %v4430_v52, %v4417_v61 }
 0x620   :  { %v4603_v17 = vmax.f32 %v4431_v23, 0.0 }
 0x621   :  { %v4404_v57 = vpop.f32.mrf.mxu1 }
 0x622   :  { %v4405_v63 = vadd.f32 %v4404_v57, %v4391_v40  ;;  %v4584_v59 = vpop.f32.mrf.mxu2  ;;  %v4531_v57 = vadd.f32 %v4530_v48, %v9607_v58  ;;  %v6821_v58 = vld [vmem:[#allocation13 + $0x28] sm:$0xff] }
 0x624   :  { %v4419_v28 = vadd.f32 %v4418_v38, %v4405_v63 }
 0x626   :  { %v4433_v47 = vadd.f32 %v4432_v41, %v4419_v28 }
 0x628   :  { %v4606_v51 = vmax.f32 %v4433_v47, 0.0  ;;  %v4542_v11 = vpop.f32.mrf.mxu3 }
 0x629   :  { %v4543_v8 = vadd.f32 %v4542_v11, %v4529_v50 }
 0x62a   :  { %v4609_v13 = vpack.c.bf16 %v4606_v51, %v4603_v17  ;;  %v4458_v31 = vpop.f32.mrf.mxu1  ;;  %v4586_v20 = vpop.f32.mrf.mxu2 }
 0x62b   :  { %v4459_v37 = vadd.f32 %v4458_v31, %v4445_v44  ;;  %v6823_v31 = vld [vmem:[#allocation13 + $0x38] sm:$0xff]  ;;  %v6816_v44 = vld [vmem:[#allocation13] sm:$0xff] }
 0x62c   :  { %4812 = vmatmul.bf16.vlgmr.msra.gmra.mxu0 %v4609_v13  ;;  %4931 = vmatpush.bf16.msra.mxu3 %v6823_v31 }
 0x62d   :  { %v4500_v2 = vpop.f32.mrf.mxu0  ;;  %v4473_v18 = vadd.f32 %v4472_v9, %v4459_v37  ;;  %v6819_v9 = vld [vmem:[#allocation13 + $0x18] sm:$0xff] }
 0x62f   :  { %v4487_v14 = vadd.f32 %v4486_v30, %v4473_v18 }
 0x630   :  { %v4544_v52 = vpop.f32.mrf.mxu3  ;;  %4932 = vmatpush.bf16.msra.mxu3 %v6822_v43 }
 0x631   :  { %v4501_v29 = vadd.f32 %v4500_v2, %v4487_v14  ;;  %v4545_v38 = vadd.f32 %v4544_v52, %v4531_v57 }
 0x632   :  { %v4460_v16 = vpop.f32.mrf.mxu1 }
 0x633   :  { %v4461_v5 = vadd.f32 %v4460_v16, %v4447_v22 }
 0x634   :  { %4933 = vmatpush.bf16.msra.mxu3 %v6821_v58 }
 0x635   :  { %v4475_v4 = vadd.f32 %v4474_v49, %v4461_v5  ;;  %v4502_v39 = vpop.f32.mrf.mxu0 }
 0x637   :  { %v4489_v56 = vadd.f32 %v4488_v21, %v4475_v4  ;;  %v6839_v4 = vld [vmem:[%s8864_s6] ss:$0 sm:$0xff] }
 0x638   :  { %4934 = vmatpush.bf16.msra.mxu3 %v6820_v10 }
 0x639   :  { %v4503_v7 = vadd.f32 %v4502_v39, %v4489_v56 }
 0x63c   :  { %4935 = vmatpush.bf16.msra.mxu3 %v6819_v9 }
 0x640   :  { %4936 = vmatpush.bf16.msra.mxu3 %v6818_v24 }
 0x644   :  { %4937 = vmatpush.bf16.msra.mxu3 %v6817_v60 }
 0x648   :  { %v4598_v61 = vpop.f32.mrf.mxu3  ;;  %4938 = vmatpush.bf16.msra.mxu3 %v6816_v44 }
 0x64a   :  { %v4514_v3 = vpop.f32.mrf.mxu1 }
 0x64b   :  { %v4515_v1 = vadd.f32 %v4514_v3, %v4501_v29 }
 0x64d   :  { %v4604_v45 = vmax.f32 %v4515_v1, 0.0  ;;  %v4556_v32 = vpop.f32.mrf.mxu0  ;;  %v6840_v1 = vld [vmem:[%s8866_s8] ss:$0 sm:$0xff] }
 0x64e   :  { %v4557_v40 = vadd.f32 %v4556_v32, %v4543_v8 }
 0x650   :  { %v4600_v13 = vpop.f32.mrf.mxu3 }
 0x652   :  { %v4516_v36 = vpop.f32.mrf.mxu1 }
 0x653   :  { %v4517_v6 = vadd.f32 %v4516_v36, %v4503_v7 }
 0x655   :  { %v4607_v54 = vmax.f32 %v4517_v6, 0.0  ;;  %v4558_v12 = vpop.f32.mrf.mxu0 }
 0x656   :  { %v4559_v23 = vadd.f32 %v4558_v12, %v4545_v38 }
 0x657   :  { %v4610_v62 = vpack.c.bf16 %v4607_v54, %v4604_v45 }
 0x659   :  { %4826 = vmatmul.bf16.vlgmr.msra.gmra.mxu1 %v4610_v62 }
 0x66a   :  { %v4570_v35 = vpop.f32.mrf.mxu1 }
 0x66b   :  { %v4571_v63 = vadd.f32 %v4570_v35, %v4557_v40 }
 0x66d   :  { %v4585_v28 = vadd.f32 %v4584_v59, %v4571_v63 }
 0x66f   :  { %v4599_v17 = vadd.f32 %v4598_v61, %v4585_v28 }
 0x671   :  { %v4605_v19 = vmax.f32 %v4599_v17, 0.0 }
 0x672   :  { %v4572_v41 = vpop.f32.mrf.mxu1 }
 0x673   :  { %v4573_v47 = vadd.f32 %v4572_v41, %v4559_v23 }
 0x675   :  { %v4587_v51 = vadd.f32 %v4586_v20, %v4573_v47 }
 0x677   :  { %v4601_v33 = vadd.f32 %v4600_v13, %v4587_v51 }
 0x679   :  { %v4608_v25 = vmax.f32 %v4601_v33, 0.0 }
 0x67b   :  { %v4611_v34 = vpack.c.bf16 %v4608_v25, %v4605_v19 }
 0x67d   :  { %4840 = vmatmul.bf16.vlgmr.msra.gmra.mxu2 %v4611_v34 }
 0x6a9   :  { %v4813_v16 = vpop.f32.mrf.mxu0 }
 0x6b1   :  { %v4815_v18 = vpop.f32.mrf.mxu0 }
 0x6d6   :  { %v4827_v30 = vpop.f32.mrf.mxu1 }
 0x6d7   :  { %v4828_v37 = vadd.f32 %v4827_v30, %v4813_v16 }
 0x6de   :  { %v4829_v2 = vpop.f32.mrf.mxu1 }
 0x6df   :  { %v4830_v42 = vadd.f32 %v4829_v2, %v4815_v18 }
 0x700   :  { %v4841_v22 = vpop.f32.mrf.mxu2 }
 0x701   :  { %v4842_v5 = vadd.f32 %v4841_v22, %v4828_v37 }
 0x703   :  { %v4848_v49 = vadd.f32 %v4842_v5, %v8832_v0 }
 0x705   :  { %v4858_v27 = vadd.f32 %v6839_v4, %v4848_v49 }
 0x707   :  { %v4860_v29 = vmax.f32 %v4858_v27, 0.0 }
 0x708   :  { %v4843_v3 = vpop.f32.mrf.mxu2 }
 0x709   :  { %v4844_v14 = vadd.f32 %v4843_v3, %v4830_v42 }
 0x70b   :  { %v4849_v21 = vadd.f32 %v4844_v14, %v8836_v53 }
 0x70d   :  { %v4859_v56 = vadd.f32 %v6839_v4, %v4849_v21 }
 0x70f   :  { %v4861_v46 = vmax.f32 %v4859_v56, 0.0 }
 0x711   :  { %v4862_v39 = vpack.c.bf16 %v4861_v46, %v4860_v29 }
 0x713   :  { %4939 = vmatmul.bf16.vlgmr.msra.gmra.mxu3 %v4862_v39 }
 0x796   :  { %v4940_v7 = vpop.f32.mrf.mxu3 }
 0x797   :  { %v4941_v0 = vadd.f32 %v6840_v1, %v4940_v7 }
 0x799   :  { %4945 = vst [vmem:[#allocation15] sm:$0xff] %v4941_v0 }
 0x79e   :  { %v4942_v36 = vpop.f32.mrf.mxu3 }
 0x79f   :  { %v4943_v53 = vadd.f32 %v6840_v1, %v4942_v36 }
 0x7a1   :  { %4946 = vst [vmem:[#allocation15 + $0x8] sm:$0xff] %v4943_v53 }
 0x7a2   :  { %4959 = dma.vmem_to_hbm [thread:$0]  %s4952_s26, 256, %s4954_s28, [#allocation6], %s7020_s17, %s7020_s17, %s7021_s18  }
 0x7a3   :  { %7017 = dma.done.wait [#allocation6], 256  }
 0x7a4   :  { %7018 = vsyncadd [#allocation6], 4294967040 }
 0x7a5   :  { %4964 = vsyncpa [#allocation5], 1 }
 0x7a6   :  { %4965 = vsyncpa [#allocation8], 1 }
 0x7a7   :  { %4966 = vsyncpa [#allocation11], 1 }
 0x7a8   :  { %4967 = vsyncpa [#allocation14], 1 }
 0x7a9   :  { %4968 = vsyncpa [#allocation6], 1 }

</bundles_post_ra>
